<compile_context>
chip_gen: v7x
topology: tpu7x:2x2x1
jax: 0.10.0
libtpu: 0.0.40
codegen_flags: <defaults>
</compile_context>

<pallas_src>
import functools

import jax
import jax.numpy as jnp
from jax.experimental import pallas as pl
from jax.experimental.pallas import tpu as pltpu


# ----------------------------------------------------------------------------
# Fused forward kernel (one batch element per grid step).
# ----------------------------------------------------------------------------
def _build_fused_kernel(num_layers, num_heads, n_value, eps=1e-5):
    L, H = num_layers, num_heads

    def kernel(*refs):
        (x_ref, mask_ref, ew_ref, eb_ref,
         wq_ref, bq_ref, wk_ref, bk_ref, wv_ref, bv_ref,
         wo_ref, bo_ref,
         g1_ref, be1_ref, w1_ref, b1_ref, w2_ref, b2_ref,
         g2_ref, be2_ref, sw_ref, sb_ref) = refs[:22]
        vrefs = refs[22:22 + 2 * n_value]
        h_out_ref, score_out_ref, v_out_ref = refs[22 + 2 * n_value:]

        x = x_ref[0]                              # (S, F_in)
        S = x.shape[0]
        E = ew_ref.shape[1]
        D = E // H
        scale = 1.0 / float(D) ** 0.5

        # Additive attention bias (+1.0 valid key, 0.0 padded key), broadcast
        # to (S, S) ONCE and reused across all L*H heads (hoisted; JAX does not
        # CSE broadcast_in_dim).
        bias = jnp.broadcast_to(mask_ref[0], (S, S))        # (S, S)

        # ---- embedder_pi: Linear(4, E) ----
        h = jnp.dot(x, ew_ref[...], preferred_element_type=jnp.float32) + eb_ref[...]

        # ---- transformer layers (statically unrolled, weights stacked on axis 0) --
        for l in range(L):
            # Multi-head attention with head-concat fused into the output
            # projection: attn = sum_h (softmax(q_h k_h^T * scale + bias) v_h) Wo_h
            attn = None
            for hh in range(H):
                qh = jnp.dot(h, wq_ref[l, hh],
                             preferred_element_type=jnp.float32) + bq_ref[l, hh]
                kh = jnp.dot(h, wk_ref[l, hh],
                             preferred_element_type=jnp.float32) + bk_ref[l, hh]
                vh = jnp.dot(h, wv_ref[l, hh],
                             preferred_element_type=jnp.float32) + bv_ref[l, hh]
                s = jax.lax.dot_general(qh, kh, (((1,), (1,)), ((), ())),
                                        preferred_element_type=jnp.float32)
                s = s * scale + bias
                s = s - jnp.max(s, axis=-1, keepdims=True)
                p = jnp.exp(s)
                p = p / jnp.sum(p, axis=-1, keepdims=True)   # exact normalization
                oh = jnp.dot(p, vh, preferred_element_type=jnp.float32)        # (S, D)
                c = jnp.dot(oh, wo_ref[l, hh],
                            preferred_element_type=jnp.float32)               # (S, E)
                attn = c if attn is None else attn + c
            attn = attn + bo_ref[l]

            # residual + LayerNorm1
            y = h + attn
            mu = jnp.mean(y, axis=-1, keepdims=True)
            var = jnp.mean((y - mu) ** 2, axis=-1, keepdims=True)
            y = (y - mu) * jax.lax.rsqrt(var + eps) * g1_ref[l] + be1_ref[l]

            # feedforward: Linear(E, E*H) -> ReLU -> Linear(E*H, E)
            ff = jnp.dot(y, w1_ref[l], preferred_element_type=jnp.float32) + b1_ref[l]
            ff = jnp.maximum(ff, 0.0)
            ff = jnp.dot(ff, w2_ref[l], preferred_element_type=jnp.float32) + b2_ref[l]

            # residual (dropout = identity at eval) + LayerNorm2
            z = y + ff
            mu2 = jnp.mean(z, axis=-1, keepdims=True)
            var2 = jnp.mean((z - mu2) ** 2, axis=-1, keepdims=True)
            h = (z - mu2) * jax.lax.rsqrt(var2 + eps) * g2_ref[l] + be2_ref[l]

        # ---- transformer output (flattened host-side) ----
        h_out_ref[0] = h

        # ---- scoring head: Linear(E, 1) per position, emitted as a (1, S) row ----
        sc = jax.lax.dot_general(sw_ref[...], h, (((1,), (1,)), ((), ())),
                                 preferred_element_type=jnp.float32) + sb_ref[...]
        score_out_ref[0] = sc

        # ---- value net: Flatten -> [Linear -> ReLU]* ----
        # First layer: flat @ W0 computed as S INDEPENDENT row-chunk matmuls
        # (w0 stored as (S, E, d0); chunks read per-s from the ref), combined
        # with a pairwise tree sum -> no serialized MXU-pop chain, no full
        # (S*E, d0) register materialization, no (S,E)->(1,S*E) relayout.
        w0_ref = vrefs[0]
        parts = [jnp.dot(h[s_:s_ + 1, :], w0_ref[s_],
                         preferred_element_type=jnp.float32) for s_ in range(S)]
        while len(parts) > 1:
            nxt = [parts[i] + parts[i + 1] for i in range(0, len(parts) - 1, 2)]
            if len(parts) % 2:
                nxt.append(parts[-1])
            parts = nxt
        vv = jnp.maximum(vrefs[1][...] + parts[0], 0.0)
        for li in range(1, n_value):
            vv = jnp.dot(vv, vrefs[2 * li][...],
                         preferred_element_type=jnp.float32) + vrefs[2 * li + 1][...]
            vv = jnp.maximum(vv, 0.0)
        v_out_ref[0] = vv

    return kernel


def _const_spec(shape):
    zeros = (0,) * len(shape)

    def idx(b):
        return zeros

    return pl.BlockSpec(shape, idx)


# ----------------------------------------------------------------------------
# Full forward (== CustomTransformerExtractor.forward at eval time).
# ----------------------------------------------------------------------------
def custom_transformer_extractor_forward(x, mask, params):
    B, S, F_in = x.shape
    E = params["feature_dim"]
    H = params["num_heads"]
    D = E // H
    L = params["wq"].shape[0]
    FF = params["w1"].shape[-1]
    value_layers = params["value_layers"]
    n_value = len(value_layers)
    assert n_value >= 1, "net_arch must contain at least one value layer"
    vf_dim = value_layers[-1][0].shape[-1]

    # Additive attention bias, replicating the PyTorch double masked_fill
    # (which nets out to mask.float()): +1.0 valid keys, 0.0 padded keys.
    mask_bias = mask.astype(jnp.float32).reshape(B, 1, S)

    kernel = _build_fused_kernel(L, H, n_value)

    in_specs = [
        pl.BlockSpec((1, S, F_in), lambda b: (b, 0, 0)),          # x
        pl.BlockSpec((1, 1, S), lambda b: (b, 0, 0)),             # mask bias
        _const_spec((F_in, E)), _const_spec((1, E)),              # embedder
        _const_spec((L, H, E, D)), _const_spec((L, H, 1, D)),     # Wq, bq (per head)
        _const_spec((L, H, E, D)), _const_spec((L, H, 1, D)),     # Wk, bk
        _const_spec((L, H, E, D)), _const_spec((L, H, 1, D)),     # Wv, bv
        _const_spec((L, H, D, E)), _const_spec((L, 1, E)),        # Wo (per head), bo
        _const_spec((L, 1, E)), _const_spec((L, 1, E)),           # ln1 gamma, beta
        _const_spec((L, E, FF)), _const_spec((L, 1, FF)),         # ffn W1, b1
        _const_spec((L, FF, E)), _const_spec((L, 1, E)),          # ffn W2, b2
        _const_spec((L, 1, E)), _const_spec((L, 1, E)),           # ln2 gamma, beta
        _const_spec((1, E)), _const_spec((1, 1)),                 # scoring head
    ]
    value_inputs = []
    for wv_, bv_ in value_layers:
        in_specs.append(_const_spec(wv_.shape))
        in_specs.append(_const_spec(bv_.shape))
        value_inputs += [wv_, bv_]

    out_shape = (
        jax.ShapeDtypeStruct((B, S, E), jnp.float32),             # transformer out
        jax.ShapeDtypeStruct((B, 1, S), jnp.float32),             # node scores
        jax.ShapeDtypeStruct((B, 1, vf_dim), jnp.float32),        # value latent
    )
    out_specs = (
        pl.BlockSpec((1, S, E), lambda b: (b, 0, 0)),
        pl.BlockSpec((1, 1, S), lambda b: (b, 0, 0)),
        pl.BlockSpec((1, 1, vf_dim), lambda b: (b, 0, 0)),
    )

    h, scores, v = pl.pallas_call(
        kernel,
        out_shape=out_shape,
        grid=(B,),
        in_specs=in_specs,
        out_specs=out_specs,
        compiler_params=pltpu.CompilerParams(dimension_semantics=("parallel",)),
    )(
        x, mask_bias,
        params["embed_w"], params["embed_b"],
        params["wq"], params["bq"],
        params["wk"], params["bk"],
        params["wv"], params["bv"],
        params["wo"], params["bo"],
        params["g1"], params["be1"],
        params["w1"], params["b1"],
        params["w2"], params["b2"],
        params["g2"], params["be2"],
        params["score_w"], params["score_b"],
        *value_inputs,
    )

    node_scores = scores.reshape(B, S)
    flat = h.reshape(B, S * E)          # flatten(transformer_output), free in XLA
    latent_vf = v.reshape(B, vf_dim)
    return (node_scores, flat), latent_vf


# ----------------------------------------------------------------------------
# Parameter construction (deterministic, in-script).  Weight layout is [in, out]
# so kernels compute x @ W + b (same math as PyTorch's x @ W_pt.T + b); attention
# weights are pre-split per head and stacked along leading (L, H) axes; the first
# value-net weight is pre-reshaped to (S, E, d0) (row-major flatten equivalent).
# ----------------------------------------------------------------------------
def init_params(key, feature_dim=32, num_heads=4, num_layers=2, seq=8,
                net_arch=(32,)):
    E, H, L = feature_dim, num_heads, num_layers
    D = E // H
    FF = E * H
    keys = iter(jax.random.split(key, 24 + 2 * len(net_arch)))

    def w(shape, scale):
        return jax.random.normal(next(keys), shape, jnp.float32) * scale

    s = E ** -0.5
    params = {
        "num_heads": H,
        "feature_dim": E,
        "embed_w": w((4, E), 0.5),
        "embed_b": w((1, E), 0.1),
        "wq": w((L, H, E, D), s),
        "bq": w((L, H, 1, D), 0.02),
        "wk": w((L, H, E, D), s),
        "bk": w((L, H, 1, D), 0.02),
        "wv": w((L, H, E, D), s),
        "bv": w((L, H, 1, D), 0.02),
        "wo": w((L, H, D, E), s),
        "bo": w((L, 1, E), 0.02),
        "g1": jnp.ones((L, 1, E), jnp.float32),
        "be1": jnp.zeros((L, 1, E), jnp.float32),
        "w1": w((L, E, FF), s),
        "b1": w((L, 1, FF), 0.02),
        "w2": w((L, FF, E), FF ** -0.5),
        "b2": w((L, 1, E), 0.02),
        "g2": jnp.ones((L, 1, E), jnp.float32),
        "be2": jnp.zeros((L, 1, E), jnp.float32),
        "score_w": w((1, E), 0.2),
        "score_b": w((1, 1), 0.1),
        "value_layers": [],
    }
    last = E * seq
    for i, d in enumerate(net_arch):
        if i == 0:
            # first value layer stored as (S, E, d) == flat (S*E, d) row-major
            params["value_layers"].append(
                (w((seq, E, d), last ** -0.5), w((1, d), 0.02)))
        else:
            params["value_layers"].append(
                (w((last, d), last ** -0.5), w((1, d), 0.02)))
        last = d
    return params


if __name__ == "__main__":
    # Small shapes consistent with the module:
    #   batch=2, seq (= max_position_embedding) = 8, raw feature dim = 4,
    #   feature_dim (hidden) = 32, num_heads = 4, num_layers = 2, net_arch=[32]
    B, S, E, H, L = 2, 8, 32, 4, 2

    key = jax.random.PRNGKey(0)
    kx, kmask, kparam = jax.random.split(key, 3)

    x = jax.random.normal(kx, (B, S, 4), jnp.float32)
    mask = (jax.random.uniform(kmask, (B, S)) > 0.3).astype(jnp.int32)

    params = init_params(kparam, feature_dim=E, num_heads=H, num_layers=L,
                         seq=S, net_arch=(32,))

    fwd = jax.jit(functools.partial(custom_transformer_extractor_forward,
                                    params=params))
    (node_scores, latent_pi_flat), latent_vf = fwd(x, mask)
    jax.block_until_ready((node_scores, latent_pi_flat, latent_vf))

    assert node_scores.shape == (B, S)
    assert latent_pi_flat.shape == (B, S * E)
    assert latent_vf.shape == (B, 32)
    assert bool(jnp.all(jnp.isfinite(node_scores)))
    assert bool(jnp.all(jnp.isfinite(latent_pi_flat)))
    assert bool(jnp.all(jnp.isfinite(latent_vf)))

    print("KERNEL_OK")
</pallas_src>

<mosaic_0001>
module attributes {stable_mosaic.version = 11 : i64} {
  func.func @kernel(%arg0: i32, %arg1: memref<1x8x4xf32, #tpu.memory_space<vmem>>, %arg2: memref<1x1x8xf32, #tpu.memory_space<vmem>>, %arg3: memref<4x32xf32, #tpu.memory_space<vmem>>, %arg4: memref<1x32xf32, #tpu.memory_space<vmem>>, %arg5: memref<2x4x32x8xf32, #tpu.memory_space<vmem>>, %arg6: memref<2x4x1x8xf32, #tpu.memory_space<vmem>>, %arg7: memref<2x4x32x8xf32, #tpu.memory_space<vmem>>, %arg8: memref<2x4x1x8xf32, #tpu.memory_space<vmem>>, %arg9: memref<2x4x32x8xf32, #tpu.memory_space<vmem>>, %arg10: memref<2x4x1x8xf32, #tpu.memory_space<vmem>>, %arg11: memref<2x4x8x32xf32, #tpu.memory_space<vmem>>, %arg12: memref<2x1x32xf32, #tpu.memory_space<vmem>>, %arg13: memref<2x1x32xf32, #tpu.memory_space<vmem>>, %arg14: memref<2x1x32xf32, #tpu.memory_space<vmem>>, %arg15: memref<2x32x128xf32, #tpu.memory_space<vmem>>, %arg16: memref<2x1x128xf32, #tpu.memory_space<vmem>>, %arg17: memref<2x128x32xf32, #tpu.memory_space<vmem>>, %arg18: memref<2x1x32xf32, #tpu.memory_space<vmem>>, %arg19: memref<2x1x32xf32, #tpu.memory_space<vmem>>, %arg20: memref<2x1x32xf32, #tpu.memory_space<vmem>>, %arg21: memref<1x32xf32, #tpu.memory_space<vmem>>, %arg22: memref<1x1xf32, #tpu.memory_space<vmem>>, %arg23: memref<8x32x32xf32, #tpu.memory_space<vmem>>, %arg24: memref<1x32xf32, #tpu.memory_space<vmem>>, %arg25: memref<1x8x32xf32, #tpu.memory_space<vmem>>, %arg26: memref<1x1x8xf32, #tpu.memory_space<vmem>>, %arg27: memref<1x1x32xf32, #tpu.memory_space<vmem>>) attributes {dimension_semantics = [#tpu.dimension_semantics<parallel>], iteration_bounds = array<i64: 2>, scalar_prefetch = 0 : i64, scratch_operands = 0 : i64, tpu.core_type = #tpu.core_type<tc>, window_params = [{transform_indices = @transform_0, window_bounds = array<i64: 1, 8, 4>}, {transform_indices = @transform_1, window_bounds = array<i64: 1, 1, 8>}, {pipeline_mode = #tpu.pipeline_mode<synchronous>, transform_indices = @transform_2, window_bounds = array<i64: 4, 32>}, {pipeline_mode = #tpu.pipeline_mode<synchronous>, transform_indices = @transform_3, window_bounds = array<i64: 1, 32>}, {pipeline_mode = #tpu.pipeline_mode<synchronous>, transform_indices = @transform_4, window_bounds = array<i64: 2, 4, 32, 8>}, {pipeline_mode = #tpu.pipeline_mode<synchronous>, transform_indices = @transform_5, window_bounds = array<i64: 2, 4, 1, 8>}, {pipeline_mode = #tpu.pipeline_mode<synchronous>, transform_indices = @transform_6, window_bounds = array<i64: 2, 4, 32, 8>}, {pipeline_mode = #tpu.pipeline_mode<synchronous>, transform_indices = @transform_7, window_bounds = array<i64: 2, 4, 1, 8>}, {pipeline_mode = #tpu.pipeline_mode<synchronous>, transform_indices = @transform_8, window_bounds = array<i64: 2, 4, 32, 8>}, {pipeline_mode = #tpu.pipeline_mode<synchronous>, transform_indices = @transform_9, window_bounds = array<i64: 2, 4, 1, 8>}, {pipeline_mode = #tpu.pipeline_mode<synchronous>, transform_indices = @transform_10, window_bounds = array<i64: 2, 4, 8, 32>}, {pipeline_mode = #tpu.pipeline_mode<synchronous>, transform_indices = @transform_11, window_bounds = array<i64: 2, 1, 32>}, {pipeline_mode = #tpu.pipeline_mode<synchronous>, transform_indices = @transform_12, window_bounds = array<i64: 2, 1, 32>}, {pipeline_mode = #tpu.pipeline_mode<synchronous>, transform_indices = @transform_13, window_bounds = array<i64: 2, 1, 32>}, {pipeline_mode = #tpu.pipeline_mode<synchronous>, transform_indices = @transform_14, window_bounds = array<i64: 2, 32, 128>}, {pipeline_mode = #tpu.pipeline_mode<synchronous>, transform_indices = @transform_15, window_bounds = array<i64: 2, 1, 128>}, {pipeline_mode = #tpu.pipeline_mode<synchronous>, transform_indices = @transform_16, window_bounds = array<i64: 2, 128, 32>}, {pipeline_mode = #tpu.pipeline_mode<synchronous>, transform_indices = @transform_17, window_bounds = array<i64: 2, 1, 32>}, {pipeline_mode = #tpu.pipeline_mode<synchronous>, transform_indices = @transform_18, window_bounds = array<i64: 2, 1, 32>}, {pipeline_mode = #tpu.pipeline_mode<synchronous>, transform_indices = @transform_19, window_bounds = array<i64: 2, 1, 32>}, {pipeline_mode = #tpu.pipeline_mode<synchronous>, transform_indices = @transform_20, window_bounds = array<i64: 1, 32>}, {pipeline_mode = #tpu.pipeline_mode<synchronous>, transform_indices = @transform_21, window_bounds = array<i64: 1, 1>}, {pipeline_mode = #tpu.pipeline_mode<synchronous>, transform_indices = @transform_22, window_bounds = array<i64: 8, 32, 32>}, {pipeline_mode = #tpu.pipeline_mode<synchronous>, transform_indices = @transform_23, window_bounds = array<i64: 1, 32>}, {transform_indices = @transform_24, window_bounds = array<i64: 1, 8, 32>}, {transform_indices = @transform_25, window_bounds = array<i64: 1, 1, 8>}, {transform_indices = @transform_26, window_bounds = array<i64: 1, 1, 32>}]} {
    %c0 = arith.constant 0 : index
    %c0_0 = arith.constant 0 : index
    %c0_1 = arith.constant 0 : index
    %0 = vector.load %arg1[%c0, %c0_0, %c0_1] : memref<1x8x4xf32, #tpu.memory_space<vmem>>, vector<1x8x4xf32>
    %1 = vector.shape_cast %0 : vector<1x8x4xf32> to vector<8x4xf32>
    %c0_2 = arith.constant 0 : index
    %c0_3 = arith.constant 0 : index
    %c0_4 = arith.constant 0 : index
    %2 = vector.load %arg2[%c0_2, %c0_3, %c0_4] : memref<1x1x8xf32, #tpu.memory_space<vmem>>, vector<1x1x8xf32>
    %3 = vector.shape_cast %2 : vector<1x1x8xf32> to vector<1x8xf32>
    %4 = vector.shape_cast %3 : vector<1x8xf32> to vector<1x8xf32>
    %5 = vector.broadcast %4 : vector<1x8xf32> to vector<8x8xf32>
    %c0_5 = arith.constant 0 : index
    %c0_6 = arith.constant 0 : index
    %6 = vector.load %arg3[%c0_5, %c0_6] : memref<4x32xf32, #tpu.memory_space<vmem>>, vector<4x32xf32>
    %cst = arith.constant dense<0.000000e+00> : vector<8x32xf32>
    %7 = tpu.matmul %1, %6, %cst {dimension_numbers = #tpu.dot_dimension_numbers<[1], [0], [0], [1], [0, 0, 1, 1], [], []>} : vector<8x4xf32>, vector<4x32xf32>, vector<8x32xf32> -> vector<8x32xf32>
    %c0_7 = arith.constant 0 : index
    %c0_8 = arith.constant 0 : index
    %8 = vector.load %arg4[%c0_7, %c0_8] : memref<1x32xf32, #tpu.memory_space<vmem>>, vector<1x32xf32>
    %9 = vector.broadcast %8 : vector<1x32xf32> to vector<8x32xf32>
    %10 = arith.addf %7, %9 : vector<8x32xf32>
    %c0_9 = arith.constant 0 : index
    %c0_10 = arith.constant 0 : index
    %c0_11 = arith.constant 0 : index
    %c0_12 = arith.constant 0 : index
    %11 = vector.load %arg5[%c0_9, %c0_10, %c0_11, %c0_12] : memref<2x4x32x8xf32, #tpu.memory_space<vmem>>, vector<1x1x32x8xf32>
    %12 = vector.shape_cast %11 : vector<1x1x32x8xf32> to vector<32x8xf32>
    %cst_13 = arith.constant dense<0.000000e+00> : vector<8x8xf32>
    %13 = tpu.matmul %10, %12, %cst_13 {dimension_numbers = #tpu.dot_dimension_numbers<[1], [0], [0], [1], [0, 0, 1, 1], [], []>} : vector<8x32xf32>, vector<32x8xf32>, vector<8x8xf32> -> vector<8x8xf32>
    %c0_14 = arith.constant 0 : index
    %c0_15 = arith.constant 0 : index
    %c0_16 = arith.constant 0 : index
    %c0_17 = arith.constant 0 : index
    %14 = vector.load %arg6[%c0_14, %c0_15, %c0_16, %c0_17] : memref<2x4x1x8xf32, #tpu.memory_space<vmem>>, vector<1x1x1x8xf32>
    %15 = vector.shape_cast %14 : vector<1x1x1x8xf32> to vector<1x8xf32>
    %16 = vector.broadcast %15 : vector<1x8xf32> to vector<8x8xf32>
    %17 = arith.addf %13, %16 : vector<8x8xf32>
    %c0_18 = arith.constant 0 : index
    %c0_19 = arith.constant 0 : index
    %c0_20 = arith.constant 0 : index
    %c0_21 = arith.constant 0 : index
    %18 = vector.load %arg7[%c0_18, %c0_19, %c0_20, %c0_21] : memref<2x4x32x8xf32, #tpu.memory_space<vmem>>, vector<1x1x32x8xf32>
    %19 = vector.shape_cast %18 : vector<1x1x32x8xf32> to vector<32x8xf32>
    %cst_22 = arith.constant dense<0.000000e+00> : vector<8x8xf32>
    %20 = tpu.matmul %10, %19, %cst_22 {dimension_numbers = #tpu.dot_dimension_numbers<[1], [0], [0], [1], [0, 0, 1, 1], [], []>} : vector<8x32xf32>, vector<32x8xf32>, vector<8x8xf32> -> vector<8x8xf32>
    %c0_23 = arith.constant 0 : index
    %c0_24 = arith.constant 0 : index
    %c0_25 = arith.constant 0 : index
    %c0_26 = arith.constant 0 : index
    %21 = vector.load %arg8[%c0_23, %c0_24, %c0_25, %c0_26] : memref<2x4x1x8xf32, #tpu.memory_space<vmem>>, vector<1x1x1x8xf32>
    %22 = vector.shape_cast %21 : vector<1x1x1x8xf32> to vector<1x8xf32>
    %23 = vector.broadcast %22 : vector<1x8xf32> to vector<8x8xf32>
    %24 = arith.addf %20, %23 : vector<8x8xf32>
    %c0_27 = arith.constant 0 : index
    %c0_28 = arith.constant 0 : index
    %c0_29 = arith.constant 0 : index
    %c0_30 = arith.constant 0 : index
    %25 = vector.load %arg9[%c0_27, %c0_28, %c0_29, %c0_30] : memref<2x4x32x8xf32, #tpu.memory_space<vmem>>, vector<1x1x32x8xf32>
    %26 = vector.shape_cast %25 : vector<1x1x32x8xf32> to vector<32x8xf32>
    %cst_31 = arith.constant dense<0.000000e+00> : vector<8x8xf32>
    %27 = tpu.matmul %10, %26, %cst_31 {dimension_numbers = #tpu.dot_dimension_numbers<[1], [0], [0], [1], [0, 0, 1, 1], [], []>} : vector<8x32xf32>, vector<32x8xf32>, vector<8x8xf32> -> vector<8x8xf32>
    %c0_32 = arith.constant 0 : index
    %c0_33 = arith.constant 0 : index
    %c0_34 = arith.constant 0 : index
    %c0_35 = arith.constant 0 : index
    %28 = vector.load %arg10[%c0_32, %c0_33, %c0_34, %c0_35] : memref<2x4x1x8xf32, #tpu.memory_space<vmem>>, vector<1x1x1x8xf32>
    %29 = vector.shape_cast %28 : vector<1x1x1x8xf32> to vector<1x8xf32>
    %30 = vector.broadcast %29 : vector<1x8xf32> to vector<8x8xf32>
    %31 = arith.addf %27, %30 : vector<8x8xf32>
    %cst_36 = arith.constant dense<0.000000e+00> : vector<8x8xf32>
    %32 = tpu.matmul %17, %24, %cst_36 {dimension_numbers = #tpu.dot_dimension_numbers<[1], [1], [0], [0], [0, 0, 1, 0], [], []>} : vector<8x8xf32>, vector<8x8xf32>, vector<8x8xf32> -> vector<8x8xf32>
    %cst_37 = arith.constant 0.353553385 : f32
    %33 = vector.broadcast %cst_37 : f32 to vector<8x8xf32>
    %34 = arith.mulf %32, %33 : vector<8x8xf32>
    %35 = arith.addf %34, %5 : vector<8x8xf32>
    %cst_38 = arith.constant dense<0xFF800000> : vector<8xf32>
    %36 = vector.multi_reduction <maximumf>, %35, %cst_38 [1] : vector<8x8xf32> to vector<8xf32>
    %37 = vector.shape_cast %36 : vector<8xf32> to vector<8x1xf32>
    %38 = vector.broadcast %37 : vector<8x1xf32> to vector<8x8xf32>
    %39 = arith.subf %35, %38 : vector<8x8xf32>
    %40 = math.exp %39 : vector<8x8xf32>
    %cst_39 = arith.constant dense<0.000000e+00> : vector<8xf32>
    %41 = vector.multi_reduction <add>, %40, %cst_39 [1] : vector<8x8xf32> to vector<8xf32>
    %42 = vector.shape_cast %41 : vector<8xf32> to vector<8x1xf32>
    %43 = vector.broadcast %42 : vector<8x1xf32> to vector<8x8xf32>
    %44 = arith.divf %40, %43 : vector<8x8xf32>
    %cst_40 = arith.constant dense<0.000000e+00> : vector<8x8xf32>
    %45 = tpu.matmul %44, %31, %cst_40 {dimension_numbers = #tpu.dot_dimension_numbers<[1], [0], [0], [1], [0, 0, 1, 1], [], []>} : vector<8x8xf32>, vector<8x8xf32>, vector<8x8xf32> -> vector<8x8xf32>
    %c0_41 = arith.constant 0 : index
    %c0_42 = arith.constant 0 : index
    %c0_43 = arith.constant 0 : index
    %c0_44 = arith.constant 0 : index
    %46 = vector.load %arg11[%c0_41, %c0_42, %c0_43, %c0_44] : memref<2x4x8x32xf32, #tpu.memory_space<vmem>>, vector<1x1x8x32xf32>
    %47 = vector.shape_cast %46 : vector<1x1x8x32xf32> to vector<8x32xf32>
    %cst_45 = arith.constant dense<0.000000e+00> : vector<8x32xf32>
    %48 = tpu.matmul %45, %47, %cst_45 {dimension_numbers = #tpu.dot_dimension_numbers<[1], [0], [0], [1], [0, 0, 1, 1], [], []>} : vector<8x8xf32>, vector<8x32xf32>, vector<8x32xf32> -> vector<8x32xf32>
    %c0_46 = arith.constant 0 : index
    %c1 = arith.constant 1 : index
    %c0_47 = arith.constant 0 : index
    %c0_48 = arith.constant 0 : index
    %49 = vector.load %arg5[%c0_46, %c1, %c0_47, %c0_48] : memref<2x4x32x8xf32, #tpu.memory_space<vmem>>, vector<1x1x32x8xf32>
    %50 = vector.shape_cast %49 : vector<1x1x32x8xf32> to vector<32x8xf32>
    %cst_49 = arith.constant dense<0.000000e+00> : vector<8x8xf32>
    %51 = tpu.matmul %10, %50, %cst_49 {dimension_numbers = #tpu.dot_dimension_numbers<[1], [0], [0], [1], [0, 0, 1, 1], [], []>} : vector<8x32xf32>, vector<32x8xf32>, vector<8x8xf32> -> vector<8x8xf32>
    %c0_50 = arith.constant 0 : index
    %c1_51 = arith.constant 1 : index
    %c0_52 = arith.constant 0 : index
    %c0_53 = arith.constant 0 : index
    %52 = vector.load %arg6[%c0_50, %c1_51, %c0_52, %c0_53] : memref<2x4x1x8xf32, #tpu.memory_space<vmem>>, vector<1x1x1x8xf32>
    %53 = vector.shape_cast %52 : vector<1x1x1x8xf32> to vector<1x8xf32>
    %54 = vector.broadcast %53 : vector<1x8xf32> to vector<8x8xf32>
    %55 = arith.addf %51, %54 : vector<8x8xf32>
    %c0_54 = arith.constant 0 : index
    %c1_55 = arith.constant 1 : index
    %c0_56 = arith.constant 0 : index
    %c0_57 = arith.constant 0 : index
    %56 = vector.load %arg7[%c0_54, %c1_55, %c0_56, %c0_57] : memref<2x4x32x8xf32, #tpu.memory_space<vmem>>, vector<1x1x32x8xf32>
    %57 = vector.shape_cast %56 : vector<1x1x32x8xf32> to vector<32x8xf32>
    %cst_58 = arith.constant dense<0.000000e+00> : vector<8x8xf32>
    %58 = tpu.matmul %10, %57, %cst_58 {dimension_numbers = #tpu.dot_dimension_numbers<[1], [0], [0], [1], [0, 0, 1, 1], [], []>} : vector<8x32xf32>, vector<32x8xf32>, vector<8x8xf32> -> vector<8x8xf32>
    %c0_59 = arith.constant 0 : index
    %c1_60 = arith.constant 1 : index
    %c0_61 = arith.constant 0 : index
    %c0_62 = arith.constant 0 : index
    %59 = vector.load %arg8[%c0_59, %c1_60, %c0_61, %c0_62] : memref<2x4x1x8xf32, #tpu.memory_space<vmem>>, vector<1x1x1x8xf32>
    %60 = vector.shape_cast %59 : vector<1x1x1x8xf32> to vector<1x8xf32>
    %61 = vector.broadcast %60 : vector<1x8xf32> to vector<8x8xf32>
    %62 = arith.addf %58, %61 : vector<8x8xf32>
    %c0_63 = arith.constant 0 : index
    %c1_64 = arith.constant 1 : index
    %c0_65 = arith.constant 0 : index
    %c0_66 = arith.constant 0 : index
    %63 = vector.load %arg9[%c0_63, %c1_64, %c0_65, %c0_66] : memref<2x4x32x8xf32, #tpu.memory_space<vmem>>, vector<1x1x32x8xf32>
    %64 = vector.shape_cast %63 : vector<1x1x32x8xf32> to vector<32x8xf32>
    %cst_67 = arith.constant dense<0.000000e+00> : vector<8x8xf32>
    %65 = tpu.matmul %10, %64, %cst_67 {dimension_numbers = #tpu.dot_dimension_numbers<[1], [0], [0], [1], [0, 0, 1, 1], [], []>} : vector<8x32xf32>, vector<32x8xf32>, vector<8x8xf32> -> vector<8x8xf32>
    %c0_68 = arith.constant 0 : index
    %c1_69 = arith.constant 1 : index
    %c0_70 = arith.constant 0 : index
    %c0_71 = arith.constant 0 : index
    %66 = vector.load %arg10[%c0_68, %c1_69, %c0_70, %c0_71] : memref<2x4x1x8xf32, #tpu.memory_space<vmem>>, vector<1x1x1x8xf32>
    %67 = vector.shape_cast %66 : vector<1x1x1x8xf32> to vector<1x8xf32>
    %68 = vector.broadcast %67 : vector<1x8xf32> to vector<8x8xf32>
    %69 = arith.addf %65, %68 : vector<8x8xf32>
    %cst_72 = arith.constant dense<0.000000e+00> : vector<8x8xf32>
    %70 = tpu.matmul %55, %62, %cst_72 {dimension_numbers = #tpu.dot_dimension_numbers<[1], [1], [0], [0], [0, 0, 1, 0], [], []>} : vector<8x8xf32>, vector<8x8xf32>, vector<8x8xf32> -> vector<8x8xf32>
    %cst_73 = arith.constant 0.353553385 : f32
    %71 = vector.broadcast %cst_73 : f32 to vector<8x8xf32>
    %72 = arith.mulf %70, %71 : vector<8x8xf32>
    %73 = arith.addf %72, %5 : vector<8x8xf32>
    %cst_74 = arith.constant dense<0xFF800000> : vector<8xf32>
    %74 = vector.multi_reduction <maximumf>, %73, %cst_74 [1] : vector<8x8xf32> to vector<8xf32>
    %75 = vector.shape_cast %74 : vector<8xf32> to vector<8x1xf32>
    %76 = vector.broadcast %75 : vector<8x1xf32> to vector<8x8xf32>
    %77 = arith.subf %73, %76 : vector<8x8xf32>
    %78 = math.exp %77 : vector<8x8xf32>
    %cst_75 = arith.constant dense<0.000000e+00> : vector<8xf32>
    %79 = vector.multi_reduction <add>, %78, %cst_75 [1] : vector<8x8xf32> to vector<8xf32>
    %80 = vector.shape_cast %79 : vector<8xf32> to vector<8x1xf32>
    %81 = vector.broadcast %80 : vector<8x1xf32> to vector<8x8xf32>
    %82 = arith.divf %78, %81 : vector<8x8xf32>
    %cst_76 = arith.constant dense<0.000000e+00> : vector<8x8xf32>
    %83 = tpu.matmul %82, %69, %cst_76 {dimension_numbers = #tpu.dot_dimension_numbers<[1], [0], [0], [1], [0, 0, 1, 1], [], []>} : vector<8x8xf32>, vector<8x8xf32>, vector<8x8xf32> -> vector<8x8xf32>
    %c0_77 = arith.constant 0 : index
    %c1_78 = arith.constant 1 : index
    %c0_79 = arith.constant 0 : index
    %c0_80 = arith.constant 0 : index
    %84 = vector.load %arg11[%c0_77, %c1_78, %c0_79, %c0_80] : memref<2x4x8x32xf32, #tpu.memory_space<vmem>>, vector<1x1x8x32xf32>
    %85 = vector.shape_cast %84 : vector<1x1x8x32xf32> to vector<8x32xf32>
    %cst_81 = arith.constant dense<0.000000e+00> : vector<8x32xf32>
    %86 = tpu.matmul %83, %85, %cst_81 {dimension_numbers = #tpu.dot_dimension_numbers<[1], [0], [0], [1], [0, 0, 1, 1], [], []>} : vector<8x8xf32>, vector<8x32xf32>, vector<8x32xf32> -> vector<8x32xf32>
    %87 = arith.addf %48, %86 : vector<8x32xf32>
    %c0_82 = arith.constant 0 : index
    %c2 = arith.constant 2 : index
    %c0_83 = arith.constant 0 : index
    %c0_84 = arith.constant 0 : index
    %88 = vector.load %arg5[%c0_82, %c2, %c0_83, %c0_84] : memref<2x4x32x8xf32, #tpu.memory_space<vmem>>, vector<1x1x32x8xf32>
    %89 = vector.shape_cast %88 : vector<1x1x32x8xf32> to vector<32x8xf32>
    %cst_85 = arith.constant dense<0.000000e+00> : vector<8x8xf32>
    %90 = tpu.matmul %10, %89, %cst_85 {dimension_numbers = #tpu.dot_dimension_numbers<[1], [0], [0], [1], [0, 0, 1, 1], [], []>} : vector<8x32xf32>, vector<32x8xf32>, vector<8x8xf32> -> vector<8x8xf32>
    %c0_86 = arith.constant 0 : index
    %c2_87 = arith.constant 2 : index
    %c0_88 = arith.constant 0 : index
    %c0_89 = arith.constant 0 : index
    %91 = vector.load %arg6[%c0_86, %c2_87, %c0_88, %c0_89] : memref<2x4x1x8xf32, #tpu.memory_space<vmem>>, vector<1x1x1x8xf32>
    %92 = vector.shape_cast %91 : vector<1x1x1x8xf32> to vector<1x8xf32>
    %93 = vector.broadcast %92 : vector<1x8xf32> to vector<8x8xf32>
    %94 = arith.addf %90, %93 : vector<8x8xf32>
    %c0_90 = arith.constant 0 : index
    %c2_91 = arith.constant 2 : index
    %c0_92 = arith.constant 0 : index
    %c0_93 = arith.constant 0 : index
    %95 = vector.load %arg7[%c0_90, %c2_91, %c0_92, %c0_93] : memref<2x4x32x8xf32, #tpu.memory_space<vmem>>, vector<1x1x32x8xf32>
    %96 = vector.shape_cast %95 : vector<1x1x32x8xf32> to vector<32x8xf32>
    %cst_94 = arith.constant dense<0.000000e+00> : vector<8x8xf32>
    %97 = tpu.matmul %10, %96, %cst_94 {dimension_numbers = #tpu.dot_dimension_numbers<[1], [0], [0], [1], [0, 0, 1, 1], [], []>} : vector<8x32xf32>, vector<32x8xf32>, vector<8x8xf32> -> vector<8x8xf32>
    %c0_95 = arith.constant 0 : index
    %c2_96 = arith.constant 2 : index
    %c0_97 = arith.constant 0 : index
    %c0_98 = arith.constant 0 : index
    %98 = vector.load %arg8[%c0_95, %c2_96, %c0_97, %c0_98] : memref<2x4x1x8xf32, #tpu.memory_space<vmem>>, vector<1x1x1x8xf32>
    %99 = vector.shape_cast %98 : vector<1x1x1x8xf32> to vector<1x8xf32>
    %100 = vector.broadcast %99 : vector<1x8xf32> to vector<8x8xf32>
    %101 = arith.addf %97, %100 : vector<8x8xf32>
    %c0_99 = arith.constant 0 : index
    %c2_100 = arith.constant 2 : index
    %c0_101 = arith.constant 0 : index
    %c0_102 = arith.constant 0 : index
    %102 = vector.load %arg9[%c0_99, %c2_100, %c0_101, %c0_102] : memref<2x4x32x8xf32, #tpu.memory_space<vmem>>, vector<1x1x32x8xf32>
    %103 = vector.shape_cast %102 : vector<1x1x32x8xf32> to vector<32x8xf32>
    %cst_103 = arith.constant dense<0.000000e+00> : vector<8x8xf32>
    %104 = tpu.matmul %10, %103, %cst_103 {dimension_numbers = #tpu.dot_dimension_numbers<[1], [0], [0], [1], [0, 0, 1, 1], [], []>} : vector<8x32xf32>, vector<32x8xf32>, vector<8x8xf32> -> vector<8x8xf32>
    %c0_104 = arith.constant 0 : index
    %c2_105 = arith.constant 2 : index
    %c0_106 = arith.constant 0 : index
    %c0_107 = arith.constant 0 : index
    %105 = vector.load %arg10[%c0_104, %c2_105, %c0_106, %c0_107] : memref<2x4x1x8xf32, #tpu.memory_space<vmem>>, vector<1x1x1x8xf32>
    %106 = vector.shape_cast %105 : vector<1x1x1x8xf32> to vector<1x8xf32>
    %107 = vector.broadcast %106 : vector<1x8xf32> to vector<8x8xf32>
    %108 = arith.addf %104, %107 : vector<8x8xf32>
    %cst_108 = arith.constant dense<0.000000e+00> : vector<8x8xf32>
    %109 = tpu.matmul %94, %101, %cst_108 {dimension_numbers = #tpu.dot_dimension_numbers<[1], [1], [0], [0], [0, 0, 1, 0], [], []>} : vector<8x8xf32>, vector<8x8xf32>, vector<8x8xf32> -> vector<8x8xf32>
    %cst_109 = arith.constant 0.353553385 : f32
    %110 = vector.broadcast %cst_109 : f32 to vector<8x8xf32>
    %111 = arith.mulf %109, %110 : vector<8x8xf32>
    %112 = arith.addf %111, %5 : vector<8x8xf32>
    %cst_110 = arith.constant dense<0xFF800000> : vector<8xf32>
    %113 = vector.multi_reduction <maximumf>, %112, %cst_110 [1] : vector<8x8xf32> to vector<8xf32>
    %114 = vector.shape_cast %113 : vector<8xf32> to vector<8x1xf32>
    %115 = vector.broadcast %114 : vector<8x1xf32> to vector<8x8xf32>
    %116 = arith.subf %112, %115 : vector<8x8xf32>
    %117 = math.exp %116 : vector<8x8xf32>
    %cst_111 = arith.constant dense<0.000000e+00> : vector<8xf32>
    %118 = vector.multi_reduction <add>, %117, %cst_111 [1] : vector<8x8xf32> to vector<8xf32>
    %119 = vector.shape_cast %118 : vector<8xf32> to vector<8x1xf32>
    %120 = vector.broadcast %119 : vector<8x1xf32> to vector<8x8xf32>
    %121 = arith.divf %117, %120 : vector<8x8xf32>
    %cst_112 = arith.constant dense<0.000000e+00> : vector<8x8xf32>
    %122 = tpu.matmul %121, %108, %cst_112 {dimension_numbers = #tpu.dot_dimension_numbers<[1], [0], [0], [1], [0, 0, 1, 1], [], []>} : vector<8x8xf32>, vector<8x8xf32>, vector<8x8xf32> -> vector<8x8xf32>
    %c0_113 = arith.constant 0 : index
    %c2_114 = arith.constant 2 : index
    %c0_115 = arith.constant 0 : index
    %c0_116 = arith.constant 0 : index
    %123 = vector.load %arg11[%c0_113, %c2_114, %c0_115, %c0_116] : memref<2x4x8x32xf32, #tpu.memory_space<vmem>>, vector<1x1x8x32xf32>
    %124 = vector.shape_cast %123 : vector<1x1x8x32xf32> to vector<8x32xf32>
    %cst_117 = arith.constant dense<0.000000e+00> : vector<8x32xf32>
    %125 = tpu.matmul %122, %124, %cst_117 {dimension_numbers = #tpu.dot_dimension_numbers<[1], [0], [0], [1], [0, 0, 1, 1], [], []>} : vector<8x8xf32>, vector<8x32xf32>, vector<8x32xf32> -> vector<8x32xf32>
    %126 = arith.addf %87, %125 : vector<8x32xf32>
    %c0_118 = arith.constant 0 : index
    %c3 = arith.constant 3 : index
    %c0_119 = arith.constant 0 : index
    %c0_120 = arith.constant 0 : index
    %127 = vector.load %arg5[%c0_118, %c3, %c0_119, %c0_120] : memref<2x4x32x8xf32, #tpu.memory_space<vmem>>, vector<1x1x32x8xf32>
    %128 = vector.shape_cast %127 : vector<1x1x32x8xf32> to vector<32x8xf32>
    %cst_121 = arith.constant dense<0.000000e+00> : vector<8x8xf32>
    %129 = tpu.matmul %10, %128, %cst_121 {dimension_numbers = #tpu.dot_dimension_numbers<[1], [0], [0], [1], [0, 0, 1, 1], [], []>} : vector<8x32xf32>, vector<32x8xf32>, vector<8x8xf32> -> vector<8x8xf32>
    %c0_122 = arith.constant 0 : index
    %c3_123 = arith.constant 3 : index
    %c0_124 = arith.constant 0 : index
    %c0_125 = arith.constant 0 : index
    %130 = vector.load %arg6[%c0_122, %c3_123, %c0_124, %c0_125] : memref<2x4x1x8xf32, #tpu.memory_space<vmem>>, vector<1x1x1x8xf32>
    %131 = vector.shape_cast %130 : vector<1x1x1x8xf32> to vector<1x8xf32>
    %132 = vector.broadcast %131 : vector<1x8xf32> to vector<8x8xf32>
    %133 = arith.addf %129, %132 : vector<8x8xf32>
    %c0_126 = arith.constant 0 : index
    %c3_127 = arith.constant 3 : index
    %c0_128 = arith.constant 0 : index
    %c0_129 = arith.constant 0 : index
    %134 = vector.load %arg7[%c0_126, %c3_127, %c0_128, %c0_129] : memref<2x4x32x8xf32, #tpu.memory_space<vmem>>, vector<1x1x32x8xf32>
    %135 = vector.shape_cast %134 : vector<1x1x32x8xf32> to vector<32x8xf32>
    %cst_130 = arith.constant dense<0.000000e+00> : vector<8x8xf32>
    %136 = tpu.matmul %10, %135, %cst_130 {dimension_numbers = #tpu.dot_dimension_numbers<[1], [0], [0], [1], [0, 0, 1, 1], [], []>} : vector<8x32xf32>, vector<32x8xf32>, vector<8x8xf32> -> vector<8x8xf32>
    %c0_131 = arith.constant 0 : index
    %c3_132 = arith.constant 3 : index
    %c0_133 = arith.constant 0 : index
    %c0_134 = arith.constant 0 : index
    %137 = vector.load %arg8[%c0_131, %c3_132, %c0_133, %c0_134] : memref<2x4x1x8xf32, #tpu.memory_space<vmem>>, vector<1x1x1x8xf32>
    %138 = vector.shape_cast %137 : vector<1x1x1x8xf32> to vector<1x8xf32>
    %139 = vector.broadcast %138 : vector<1x8xf32> to vector<8x8xf32>
    %140 = arith.addf %136, %139 : vector<8x8xf32>
    %c0_135 = arith.constant 0 : index
    %c3_136 = arith.constant 3 : index
    %c0_137 = arith.constant 0 : index
    %c0_138 = arith.constant 0 : index
    %141 = vector.load %arg9[%c0_135, %c3_136, %c0_137, %c0_138] : memref<2x4x32x8xf32, #tpu.memory_space<vmem>>, vector<1x1x32x8xf32>
    %142 = vector.shape_cast %141 : vector<1x1x32x8xf32> to vector<32x8xf32>
    %cst_139 = arith.constant dense<0.000000e+00> : vector<8x8xf32>
    %143 = tpu.matmul %10, %142, %cst_139 {dimension_numbers = #tpu.dot_dimension_numbers<[1], [0], [0], [1], [0, 0, 1, 1], [], []>} : vector<8x32xf32>, vector<32x8xf32>, vector<8x8xf32> -> vector<8x8xf32>
    %c0_140 = arith.constant 0 : index
    %c3_141 = arith.constant 3 : index
    %c0_142 = arith.constant 0 : index
    %c0_143 = arith.constant 0 : index
    %144 = vector.load %arg10[%c0_140, %c3_141, %c0_142, %c0_143] : memref<2x4x1x8xf32, #tpu.memory_space<vmem>>, vector<1x1x1x8xf32>
    %145 = vector.shape_cast %144 : vector<1x1x1x8xf32> to vector<1x8xf32>
    %146 = vector.broadcast %145 : vector<1x8xf32> to vector<8x8xf32>
    %147 = arith.addf %143, %146 : vector<8x8xf32>
    %cst_144 = arith.constant dense<0.000000e+00> : vector<8x8xf32>
    %148 = tpu.matmul %133, %140, %cst_144 {dimension_numbers = #tpu.dot_dimension_numbers<[1], [1], [0], [0], [0, 0, 1, 0], [], []>} : vector<8x8xf32>, vector<8x8xf32>, vector<8x8xf32> -> vector<8x8xf32>
    %cst_145 = arith.constant 0.353553385 : f32
    %149 = vector.broadcast %cst_145 : f32 to vector<8x8xf32>
    %150 = arith.mulf %148, %149 : vector<8x8xf32>
    %151 = arith.addf %150, %5 : vector<8x8xf32>
    %cst_146 = arith.constant dense<0xFF800000> : vector<8xf32>
    %152 = vector.multi_reduction <maximumf>, %151, %cst_146 [1] : vector<8x8xf32> to vector<8xf32>
    %153 = vector.shape_cast %152 : vector<8xf32> to vector<8x1xf32>
    %154 = vector.broadcast %153 : vector<8x1xf32> to vector<8x8xf32>
    %155 = arith.subf %151, %154 : vector<8x8xf32>
    %156 = math.exp %155 : vector<8x8xf32>
    %cst_147 = arith.constant dense<0.000000e+00> : vector<8xf32>
    %157 = vector.multi_reduction <add>, %156, %cst_147 [1] : vector<8x8xf32> to vector<8xf32>
    %158 = vector.shape_cast %157 : vector<8xf32> to vector<8x1xf32>
    %159 = vector.broadcast %158 : vector<8x1xf32> to vector<8x8xf32>
    %160 = arith.divf %156, %159 : vector<8x8xf32>
    %cst_148 = arith.constant dense<0.000000e+00> : vector<8x8xf32>
    %161 = tpu.matmul %160, %147, %cst_148 {dimension_numbers = #tpu.dot_dimension_numbers<[1], [0], [0], [1], [0, 0, 1, 1], [], []>} : vector<8x8xf32>, vector<8x8xf32>, vector<8x8xf32> -> vector<8x8xf32>
    %c0_149 = arith.constant 0 : index
    %c3_150 = arith.constant 3 : index
    %c0_151 = arith.constant 0 : index
    %c0_152 = arith.constant 0 : index
    %162 = vector.load %arg11[%c0_149, %c3_150, %c0_151, %c0_152] : memref<2x4x8x32xf32, #tpu.memory_space<vmem>>, vector<1x1x8x32xf32>
    %163 = vector.shape_cast %162 : vector<1x1x8x32xf32> to vector<8x32xf32>
    %cst_153 = arith.constant dense<0.000000e+00> : vector<8x32xf32>
    %164 = tpu.matmul %161, %163, %cst_153 {dimension_numbers = #tpu.dot_dimension_numbers<[1], [0], [0], [1], [0, 0, 1, 1], [], []>} : vector<8x8xf32>, vector<8x32xf32>, vector<8x32xf32> -> vector<8x32xf32>
    %165 = arith.addf %126, %164 : vector<8x32xf32>
    %c0_154 = arith.constant 0 : index
    %c0_155 = arith.constant 0 : index
    %c0_156 = arith.constant 0 : index
    %166 = vector.load %arg12[%c0_154, %c0_155, %c0_156] : memref<2x1x32xf32, #tpu.memory_space<vmem>>, vector<1x1x32xf32>
    %167 = vector.shape_cast %166 : vector<1x1x32xf32> to vector<1x32xf32>
    %168 = vector.broadcast %167 : vector<1x32xf32> to vector<8x32xf32>
    %169 = arith.addf %165, %168 : vector<8x32xf32>
    %170 = arith.addf %10, %169 : vector<8x32xf32>
    %cst_157 = arith.constant dense<0.000000e+00> : vector<8xf32>
    %171 = vector.multi_reduction <add>, %170, %cst_157 [1] : vector<8x32xf32> to vector<8xf32>
    %172 = vector.shape_cast %171 : vector<8xf32> to vector<8x1xf32>
    %cst_158 = arith.constant 3.200000e+01 : f32
    %173 = vector.broadcast %cst_158 : f32 to vector<8x1xf32>
    %174 = arith.divf %172, %173 : vector<8x1xf32>
    %175 = vector.broadcast %174 : vector<8x1xf32> to vector<8x32xf32>
    %176 = arith.subf %170, %175 : vector<8x32xf32>
    %177 = arith.mulf %176, %176 : vector<8x32xf32>
    %cst_159 = arith.constant dense<0.000000e+00> : vector<8xf32>
    %178 = vector.multi_reduction <add>, %177, %cst_159 [1] : vector<8x32xf32> to vector<8xf32>
    %179 = vector.shape_cast %178 : vector<8xf32> to vector<8x1xf32>
    %cst_160 = arith.constant 3.200000e+01 : f32
    %180 = vector.broadcast %cst_160 : f32 to vector<8x1xf32>
    %181 = arith.divf %179, %180 : vector<8x1xf32>
    %182 = vector.broadcast %174 : vector<8x1xf32> to vector<8x32xf32>
    %183 = arith.subf %170, %182 : vector<8x32xf32>
    %cst_161 = arith.constant 9.99999974E-6 : f32
    %184 = vector.broadcast %cst_161 : f32 to vector<8x1xf32>
    %185 = arith.addf %181, %184 : vector<8x1xf32>
    %186 = math.rsqrt %185 : vector<8x1xf32>
    %187 = vector.broadcast %186 : vector<8x1xf32> to vector<8x32xf32>
    %188 = arith.mulf %183, %187 : vector<8x32xf32>
    %c0_162 = arith.constant 0 : index
    %c0_163 = arith.constant 0 : index
    %c0_164 = arith.constant 0 : index
    %189 = vector.load %arg13[%c0_162, %c0_163, %c0_164] : memref<2x1x32xf32, #tpu.memory_space<vmem>>, vector<1x1x32xf32>
    %190 = vector.shape_cast %189 : vector<1x1x32xf32> to vector<1x32xf32>
    %191 = vector.broadcast %190 : vector<1x32xf32> to vector<8x32xf32>
    %192 = arith.mulf %188, %191 : vector<8x32xf32>
    %c0_165 = arith.constant 0 : index
    %c0_166 = arith.constant 0 : index
    %c0_167 = arith.constant 0 : index
    %193 = vector.load %arg14[%c0_165, %c0_166, %c0_167] : memref<2x1x32xf32, #tpu.memory_space<vmem>>, vector<1x1x32xf32>
    %194 = vector.shape_cast %193 : vector<1x1x32xf32> to vector<1x32xf32>
    %195 = vector.broadcast %194 : vector<1x32xf32> to vector<8x32xf32>
    %196 = arith.addf %192, %195 : vector<8x32xf32>
    %c0_168 = arith.constant 0 : index
    %c0_169 = arith.constant 0 : index
    %c0_170 = arith.constant 0 : index
    %197 = vector.load %arg15[%c0_168, %c0_169, %c0_170] : memref<2x32x128xf32, #tpu.memory_space<vmem>>, vector<1x32x128xf32>
    %198 = vector.shape_cast %197 : vector<1x32x128xf32> to vector<32x128xf32>
    %cst_171 = arith.constant dense<0.000000e+00> : vector<8x128xf32>
    %199 = tpu.matmul %196, %198, %cst_171 {dimension_numbers = #tpu.dot_dimension_numbers<[1], [0], [0], [1], [0, 0, 1, 1], [], []>} : vector<8x32xf32>, vector<32x128xf32>, vector<8x128xf32> -> vector<8x128xf32>
    %c0_172 = arith.constant 0 : index
    %c0_173 = arith.constant 0 : index
    %c0_174 = arith.constant 0 : index
    %200 = vector.load %arg16[%c0_172, %c0_173, %c0_174] : memref<2x1x128xf32, #tpu.memory_space<vmem>>, vector<1x1x128xf32>
    %201 = vector.shape_cast %200 : vector<1x1x128xf32> to vector<1x128xf32>
    %202 = vector.broadcast %201 : vector<1x128xf32> to vector<8x128xf32>
    %203 = arith.addf %199, %202 : vector<8x128xf32>
    %cst_175 = arith.constant 0.000000e+00 : f32
    %204 = vector.broadcast %cst_175 : f32 to vector<8x128xf32>
    %205 = arith.maximumf %203, %204 : vector<8x128xf32>
    %c0_176 = arith.constant 0 : index
    %c0_177 = arith.constant 0 : index
    %c0_178 = arith.constant 0 : index
    %206 = vector.load %arg17[%c0_176, %c0_177, %c0_178] : memref<2x128x32xf32, #tpu.memory_space<vmem>>, vector<1x128x32xf32>
    %207 = vector.shape_cast %206 : vector<1x128x32xf32> to vector<128x32xf32>
    %cst_179 = arith.constant dense<0.000000e+00> : vector<8x32xf32>
    %208 = tpu.matmul %205, %207, %cst_179 {dimension_numbers = #tpu.dot_dimension_numbers<[1], [0], [0], [1], [0, 0, 1, 1], [], []>} : vector<8x128xf32>, vector<128x32xf32>, vector<8x32xf32> -> vector<8x32xf32>
    %c0_180 = arith.constant 0 : index
    %c0_181 = arith.constant 0 : index
    %c0_182 = arith.constant 0 : index
    %209 = vector.load %arg18[%c0_180, %c0_181, %c0_182] : memref<2x1x32xf32, #tpu.memory_space<vmem>>, vector<1x1x32xf32>
    %210 = vector.shape_cast %209 : vector<1x1x32xf32> to vector<1x32xf32>
    %211 = vector.broadcast %210 : vector<1x32xf32> to vector<8x32xf32>
    %212 = arith.addf %208, %211 : vector<8x32xf32>
    %213 = arith.addf %196, %212 : vector<8x32xf32>
    %cst_183 = arith.constant dense<0.000000e+00> : vector<8xf32>
    %214 = vector.multi_reduction <add>, %213, %cst_183 [1] : vector<8x32xf32> to vector<8xf32>
    %215 = vector.shape_cast %214 : vector<8xf32> to vector<8x1xf32>
    %cst_184 = arith.constant 3.200000e+01 : f32
    %216 = vector.broadcast %cst_184 : f32 to vector<8x1xf32>
    %217 = arith.divf %215, %216 : vector<8x1xf32>
    %218 = vector.broadcast %217 : vector<8x1xf32> to vector<8x32xf32>
    %219 = arith.subf %213, %218 : vector<8x32xf32>
    %220 = arith.mulf %219, %219 : vector<8x32xf32>
    %cst_185 = arith.constant dense<0.000000e+00> : vector<8xf32>
    %221 = vector.multi_reduction <add>, %220, %cst_185 [1] : vector<8x32xf32> to vector<8xf32>
    %222 = vector.shape_cast %221 : vector<8xf32> to vector<8x1xf32>
    %cst_186 = arith.constant 3.200000e+01 : f32
    %223 = vector.broadcast %cst_186 : f32 to vector<8x1xf32>
    %224 = arith.divf %222, %223 : vector<8x1xf32>
    %225 = vector.broadcast %217 : vector<8x1xf32> to vector<8x32xf32>
    %226 = arith.subf %213, %225 : vector<8x32xf32>
    %cst_187 = arith.constant 9.99999974E-6 : f32
    %227 = vector.broadcast %cst_187 : f32 to vector<8x1xf32>
    %228 = arith.addf %224, %227 : vector<8x1xf32>
    %229 = math.rsqrt %228 : vector<8x1xf32>
    %230 = vector.broadcast %229 : vector<8x1xf32> to vector<8x32xf32>
    %231 = arith.mulf %226, %230 : vector<8x32xf32>
    %c0_188 = arith.constant 0 : index
    %c0_189 = arith.constant 0 : index
    %c0_190 = arith.constant 0 : index
    %232 = vector.load %arg19[%c0_188, %c0_189, %c0_190] : memref<2x1x32xf32, #tpu.memory_space<vmem>>, vector<1x1x32xf32>
    %233 = vector.shape_cast %232 : vector<1x1x32xf32> to vector<1x32xf32>
    %234 = vector.broadcast %233 : vector<1x32xf32> to vector<8x32xf32>
    %235 = arith.mulf %231, %234 : vector<8x32xf32>
    %c0_191 = arith.constant 0 : index
    %c0_192 = arith.constant 0 : index
    %c0_193 = arith.constant 0 : index
    %236 = vector.load %arg20[%c0_191, %c0_192, %c0_193] : memref<2x1x32xf32, #tpu.memory_space<vmem>>, vector<1x1x32xf32>
    %237 = vector.shape_cast %236 : vector<1x1x32xf32> to vector<1x32xf32>
    %238 = vector.broadcast %237 : vector<1x32xf32> to vector<8x32xf32>
    %239 = arith.addf %235, %238 : vector<8x32xf32>
    %c1_194 = arith.constant 1 : index
    %c0_195 = arith.constant 0 : index
    %c0_196 = arith.constant 0 : index
    %c0_197 = arith.constant 0 : index
    %240 = vector.load %arg5[%c1_194, %c0_195, %c0_196, %c0_197] : memref<2x4x32x8xf32, #tpu.memory_space<vmem>>, vector<1x1x32x8xf32>
    %241 = vector.shape_cast %240 : vector<1x1x32x8xf32> to vector<32x8xf32>
    %cst_198 = arith.constant dense<0.000000e+00> : vector<8x8xf32>
    %242 = tpu.matmul %239, %241, %cst_198 {dimension_numbers = #tpu.dot_dimension_numbers<[1], [0], [0], [1], [0, 0, 1, 1], [], []>} : vector<8x32xf32>, vector<32x8xf32>, vector<8x8xf32> -> vector<8x8xf32>
    %c1_199 = arith.constant 1 : index
    %c0_200 = arith.constant 0 : index
    %c0_201 = arith.constant 0 : index
    %c0_202 = arith.constant 0 : index
    %243 = vector.load %arg6[%c1_199, %c0_200, %c0_201, %c0_202] : memref<2x4x1x8xf32, #tpu.memory_space<vmem>>, vector<1x1x1x8xf32>
    %244 = vector.shape_cast %243 : vector<1x1x1x8xf32> to vector<1x8xf32>
    %245 = vector.broadcast %244 : vector<1x8xf32> to vector<8x8xf32>
    %246 = arith.addf %242, %245 : vector<8x8xf32>
    %c1_203 = arith.constant 1 : index
    %c0_204 = arith.constant 0 : index
    %c0_205 = arith.constant 0 : index
    %c0_206 = arith.constant 0 : index
    %247 = vector.load %arg7[%c1_203, %c0_204, %c0_205, %c0_206] : memref<2x4x32x8xf32, #tpu.memory_space<vmem>>, vector<1x1x32x8xf32>
    %248 = vector.shape_cast %247 : vector<1x1x32x8xf32> to vector<32x8xf32>
    %cst_207 = arith.constant dense<0.000000e+00> : vector<8x8xf32>
    %249 = tpu.matmul %239, %248, %cst_207 {dimension_numbers = #tpu.dot_dimension_numbers<[1], [0], [0], [1], [0, 0, 1, 1], [], []>} : vector<8x32xf32>, vector<32x8xf32>, vector<8x8xf32> -> vector<8x8xf32>
    %c1_208 = arith.constant 1 : index
    %c0_209 = arith.constant 0 : index
    %c0_210 = arith.constant 0 : index
    %c0_211 = arith.constant 0 : index
    %250 = vector.load %arg8[%c1_208, %c0_209, %c0_210, %c0_211] : memref<2x4x1x8xf32, #tpu.memory_space<vmem>>, vector<1x1x1x8xf32>
    %251 = vector.shape_cast %250 : vector<1x1x1x8xf32> to vector<1x8xf32>
    %252 = vector.broadcast %251 : vector<1x8xf32> to vector<8x8xf32>
    %253 = arith.addf %249, %252 : vector<8x8xf32>
    %c1_212 = arith.constant 1 : index
    %c0_213 = arith.constant 0 : index
    %c0_214 = arith.constant 0 : index
    %c0_215 = arith.constant 0 : index
    %254 = vector.load %arg9[%c1_212, %c0_213, %c0_214, %c0_215] : memref<2x4x32x8xf32, #tpu.memory_space<vmem>>, vector<1x1x32x8xf32>
    %255 = vector.shape_cast %254 : vector<1x1x32x8xf32> to vector<32x8xf32>
    %cst_216 = arith.constant dense<0.000000e+00> : vector<8x8xf32>
    %256 = tpu.matmul %239, %255, %cst_216 {dimension_numbers = #tpu.dot_dimension_numbers<[1], [0], [0], [1], [0, 0, 1, 1], [], []>} : vector<8x32xf32>, vector<32x8xf32>, vector<8x8xf32> -> vector<8x8xf32>
    %c1_217 = arith.constant 1 : index
    %c0_218 = arith.constant 0 : index
    %c0_219 = arith.constant 0 : index
    %c0_220 = arith.constant 0 : index
    %257 = vector.load %arg10[%c1_217, %c0_218, %c0_219, %c0_220] : memref<2x4x1x8xf32, #tpu.memory_space<vmem>>, vector<1x1x1x8xf32>
    %258 = vector.shape_cast %257 : vector<1x1x1x8xf32> to vector<1x8xf32>
    %259 = vector.broadcast %258 : vector<1x8xf32> to vector<8x8xf32>
    %260 = arith.addf %256, %259 : vector<8x8xf32>
    %cst_221 = arith.constant dense<0.000000e+00> : vector<8x8xf32>
    %261 = tpu.matmul %246, %253, %cst_221 {dimension_numbers = #tpu.dot_dimension_numbers<[1], [1], [0], [0], [0, 0, 1, 0], [], []>} : vector<8x8xf32>, vector<8x8xf32>, vector<8x8xf32> -> vector<8x8xf32>
    %cst_222 = arith.constant 0.353553385 : f32
    %262 = vector.broadcast %cst_222 : f32 to vector<8x8xf32>
    %263 = arith.mulf %261, %262 : vector<8x8xf32>
    %264 = arith.addf %263, %5 : vector<8x8xf32>
    %cst_223 = arith.constant dense<0xFF800000> : vector<8xf32>
    %265 = vector.multi_reduction <maximumf>, %264, %cst_223 [1] : vector<8x8xf32> to vector<8xf32>
    %266 = vector.shape_cast %265 : vector<8xf32> to vector<8x1xf32>
    %267 = vector.broadcast %266 : vector<8x1xf32> to vector<8x8xf32>
    %268 = arith.subf %264, %267 : vector<8x8xf32>
    %269 = math.exp %268 : vector<8x8xf32>
    %cst_224 = arith.constant dense<0.000000e+00> : vector<8xf32>
    %270 = vector.multi_reduction <add>, %269, %cst_224 [1] : vector<8x8xf32> to vector<8xf32>
    %271 = vector.shape_cast %270 : vector<8xf32> to vector<8x1xf32>
    %272 = vector.broadcast %271 : vector<8x1xf32> to vector<8x8xf32>
    %273 = arith.divf %269, %272 : vector<8x8xf32>
    %cst_225 = arith.constant dense<0.000000e+00> : vector<8x8xf32>
    %274 = tpu.matmul %273, %260, %cst_225 {dimension_numbers = #tpu.dot_dimension_numbers<[1], [0], [0], [1], [0, 0, 1, 1], [], []>} : vector<8x8xf32>, vector<8x8xf32>, vector<8x8xf32> -> vector<8x8xf32>
    %c1_226 = arith.constant 1 : index
    %c0_227 = arith.constant 0 : index
    %c0_228 = arith.constant 0 : index
    %c0_229 = arith.constant 0 : index
    %275 = vector.load %arg11[%c1_226, %c0_227, %c0_228, %c0_229] : memref<2x4x8x32xf32, #tpu.memory_space<vmem>>, vector<1x1x8x32xf32>
    %276 = vector.shape_cast %275 : vector<1x1x8x32xf32> to vector<8x32xf32>
    %cst_230 = arith.constant dense<0.000000e+00> : vector<8x32xf32>
    %277 = tpu.matmul %274, %276, %cst_230 {dimension_numbers = #tpu.dot_dimension_numbers<[1], [0], [0], [1], [0, 0, 1, 1], [], []>} : vector<8x8xf32>, vector<8x32xf32>, vector<8x32xf32> -> vector<8x32xf32>
    %c1_231 = arith.constant 1 : index
    %c1_232 = arith.constant 1 : index
    %c0_233 = arith.constant 0 : index
    %c0_234 = arith.constant 0 : index
    %278 = vector.load %arg5[%c1_231, %c1_232, %c0_233, %c0_234] : memref<2x4x32x8xf32, #tpu.memory_space<vmem>>, vector<1x1x32x8xf32>
    %279 = vector.shape_cast %278 : vector<1x1x32x8xf32> to vector<32x8xf32>
    %cst_235 = arith.constant dense<0.000000e+00> : vector<8x8xf32>
    %280 = tpu.matmul %239, %279, %cst_235 {dimension_numbers = #tpu.dot_dimension_numbers<[1], [0], [0], [1], [0, 0, 1, 1], [], []>} : vector<8x32xf32>, vector<32x8xf32>, vector<8x8xf32> -> vector<8x8xf32>
    %c1_236 = arith.constant 1 : index
    %c1_237 = arith.constant 1 : index
    %c0_238 = arith.constant 0 : index
    %c0_239 = arith.constant 0 : index
    %281 = vector.load %arg6[%c1_236, %c1_237, %c0_238, %c0_239] : memref<2x4x1x8xf32, #tpu.memory_space<vmem>>, vector<1x1x1x8xf32>
    %282 = vector.shape_cast %281 : vector<1x1x1x8xf32> to vector<1x8xf32>
    %283 = vector.broadcast %282 : vector<1x8xf32> to vector<8x8xf32>
    %284 = arith.addf %280, %283 : vector<8x8xf32>
    %c1_240 = arith.constant 1 : index
    %c1_241 = arith.constant 1 : index
    %c0_242 = arith.constant 0 : index
    %c0_243 = arith.constant 0 : index
    %285 = vector.load %arg7[%c1_240, %c1_241, %c0_242, %c0_243] : memref<2x4x32x8xf32, #tpu.memory_space<vmem>>, vector<1x1x32x8xf32>
    %286 = vector.shape_cast %285 : vector<1x1x32x8xf32> to vector<32x8xf32>
    %cst_244 = arith.constant dense<0.000000e+00> : vector<8x8xf32>
    %287 = tpu.matmul %239, %286, %cst_244 {dimension_numbers = #tpu.dot_dimension_numbers<[1], [0], [0], [1], [0, 0, 1, 1], [], []>} : vector<8x32xf32>, vector<32x8xf32>, vector<8x8xf32> -> vector<8x8xf32>
    %c1_245 = arith.constant 1 : index
    %c1_246 = arith.constant 1 : index
    %c0_247 = arith.constant 0 : index
    %c0_248 = arith.constant 0 : index
    %288 = vector.load %arg8[%c1_245, %c1_246, %c0_247, %c0_248] : memref<2x4x1x8xf32, #tpu.memory_space<vmem>>, vector<1x1x1x8xf32>
    %289 = vector.shape_cast %288 : vector<1x1x1x8xf32> to vector<1x8xf32>
    %290 = vector.broadcast %289 : vector<1x8xf32> to vector<8x8xf32>
    %291 = arith.addf %287, %290 : vector<8x8xf32>
    %c1_249 = arith.constant 1 : index
    %c1_250 = arith.constant 1 : index
    %c0_251 = arith.constant 0 : index
    %c0_252 = arith.constant 0 : index
    %292 = vector.load %arg9[%c1_249, %c1_250, %c0_251, %c0_252] : memref<2x4x32x8xf32, #tpu.memory_space<vmem>>, vector<1x1x32x8xf32>
    %293 = vector.shape_cast %292 : vector<1x1x32x8xf32> to vector<32x8xf32>
    %cst_253 = arith.constant dense<0.000000e+00> : vector<8x8xf32>
    %294 = tpu.matmul %239, %293, %cst_253 {dimension_numbers = #tpu.dot_dimension_numbers<[1], [0], [0], [1], [0, 0, 1, 1], [], []>} : vector<8x32xf32>, vector<32x8xf32>, vector<8x8xf32> -> vector<8x8xf32>
    %c1_254 = arith.constant 1 : index
    %c1_255 = arith.constant 1 : index
    %c0_256 = arith.constant 0 : index
    %c0_257 = arith.constant 0 : index
    %295 = vector.load %arg10[%c1_254, %c1_255, %c0_256, %c0_257] : memref<2x4x1x8xf32, #tpu.memory_space<vmem>>, vector<1x1x1x8xf32>
    %296 = vector.shape_cast %295 : vector<1x1x1x8xf32> to vector<1x8xf32>
    %297 = vector.broadcast %296 : vector<1x8xf32> to vector<8x8xf32>
    %298 = arith.addf %294, %297 : vector<8x8xf32>
    %cst_258 = arith.constant dense<0.000000e+00> : vector<8x8xf32>
    %299 = tpu.matmul %284, %291, %cst_258 {dimension_numbers = #tpu.dot_dimension_numbers<[1], [1], [0], [0], [0, 0, 1, 0], [], []>} : vector<8x8xf32>, vector<8x8xf32>, vector<8x8xf32> -> vector<8x8xf32>
    %cst_259 = arith.constant 0.353553385 : f32
    %300 = vector.broadcast %cst_259 : f32 to vector<8x8xf32>
    %301 = arith.mulf %299, %300 : vector<8x8xf32>
    %302 = arith.addf %301, %5 : vector<8x8xf32>
    %cst_260 = arith.constant dense<0xFF800000> : vector<8xf32>
    %303 = vector.multi_reduction <maximumf>, %302, %cst_260 [1] : vector<8x8xf32> to vector<8xf32>
    %304 = vector.shape_cast %303 : vector<8xf32> to vector<8x1xf32>
    %305 = vector.broadcast %304 : vector<8x1xf32> to vector<8x8xf32>
    %306 = arith.subf %302, %305 : vector<8x8xf32>
    %307 = math.exp %306 : vector<8x8xf32>
    %cst_261 = arith.constant dense<0.000000e+00> : vector<8xf32>
    %308 = vector.multi_reduction <add>, %307, %cst_261 [1] : vector<8x8xf32> to vector<8xf32>
    %309 = vector.shape_cast %308 : vector<8xf32> to vector<8x1xf32>
    %310 = vector.broadcast %309 : vector<8x1xf32> to vector<8x8xf32>
    %311 = arith.divf %307, %310 : vector<8x8xf32>
    %cst_262 = arith.constant dense<0.000000e+00> : vector<8x8xf32>
    %312 = tpu.matmul %311, %298, %cst_262 {dimension_numbers = #tpu.dot_dimension_numbers<[1], [0], [0], [1], [0, 0, 1, 1], [], []>} : vector<8x8xf32>, vector<8x8xf32>, vector<8x8xf32> -> vector<8x8xf32>
    %c1_263 = arith.constant 1 : index
    %c1_264 = arith.constant 1 : index
    %c0_265 = arith.constant 0 : index
    %c0_266 = arith.constant 0 : index
    %313 = vector.load %arg11[%c1_263, %c1_264, %c0_265, %c0_266] : memref<2x4x8x32xf32, #tpu.memory_space<vmem>>, vector<1x1x8x32xf32>
    %314 = vector.shape_cast %313 : vector<1x1x8x32xf32> to vector<8x32xf32>
    %cst_267 = arith.constant dense<0.000000e+00> : vector<8x32xf32>
    %315 = tpu.matmul %312, %314, %cst_267 {dimension_numbers = #tpu.dot_dimension_numbers<[1], [0], [0], [1], [0, 0, 1, 1], [], []>} : vector<8x8xf32>, vector<8x32xf32>, vector<8x32xf32> -> vector<8x32xf32>
    %316 = arith.addf %277, %315 : vector<8x32xf32>
    %c1_268 = arith.constant 1 : index
    %c2_269 = arith.constant 2 : index
    %c0_270 = arith.constant 0 : index
    %c0_271 = arith.constant 0 : index
    %317 = vector.load %arg5[%c1_268, %c2_269, %c0_270, %c0_271] : memref<2x4x32x8xf32, #tpu.memory_space<vmem>>, vector<1x1x32x8xf32>
    %318 = vector.shape_cast %317 : vector<1x1x32x8xf32> to vector<32x8xf32>
    %cst_272 = arith.constant dense<0.000000e+00> : vector<8x8xf32>
    %319 = tpu.matmul %239, %318, %cst_272 {dimension_numbers = #tpu.dot_dimension_numbers<[1], [0], [0], [1], [0, 0, 1, 1], [], []>} : vector<8x32xf32>, vector<32x8xf32>, vector<8x8xf32> -> vector<8x8xf32>
    %c1_273 = arith.constant 1 : index
    %c2_274 = arith.constant 2 : index
    %c0_275 = arith.constant 0 : index
    %c0_276 = arith.constant 0 : index
    %320 = vector.load %arg6[%c1_273, %c2_274, %c0_275, %c0_276] : memref<2x4x1x8xf32, #tpu.memory_space<vmem>>, vector<1x1x1x8xf32>
    %321 = vector.shape_cast %320 : vector<1x1x1x8xf32> to vector<1x8xf32>
    %322 = vector.broadcast %321 : vector<1x8xf32> to vector<8x8xf32>
    %323 = arith.addf %319, %322 : vector<8x8xf32>
    %c1_277 = arith.constant 1 : index
    %c2_278 = arith.constant 2 : index
    %c0_279 = arith.constant 0 : index
    %c0_280 = arith.constant 0 : index
    %324 = vector.load %arg7[%c1_277, %c2_278, %c0_279, %c0_280] : memref<2x4x32x8xf32, #tpu.memory_space<vmem>>, vector<1x1x32x8xf32>
    %325 = vector.shape_cast %324 : vector<1x1x32x8xf32> to vector<32x8xf32>
    %cst_281 = arith.constant dense<0.000000e+00> : vector<8x8xf32>
    %326 = tpu.matmul %239, %325, %cst_281 {dimension_numbers = #tpu.dot_dimension_numbers<[1], [0], [0], [1], [0, 0, 1, 1], [], []>} : vector<8x32xf32>, vector<32x8xf32>, vector<8x8xf32> -> vector<8x8xf32>
    %c1_282 = arith.constant 1 : index
    %c2_283 = arith.constant 2 : index
    %c0_284 = arith.constant 0 : index
    %c0_285 = arith.constant 0 : index
    %327 = vector.load %arg8[%c1_282, %c2_283, %c0_284, %c0_285] : memref<2x4x1x8xf32, #tpu.memory_space<vmem>>, vector<1x1x1x8xf32>
    %328 = vector.shape_cast %327 : vector<1x1x1x8xf32> to vector<1x8xf32>
    %329 = vector.broadcast %328 : vector<1x8xf32> to vector<8x8xf32>
    %330 = arith.addf %326, %329 : vector<8x8xf32>
    %c1_286 = arith.constant 1 : index
    %c2_287 = arith.constant 2 : index
    %c0_288 = arith.constant 0 : index
    %c0_289 = arith.constant 0 : index
    %331 = vector.load %arg9[%c1_286, %c2_287, %c0_288, %c0_289] : memref<2x4x32x8xf32, #tpu.memory_space<vmem>>, vector<1x1x32x8xf32>
    %332 = vector.shape_cast %331 : vector<1x1x32x8xf32> to vector<32x8xf32>
    %cst_290 = arith.constant dense<0.000000e+00> : vector<8x8xf32>
    %333 = tpu.matmul %239, %332, %cst_290 {dimension_numbers = #tpu.dot_dimension_numbers<[1], [0], [0], [1], [0, 0, 1, 1], [], []>} : vector<8x32xf32>, vector<32x8xf32>, vector<8x8xf32> -> vector<8x8xf32>
    %c1_291 = arith.constant 1 : index
    %c2_292 = arith.constant 2 : index
    %c0_293 = arith.constant 0 : index
    %c0_294 = arith.constant 0 : index
    %334 = vector.load %arg10[%c1_291, %c2_292, %c0_293, %c0_294] : memref<2x4x1x8xf32, #tpu.memory_space<vmem>>, vector<1x1x1x8xf32>
    %335 = vector.shape_cast %334 : vector<1x1x1x8xf32> to vector<1x8xf32>
    %336 = vector.broadcast %335 : vector<1x8xf32> to vector<8x8xf32>
    %337 = arith.addf %333, %336 : vector<8x8xf32>
    %cst_295 = arith.constant dense<0.000000e+00> : vector<8x8xf32>
    %338 = tpu.matmul %323, %330, %cst_295 {dimension_numbers = #tpu.dot_dimension_numbers<[1], [1], [0], [0], [0, 0, 1, 0], [], []>} : vector<8x8xf32>, vector<8x8xf32>, vector<8x8xf32> -> vector<8x8xf32>
    %cst_296 = arith.constant 0.353553385 : f32
    %339 = vector.broadcast %cst_296 : f32 to vector<8x8xf32>
    %340 = arith.mulf %338, %339 : vector<8x8xf32>
    %341 = arith.addf %340, %5 : vector<8x8xf32>
    %cst_297 = arith.constant dense<0xFF800000> : vector<8xf32>
    %342 = vector.multi_reduction <maximumf>, %341, %cst_297 [1] : vector<8x8xf32> to vector<8xf32>
    %343 = vector.shape_cast %342 : vector<8xf32> to vector<8x1xf32>
    %344 = vector.broadcast %343 : vector<8x1xf32> to vector<8x8xf32>
    %345 = arith.subf %341, %344 : vector<8x8xf32>
    %346 = math.exp %345 : vector<8x8xf32>
    %cst_298 = arith.constant dense<0.000000e+00> : vector<8xf32>
    %347 = vector.multi_reduction <add>, %346, %cst_298 [1] : vector<8x8xf32> to vector<8xf32>
    %348 = vector.shape_cast %347 : vector<8xf32> to vector<8x1xf32>
    %349 = vector.broadcast %348 : vector<8x1xf32> to vector<8x8xf32>
    %350 = arith.divf %346, %349 : vector<8x8xf32>
    %cst_299 = arith.constant dense<0.000000e+00> : vector<8x8xf32>
    %351 = tpu.matmul %350, %337, %cst_299 {dimension_numbers = #tpu.dot_dimension_numbers<[1], [0], [0], [1], [0, 0, 1, 1], [], []>} : vector<8x8xf32>, vector<8x8xf32>, vector<8x8xf32> -> vector<8x8xf32>
    %c1_300 = arith.constant 1 : index
    %c2_301 = arith.constant 2 : index
    %c0_302 = arith.constant 0 : index
    %c0_303 = arith.constant 0 : index
    %352 = vector.load %arg11[%c1_300, %c2_301, %c0_302, %c0_303] : memref<2x4x8x32xf32, #tpu.memory_space<vmem>>, vector<1x1x8x32xf32>
    %353 = vector.shape_cast %352 : vector<1x1x8x32xf32> to vector<8x32xf32>
    %cst_304 = arith.constant dense<0.000000e+00> : vector<8x32xf32>
    %354 = tpu.matmul %351, %353, %cst_304 {dimension_numbers = #tpu.dot_dimension_numbers<[1], [0], [0], [1], [0, 0, 1, 1], [], []>} : vector<8x8xf32>, vector<8x32xf32>, vector<8x32xf32> -> vector<8x32xf32>
    %355 = arith.addf %316, %354 : vector<8x32xf32>
    %c1_305 = arith.constant 1 : index
    %c3_306 = arith.constant 3 : index
    %c0_307 = arith.constant 0 : index
    %c0_308 = arith.constant 0 : index
    %356 = vector.load %arg5[%c1_305, %c3_306, %c0_307, %c0_308] : memref<2x4x32x8xf32, #tpu.memory_space<vmem>>, vector<1x1x32x8xf32>
    %357 = vector.shape_cast %356 : vector<1x1x32x8xf32> to vector<32x8xf32>
    %cst_309 = arith.constant dense<0.000000e+00> : vector<8x8xf32>
    %358 = tpu.matmul %239, %357, %cst_309 {dimension_numbers = #tpu.dot_dimension_numbers<[1], [0], [0], [1], [0, 0, 1, 1], [], []>} : vector<8x32xf32>, vector<32x8xf32>, vector<8x8xf32> -> vector<8x8xf32>
    %c1_310 = arith.constant 1 : index
    %c3_311 = arith.constant 3 : index
    %c0_312 = arith.constant 0 : index
    %c0_313 = arith.constant 0 : index
    %359 = vector.load %arg6[%c1_310, %c3_311, %c0_312, %c0_313] : memref<2x4x1x8xf32, #tpu.memory_space<vmem>>, vector<1x1x1x8xf32>
    %360 = vector.shape_cast %359 : vector<1x1x1x8xf32> to vector<1x8xf32>
    %361 = vector.broadcast %360 : vector<1x8xf32> to vector<8x8xf32>
    %362 = arith.addf %358, %361 : vector<8x8xf32>
    %c1_314 = arith.constant 1 : index
    %c3_315 = arith.constant 3 : index
    %c0_316 = arith.constant 0 : index
    %c0_317 = arith.constant 0 : index
    %363 = vector.load %arg7[%c1_314, %c3_315, %c0_316, %c0_317] : memref<2x4x32x8xf32, #tpu.memory_space<vmem>>, vector<1x1x32x8xf32>
    %364 = vector.shape_cast %363 : vector<1x1x32x8xf32> to vector<32x8xf32>
    %cst_318 = arith.constant dense<0.000000e+00> : vector<8x8xf32>
    %365 = tpu.matmul %239, %364, %cst_318 {dimension_numbers = #tpu.dot_dimension_numbers<[1], [0], [0], [1], [0, 0, 1, 1], [], []>} : vector<8x32xf32>, vector<32x8xf32>, vector<8x8xf32> -> vector<8x8xf32>
    %c1_319 = arith.constant 1 : index
    %c3_320 = arith.constant 3 : index
    %c0_321 = arith.constant 0 : index
    %c0_322 = arith.constant 0 : index
    %366 = vector.load %arg8[%c1_319, %c3_320, %c0_321, %c0_322] : memref<2x4x1x8xf32, #tpu.memory_space<vmem>>, vector<1x1x1x8xf32>
    %367 = vector.shape_cast %366 : vector<1x1x1x8xf32> to vector<1x8xf32>
    %368 = vector.broadcast %367 : vector<1x8xf32> to vector<8x8xf32>
    %369 = arith.addf %365, %368 : vector<8x8xf32>
    %c1_323 = arith.constant 1 : index
    %c3_324 = arith.constant 3 : index
    %c0_325 = arith.constant 0 : index
    %c0_326 = arith.constant 0 : index
    %370 = vector.load %arg9[%c1_323, %c3_324, %c0_325, %c0_326] : memref<2x4x32x8xf32, #tpu.memory_space<vmem>>, vector<1x1x32x8xf32>
    %371 = vector.shape_cast %370 : vector<1x1x32x8xf32> to vector<32x8xf32>
    %cst_327 = arith.constant dense<0.000000e+00> : vector<8x8xf32>
    %372 = tpu.matmul %239, %371, %cst_327 {dimension_numbers = #tpu.dot_dimension_numbers<[1], [0], [0], [1], [0, 0, 1, 1], [], []>} : vector<8x32xf32>, vector<32x8xf32>, vector<8x8xf32> -> vector<8x8xf32>
    %c1_328 = arith.constant 1 : index
    %c3_329 = arith.constant 3 : index
    %c0_330 = arith.constant 0 : index
    %c0_331 = arith.constant 0 : index
    %373 = vector.load %arg10[%c1_328, %c3_329, %c0_330, %c0_331] : memref<2x4x1x8xf32, #tpu.memory_space<vmem>>, vector<1x1x1x8xf32>
    %374 = vector.shape_cast %373 : vector<1x1x1x8xf32> to vector<1x8xf32>
    %375 = vector.broadcast %374 : vector<1x8xf32> to vector<8x8xf32>
    %376 = arith.addf %372, %375 : vector<8x8xf32>
    %cst_332 = arith.constant dense<0.000000e+00> : vector<8x8xf32>
    %377 = tpu.matmul %362, %369, %cst_332 {dimension_numbers = #tpu.dot_dimension_numbers<[1], [1], [0], [0], [0, 0, 1, 0], [], []>} : vector<8x8xf32>, vector<8x8xf32>, vector<8x8xf32> -> vector<8x8xf32>
    %cst_333 = arith.constant 0.353553385 : f32
    %378 = vector.broadcast %cst_333 : f32 to vector<8x8xf32>
    %379 = arith.mulf %377, %378 : vector<8x8xf32>
    %380 = arith.addf %379, %5 : vector<8x8xf32>
    %cst_334 = arith.constant dense<0xFF800000> : vector<8xf32>
    %381 = vector.multi_reduction <maximumf>, %380, %cst_334 [1] : vector<8x8xf32> to vector<8xf32>
    %382 = vector.shape_cast %381 : vector<8xf32> to vector<8x1xf32>
    %383 = vector.broadcast %382 : vector<8x1xf32> to vector<8x8xf32>
    %384 = arith.subf %380, %383 : vector<8x8xf32>
    %385 = math.exp %384 : vector<8x8xf32>
    %cst_335 = arith.constant dense<0.000000e+00> : vector<8xf32>
    %386 = vector.multi_reduction <add>, %385, %cst_335 [1] : vector<8x8xf32> to vector<8xf32>
    %387 = vector.shape_cast %386 : vector<8xf32> to vector<8x1xf32>
    %388 = vector.broadcast %387 : vector<8x1xf32> to vector<8x8xf32>
    %389 = arith.divf %385, %388 : vector<8x8xf32>
    %cst_336 = arith.constant dense<0.000000e+00> : vector<8x8xf32>
    %390 = tpu.matmul %389, %376, %cst_336 {dimension_numbers = #tpu.dot_dimension_numbers<[1], [0], [0], [1], [0, 0, 1, 1], [], []>} : vector<8x8xf32>, vector<8x8xf32>, vector<8x8xf32> -> vector<8x8xf32>
    %c1_337 = arith.constant 1 : index
    %c3_338 = arith.constant 3 : index
    %c0_339 = arith.constant 0 : index
    %c0_340 = arith.constant 0 : index
    %391 = vector.load %arg11[%c1_337, %c3_338, %c0_339, %c0_340] : memref<2x4x8x32xf32, #tpu.memory_space<vmem>>, vector<1x1x8x32xf32>
    %392 = vector.shape_cast %391 : vector<1x1x8x32xf32> to vector<8x32xf32>
    %cst_341 = arith.constant dense<0.000000e+00> : vector<8x32xf32>
    %393 = tpu.matmul %390, %392, %cst_341 {dimension_numbers = #tpu.dot_dimension_numbers<[1], [0], [0], [1], [0, 0, 1, 1], [], []>} : vector<8x8xf32>, vector<8x32xf32>, vector<8x32xf32> -> vector<8x32xf32>
    %394 = arith.addf %355, %393 : vector<8x32xf32>
    %c1_342 = arith.constant 1 : index
    %c0_343 = arith.constant 0 : index
    %c0_344 = arith.constant 0 : index
    %395 = vector.load %arg12[%c1_342, %c0_343, %c0_344] : memref<2x1x32xf32, #tpu.memory_space<vmem>>, vector<1x1x32xf32>
    %396 = vector.shape_cast %395 : vector<1x1x32xf32> to vector<1x32xf32>
    %397 = vector.broadcast %396 : vector<1x32xf32> to vector<8x32xf32>
    %398 = arith.addf %394, %397 : vector<8x32xf32>
    %399 = arith.addf %239, %398 : vector<8x32xf32>
    %cst_345 = arith.constant dense<0.000000e+00> : vector<8xf32>
    %400 = vector.multi_reduction <add>, %399, %cst_345 [1] : vector<8x32xf32> to vector<8xf32>
    %401 = vector.shape_cast %400 : vector<8xf32> to vector<8x1xf32>
    %cst_346 = arith.constant 3.200000e+01 : f32
    %402 = vector.broadcast %cst_346 : f32 to vector<8x1xf32>
    %403 = arith.divf %401, %402 : vector<8x1xf32>
    %404 = vector.broadcast %403 : vector<8x1xf32> to vector<8x32xf32>
    %405 = arith.subf %399, %404 : vector<8x32xf32>
    %406 = arith.mulf %405, %405 : vector<8x32xf32>
    %cst_347 = arith.constant dense<0.000000e+00> : vector<8xf32>
    %407 = vector.multi_reduction <add>, %406, %cst_347 [1] : vector<8x32xf32> to vector<8xf32>
    %408 = vector.shape_cast %407 : vector<8xf32> to vector<8x1xf32>
    %cst_348 = arith.constant 3.200000e+01 : f32
    %409 = vector.broadcast %cst_348 : f32 to vector<8x1xf32>
    %410 = arith.divf %408, %409 : vector<8x1xf32>
    %411 = vector.broadcast %403 : vector<8x1xf32> to vector<8x32xf32>
    %412 = arith.subf %399, %411 : vector<8x32xf32>
    %cst_349 = arith.constant 9.99999974E-6 : f32
    %413 = vector.broadcast %cst_349 : f32 to vector<8x1xf32>
    %414 = arith.addf %410, %413 : vector<8x1xf32>
    %415 = math.rsqrt %414 : vector<8x1xf32>
    %416 = vector.broadcast %415 : vector<8x1xf32> to vector<8x32xf32>
    %417 = arith.mulf %412, %416 : vector<8x32xf32>
    %c1_350 = arith.constant 1 : index
    %c0_351 = arith.constant 0 : index
    %c0_352 = arith.constant 0 : index
    %418 = vector.load %arg13[%c1_350, %c0_351, %c0_352] : memref<2x1x32xf32, #tpu.memory_space<vmem>>, vector<1x1x32xf32>
    %419 = vector.shape_cast %418 : vector<1x1x32xf32> to vector<1x32xf32>
    %420 = vector.broadcast %419 : vector<1x32xf32> to vector<8x32xf32>
    %421 = arith.mulf %417, %420 : vector<8x32xf32>
    %c1_353 = arith.constant 1 : index
    %c0_354 = arith.constant 0 : index
    %c0_355 = arith.constant 0 : index
    %422 = vector.load %arg14[%c1_353, %c0_354, %c0_355] : memref<2x1x32xf32, #tpu.memory_space<vmem>>, vector<1x1x32xf32>
    %423 = vector.shape_cast %422 : vector<1x1x32xf32> to vector<1x32xf32>
    %424 = vector.broadcast %423 : vector<1x32xf32> to vector<8x32xf32>
    %425 = arith.addf %421, %424 : vector<8x32xf32>
    %c1_356 = arith.constant 1 : index
    %c0_357 = arith.constant 0 : index
    %c0_358 = arith.constant 0 : index
    %426 = vector.load %arg15[%c1_356, %c0_357, %c0_358] : memref<2x32x128xf32, #tpu.memory_space<vmem>>, vector<1x32x128xf32>
    %427 = vector.shape_cast %426 : vector<1x32x128xf32> to vector<32x128xf32>
    %cst_359 = arith.constant dense<0.000000e+00> : vector<8x128xf32>
    %428 = tpu.matmul %425, %427, %cst_359 {dimension_numbers = #tpu.dot_dimension_numbers<[1], [0], [0], [1], [0, 0, 1, 1], [], []>} : vector<8x32xf32>, vector<32x128xf32>, vector<8x128xf32> -> vector<8x128xf32>
    %c1_360 = arith.constant 1 : index
    %c0_361 = arith.constant 0 : index
    %c0_362 = arith.constant 0 : index
    %429 = vector.load %arg16[%c1_360, %c0_361, %c0_362] : memref<2x1x128xf32, #tpu.memory_space<vmem>>, vector<1x1x128xf32>
    %430 = vector.shape_cast %429 : vector<1x1x128xf32> to vector<1x128xf32>
    %431 = vector.broadcast %430 : vector<1x128xf32> to vector<8x128xf32>
    %432 = arith.addf %428, %431 : vector<8x128xf32>
    %cst_363 = arith.constant 0.000000e+00 : f32
    %433 = vector.broadcast %cst_363 : f32 to vector<8x128xf32>
    %434 = arith.maximumf %432, %433 : vector<8x128xf32>
    %c1_364 = arith.constant 1 : index
    %c0_365 = arith.constant 0 : index
    %c0_366 = arith.constant 0 : index
    %435 = vector.load %arg17[%c1_364, %c0_365, %c0_366] : memref<2x128x32xf32, #tpu.memory_space<vmem>>, vector<1x128x32xf32>
    %436 = vector.shape_cast %435 : vector<1x128x32xf32> to vector<128x32xf32>
    %cst_367 = arith.constant dense<0.000000e+00> : vector<8x32xf32>
    %437 = tpu.matmul %434, %436, %cst_367 {dimension_numbers = #tpu.dot_dimension_numbers<[1], [0], [0], [1], [0, 0, 1, 1], [], []>} : vector<8x128xf32>, vector<128x32xf32>, vector<8x32xf32> -> vector<8x32xf32>
    %c1_368 = arith.constant 1 : index
    %c0_369 = arith.constant 0 : index
    %c0_370 = arith.constant 0 : index
    %438 = vector.load %arg18[%c1_368, %c0_369, %c0_370] : memref<2x1x32xf32, #tpu.memory_space<vmem>>, vector<1x1x32xf32>
    %439 = vector.shape_cast %438 : vector<1x1x32xf32> to vector<1x32xf32>
    %440 = vector.broadcast %439 : vector<1x32xf32> to vector<8x32xf32>
    %441 = arith.addf %437, %440 : vector<8x32xf32>
    %442 = arith.addf %425, %441 : vector<8x32xf32>
    %cst_371 = arith.constant dense<0.000000e+00> : vector<8xf32>
    %443 = vector.multi_reduction <add>, %442, %cst_371 [1] : vector<8x32xf32> to vector<8xf32>
    %444 = vector.shape_cast %443 : vector<8xf32> to vector<8x1xf32>
    %cst_372 = arith.constant 3.200000e+01 : f32
    %445 = vector.broadcast %cst_372 : f32 to vector<8x1xf32>
    %446 = arith.divf %444, %445 : vector<8x1xf32>
    %447 = vector.broadcast %446 : vector<8x1xf32> to vector<8x32xf32>
    %448 = arith.subf %442, %447 : vector<8x32xf32>
    %449 = arith.mulf %448, %448 : vector<8x32xf32>
    %cst_373 = arith.constant dense<0.000000e+00> : vector<8xf32>
    %450 = vector.multi_reduction <add>, %449, %cst_373 [1] : vector<8x32xf32> to vector<8xf32>
    %451 = vector.shape_cast %450 : vector<8xf32> to vector<8x1xf32>
    %cst_374 = arith.constant 3.200000e+01 : f32
    %452 = vector.broadcast %cst_374 : f32 to vector<8x1xf32>
    %453 = arith.divf %451, %452 : vector<8x1xf32>
    %454 = vector.broadcast %446 : vector<8x1xf32> to vector<8x32xf32>
    %455 = arith.subf %442, %454 : vector<8x32xf32>
    %cst_375 = arith.constant 9.99999974E-6 : f32
    %456 = vector.broadcast %cst_375 : f32 to vector<8x1xf32>
    %457 = arith.addf %453, %456 : vector<8x1xf32>
    %458 = math.rsqrt %457 : vector<8x1xf32>
    %459 = vector.broadcast %458 : vector<8x1xf32> to vector<8x32xf32>
    %460 = arith.mulf %455, %459 : vector<8x32xf32>
    %c1_376 = arith.constant 1 : index
    %c0_377 = arith.constant 0 : index
    %c0_378 = arith.constant 0 : index
    %461 = vector.load %arg19[%c1_376, %c0_377, %c0_378] : memref<2x1x32xf32, #tpu.memory_space<vmem>>, vector<1x1x32xf32>
    %462 = vector.shape_cast %461 : vector<1x1x32xf32> to vector<1x32xf32>
    %463 = vector.broadcast %462 : vector<1x32xf32> to vector<8x32xf32>
    %464 = arith.mulf %460, %463 : vector<8x32xf32>
    %c1_379 = arith.constant 1 : index
    %c0_380 = arith.constant 0 : index
    %c0_381 = arith.constant 0 : index
    %465 = vector.load %arg20[%c1_379, %c0_380, %c0_381] : memref<2x1x32xf32, #tpu.memory_space<vmem>>, vector<1x1x32xf32>
    %466 = vector.shape_cast %465 : vector<1x1x32xf32> to vector<1x32xf32>
    %467 = vector.broadcast %466 : vector<1x32xf32> to vector<8x32xf32>
    %468 = arith.addf %464, %467 : vector<8x32xf32>
    %c0_382 = arith.constant 0 : index
    %c0_383 = arith.constant 0 : index
    %c0_384 = arith.constant 0 : index
    %469 = vector.load %arg25[%c0_382, %c0_383, %c0_384] : memref<1x8x32xf32, #tpu.memory_space<vmem>>, vector<1x8x32xf32>
    %470 = vector.shape_cast %469 : vector<1x8x32xf32> to vector<8x32xf32>
    %471 = vector.shape_cast %468 : vector<8x32xf32> to vector<1x8x32xf32>
    tpu.vector_store %arg25[%c0_382, %c0_383, %c0_384], %471 {strides = array<i32>} : memref<1x8x32xf32, #tpu.memory_space<vmem>>, vector<1x8x32xf32>,
    %c0_385 = arith.constant 0 : index
    %c0_386 = arith.constant 0 : index
    %472 = vector.load %arg21[%c0_385, %c0_386] : memref<1x32xf32, #tpu.memory_space<vmem>>, vector<1x32xf32>
    %cst_387 = arith.constant dense<0.000000e+00> : vector<1x8xf32>
    %473 = tpu.matmul %472, %468, %cst_387 {dimension_numbers = #tpu.dot_dimension_numbers<[1], [1], [0], [0], [0, 0, 1, 0], [], []>} : vector<1x32xf32>, vector<8x32xf32>, vector<1x8xf32> -> vector<1x8xf32>
    %c0_388 = arith.constant 0 : index
    %c0_389 = arith.constant 0 : index
    %474 = vector.load %arg22[%c0_388, %c0_389] : memref<1x1xf32, #tpu.memory_space<vmem>>, vector<1x1xf32>
    %475 = vector.broadcast %474 : vector<1x1xf32> to vector<1x8xf32>
    %476 = arith.addf %473, %475 : vector<1x8xf32>
    %c0_390 = arith.constant 0 : index
    %c0_391 = arith.constant 0 : index
    %c0_392 = arith.constant 0 : index
    %477 = vector.load %arg26[%c0_390, %c0_391, %c0_392] : memref<1x1x8xf32, #tpu.memory_space<vmem>>, vector<1x1x8xf32>
    %478 = vector.shape_cast %477 : vector<1x1x8xf32> to vector<1x8xf32>
    %479 = vector.shape_cast %476 : vector<1x8xf32> to vector<1x1x8xf32>
    tpu.vector_store %arg26[%c0_390, %c0_391, %c0_392], %479 {strides = array<i32>} : memref<1x1x8xf32, #tpu.memory_space<vmem>>, vector<1x1x8xf32>,
    %480 = vector.extract_strided_slice %468 {offsets = [0, 0], sizes = [1, 32], strides = [1, 1]} : vector<8x32xf32> to vector<1x32xf32>
    %c0_393 = arith.constant 0 : index
    %c0_394 = arith.constant 0 : index
    %c0_395 = arith.constant 0 : index
    %481 = vector.load %arg23[%c0_393, %c0_394, %c0_395] : memref<8x32x32xf32, #tpu.memory_space<vmem>>, vector<1x32x32xf32>
    %482 = vector.shape_cast %481 : vector<1x32x32xf32> to vector<32x32xf32>
    %cst_396 = arith.constant dense<0.000000e+00> : vector<1x32xf32>
    %483 = tpu.matmul %480, %482, %cst_396 {dimension_numbers = #tpu.dot_dimension_numbers<[1], [0], [0], [1], [0, 0, 1, 1], [], []>} : vector<1x32xf32>, vector<32x32xf32>, vector<1x32xf32> -> vector<1x32xf32>
    %484 = vector.extract_strided_slice %468 {offsets = [1, 0], sizes = [1, 32], strides = [1, 1]} : vector<8x32xf32> to vector<1x32xf32>
    %c1_397 = arith.constant 1 : index
    %c0_398 = arith.constant 0 : index
    %c0_399 = arith.constant 0 : index
    %485 = vector.load %arg23[%c1_397, %c0_398, %c0_399] : memref<8x32x32xf32, #tpu.memory_space<vmem>>, vector<1x32x32xf32>
    %486 = vector.shape_cast %485 : vector<1x32x32xf32> to vector<32x32xf32>
    %cst_400 = arith.constant dense<0.000000e+00> : vector<1x32xf32>
    %487 = tpu.matmul %484, %486, %cst_400 {dimension_numbers = #tpu.dot_dimension_numbers<[1], [0], [0], [1], [0, 0, 1, 1], [], []>} : vector<1x32xf32>, vector<32x32xf32>, vector<1x32xf32> -> vector<1x32xf32>
    %488 = vector.extract_strided_slice %468 {offsets = [2, 0], sizes = [1, 32], strides = [1, 1]} : vector<8x32xf32> to vector<1x32xf32>
    %c2_401 = arith.constant 2 : index
    %c0_402 = arith.constant 0 : index
    %c0_403 = arith.constant 0 : index
    %489 = vector.load %arg23[%c2_401, %c0_402, %c0_403] : memref<8x32x32xf32, #tpu.memory_space<vmem>>, vector<1x32x32xf32>
    %490 = vector.shape_cast %489 : vector<1x32x32xf32> to vector<32x32xf32>
    %cst_404 = arith.constant dense<0.000000e+00> : vector<1x32xf32>
    %491 = tpu.matmul %488, %490, %cst_404 {dimension_numbers = #tpu.dot_dimension_numbers<[1], [0], [0], [1], [0, 0, 1, 1], [], []>} : vector<1x32xf32>, vector<32x32xf32>, vector<1x32xf32> -> vector<1x32xf32>
    %492 = vector.extract_strided_slice %468 {offsets = [3, 0], sizes = [1, 32], strides = [1, 1]} : vector<8x32xf32> to vector<1x32xf32>
    %c3_405 = arith.constant 3 : index
    %c0_406 = arith.constant 0 : index
    %c0_407 = arith.constant 0 : index
    %493 = vector.load %arg23[%c3_405, %c0_406, %c0_407] : memref<8x32x32xf32, #tpu.memory_space<vmem>>, vector<1x32x32xf32>
    %494 = vector.shape_cast %493 : vector<1x32x32xf32> to vector<32x32xf32>
    %cst_408 = arith.constant dense<0.000000e+00> : vector<1x32xf32>
    %495 = tpu.matmul %492, %494, %cst_408 {dimension_numbers = #tpu.dot_dimension_numbers<[1], [0], [0], [1], [0, 0, 1, 1], [], []>} : vector<1x32xf32>, vector<32x32xf32>, vector<1x32xf32> -> vector<1x32xf32>
    %496 = vector.extract_strided_slice %468 {offsets = [4, 0], sizes = [1, 32], strides = [1, 1]} : vector<8x32xf32> to vector<1x32xf32>
    %c4 = arith.constant 4 : index
    %c0_409 = arith.constant 0 : index
    %c0_410 = arith.constant 0 : index
    %497 = vector.load %arg23[%c4, %c0_409, %c0_410] : memref<8x32x32xf32, #tpu.memory_space<vmem>>, vector<1x32x32xf32>
    %498 = vector.shape_cast %497 : vector<1x32x32xf32> to vector<32x32xf32>
    %cst_411 = arith.constant dense<0.000000e+00> : vector<1x32xf32>
    %499 = tpu.matmul %496, %498, %cst_411 {dimension_numbers = #tpu.dot_dimension_numbers<[1], [0], [0], [1], [0, 0, 1, 1], [], []>} : vector<1x32xf32>, vector<32x32xf32>, vector<1x32xf32> -> vector<1x32xf32>
    %500 = vector.extract_strided_slice %468 {offsets = [5, 0], sizes = [1, 32], strides = [1, 1]} : vector<8x32xf32> to vector<1x32xf32>
    %c5 = arith.constant 5 : index
    %c0_412 = arith.constant 0 : index
    %c0_413 = arith.constant 0 : index
    %501 = vector.load %arg23[%c5, %c0_412, %c0_413] : memref<8x32x32xf32, #tpu.memory_space<vmem>>, vector<1x32x32xf32>
    %502 = vector.shape_cast %501 : vector<1x32x32xf32> to vector<32x32xf32>
    %cst_414 = arith.constant dense<0.000000e+00> : vector<1x32xf32>
    %503 = tpu.matmul %500, %502, %cst_414 {dimension_numbers = #tpu.dot_dimension_numbers<[1], [0], [0], [1], [0, 0, 1, 1], [], []>} : vector<1x32xf32>, vector<32x32xf32>, vector<1x32xf32> -> vector<1x32xf32>
    %504 = vector.extract_strided_slice %468 {offsets = [6, 0], sizes = [1, 32], strides = [1, 1]} : vector<8x32xf32> to vector<1x32xf32>
    %c6 = arith.constant 6 : index
    %c0_415 = arith.constant 0 : index
    %c0_416 = arith.constant 0 : index
    %505 = vector.load %arg23[%c6, %c0_415, %c0_416] : memref<8x32x32xf32, #tpu.memory_space<vmem>>, vector<1x32x32xf32>
    %506 = vector.shape_cast %505 : vector<1x32x32xf32> to vector<32x32xf32>
    %cst_417 = arith.constant dense<0.000000e+00> : vector<1x32xf32>
    %507 = tpu.matmul %504, %506, %cst_417 {dimension_numbers = #tpu.dot_dimension_numbers<[1], [0], [0], [1], [0, 0, 1, 1], [], []>} : vector<1x32xf32>, vector<32x32xf32>, vector<1x32xf32> -> vector<1x32xf32>
    %508 = vector.extract_strided_slice %468 {offsets = [7, 0], sizes = [1, 32], strides = [1, 1]} : vector<8x32xf32> to vector<1x32xf32>
    %c7 = arith.constant 7 : index
    %c0_418 = arith.constant 0 : index
    %c0_419 = arith.constant 0 : index
    %509 = vector.load %arg23[%c7, %c0_418, %c0_419] : memref<8x32x32xf32, #tpu.memory_space<vmem>>, vector<1x32x32xf32>
    %510 = vector.shape_cast %509 : vector<1x32x32xf32> to vector<32x32xf32>
    %cst_420 = arith.constant dense<0.000000e+00> : vector<1x32xf32>
    %511 = tpu.matmul %508, %510, %cst_420 {dimension_numbers = #tpu.dot_dimension_numbers<[1], [0], [0], [1], [0, 0, 1, 1], [], []>} : vector<1x32xf32>, vector<32x32xf32>, vector<1x32xf32> -> vector<1x32xf32>
    %512 = arith.addf %483, %487 : vector<1x32xf32>
    %513 = arith.addf %491, %495 : vector<1x32xf32>
    %514 = arith.addf %499, %503 : vector<1x32xf32>
    %515 = arith.addf %507, %511 : vector<1x32xf32>
    %516 = arith.addf %512, %513 : vector<1x32xf32>
    %517 = arith.addf %514, %515 : vector<1x32xf32>
    %518 = arith.addf %516, %517 : vector<1x32xf32>
    %c0_421 = arith.constant 0 : index
    %c0_422 = arith.constant 0 : index
    %519 = vector.load %arg24[%c0_421, %c0_422] : memref<1x32xf32, #tpu.memory_space<vmem>>, vector<1x32xf32>
    %520 = arith.addf %519, %518 : vector<1x32xf32>
    %cst_423 = arith.constant 0.000000e+00 : f32
    %521 = vector.broadcast %cst_423 : f32 to vector<1x32xf32>
    %522 = arith.maximumf %520, %521 : vector<1x32xf32>
    %c0_424 = arith.constant 0 : index
    %c0_425 = arith.constant 0 : index
    %c0_426 = arith.constant 0 : index
    %523 = vector.load %arg27[%c0_424, %c0_425, %c0_426] : memref<1x1x32xf32, #tpu.memory_space<vmem>>, vector<1x1x32xf32>
    %524 = vector.shape_cast %523 : vector<1x1x32xf32> to vector<1x32xf32>
    %525 = vector.shape_cast %522 : vector<1x32xf32> to vector<1x1x32xf32>
    tpu.vector_store %arg27[%c0_424, %c0_425, %c0_426], %525 {strides = array<i32>} : memref<1x1x32xf32, #tpu.memory_space<vmem>>, vector<1x1x32xf32>,
    return
  }
  func.func @transform_0(%arg0: i32) -> (i32, i32, i32) {
    %c0_i32 = arith.constant 0 : i32
    %c0_i32_0 = arith.constant 0 : i32
    %c0_i32_1 = arith.constant 0 : i32
    return %arg0, %c0_i32, %c0_i32_0 : i32, i32, i32
  }
  func.func @transform_1(%arg0: i32) -> (i32, i32, i32) {
    %c0_i32 = arith.constant 0 : i32
    %c0_i32_0 = arith.constant 0 : i32
    %c0_i32_1 = arith.constant 0 : i32
    return %arg0, %c0_i32, %c0_i32_0 : i32, i32, i32
  }
  func.func @transform_2(%arg0: i32) -> (i32, i32) {
    %c0_i32 = arith.constant 0 : i32
    %c0_i32_0 = arith.constant 0 : i32
    %c0_i32_1 = arith.constant 0 : i32
    return %c0_i32, %c0_i32_0 : i32, i32
  }
  func.func @transform_3(%arg0: i32) -> (i32, i32) {
    %c0_i32 = arith.constant 0 : i32
    %c0_i32_0 = arith.constant 0 : i32
    %c0_i32_1 = arith.constant 0 : i32
    return %c0_i32, %c0_i32_0 : i32, i32
  }
  func.func @transform_4(%arg0: i32) -> (i32, i32, i32, i32) {
    %c0_i32 = arith.constant 0 : i32
    %c0_i32_0 = arith.constant 0 : i32
    %c0_i32_1 = arith.constant 0 : i32
    %c0_i32_2 = arith.constant 0 : i32
    %c0_i32_3 = arith.constant 0 : i32
    return %c0_i32, %c0_i32_0, %c0_i32_1, %c0_i32_2 : i32, i32, i32, i32
  }
  func.func @transform_5(%arg0: i32) -> (i32, i32, i32, i32) {
    %c0_i32 = arith.constant 0 : i32
    %c0_i32_0 = arith.constant 0 : i32
    %c0_i32_1 = arith.constant 0 : i32
    %c0_i32_2 = arith.constant 0 : i32
    %c0_i32_3 = arith.constant 0 : i32
    return %c0_i32, %c0_i32_0, %c0_i32_1, %c0_i32_2 : i32, i32, i32, i32
  }
  func.func @transform_6(%arg0: i32) -> (i32, i32, i32, i32) {
    %c0_i32 = arith.constant 0 : i32
    %c0_i32_0 = arith.constant 0 : i32
    %c0_i32_1 = arith.constant 0 : i32
    %c0_i32_2 = arith.constant 0 : i32
    %c0_i32_3 = arith.constant 0 : i32
    return %c0_i32, %c0_i32_0, %c0_i32_1, %c0_i32_2 : i32, i32, i32, i32
  }
  func.func @transform_7(%arg0: i32) -> (i32, i32, i32, i32) {
    %c0_i32 = arith.constant 0 : i32
    %c0_i32_0 = arith.constant 0 : i32
    %c0_i32_1 = arith.constant 0 : i32
    %c0_i32_2 = arith.constant 0 : i32
    %c0_i32_3 = arith.constant 0 : i32
    return %c0_i32, %c0_i32_0, %c0_i32_1, %c0_i32_2 : i32, i32, i32, i32
  }
  func.func @transform_8(%arg0: i32) -> (i32, i32, i32, i32) {
    %c0_i32 = arith.constant 0 : i32
    %c0_i32_0 = arith.constant 0 : i32
    %c0_i32_1 = arith.constant 0 : i32
    %c0_i32_2 = arith.constant 0 : i32
    %c0_i32_3 = arith.constant 0 : i32
    return %c0_i32, %c0_i32_0, %c0_i32_1, %c0_i32_2 : i32, i32, i32, i32
  }
  func.func @transform_9(%arg0: i32) -> (i32, i32, i32, i32) {
    %c0_i32 = arith.constant 0 : i32
    %c0_i32_0 = arith.constant 0 : i32
    %c0_i32_1 = arith.constant 0 : i32
    %c0_i32_2 = arith.constant 0 : i32
    %c0_i32_3 = arith.constant 0 : i32
    return %c0_i32, %c0_i32_0, %c0_i32_1, %c0_i32_2 : i32, i32, i32, i32
  }
  func.func @transform_10(%arg0: i32) -> (i32, i32, i32, i32) {
    %c0_i32 = arith.constant 0 : i32
    %c0_i32_0 = arith.constant 0 : i32
    %c0_i32_1 = arith.constant 0 : i32
    %c0_i32_2 = arith.constant 0 : i32
    %c0_i32_3 = arith.constant 0 : i32
    return %c0_i32, %c0_i32_0, %c0_i32_1, %c0_i32_2 : i32, i32, i32, i32
  }
  func.func @transform_11(%arg0: i32) -> (i32, i32, i32) {
    %c0_i32 = arith.constant 0 : i32
    %c0_i32_0 = arith.constant 0 : i32
    %c0_i32_1 = arith.constant 0 : i32
    %c0_i32_2 = arith.constant 0 : i32
    return %c0_i32, %c0_i32_0, %c0_i32_1 : i32, i32, i32
  }
  func.func @transform_12(%arg0: i32) -> (i32, i32, i32) {
    %c0_i32 = arith.constant 0 : i32
    %c0_i32_0 = arith.constant 0 : i32
    %c0_i32_1 = arith.constant 0 : i32
    %c0_i32_2 = arith.constant 0 : i32
    return %c0_i32, %c0_i32_0, %c0_i32_1 : i32, i32, i32
  }
  func.func @transform_13(%arg0: i32) -> (i32, i32, i32) {
    %c0_i32 = arith.constant 0 : i32
    %c0_i32_0 = arith.constant 0 : i32
    %c0_i32_1 = arith.constant 0 : i32
    %c0_i32_2 = arith.constant 0 : i32
    return %c0_i32, %c0_i32_0, %c0_i32_1 : i32, i32, i32
  }
  func.func @transform_14(%arg0: i32) -> (i32, i32, i32) {
    %c0_i32 = arith.constant 0 : i32
    %c0_i32_0 = arith.constant 0 : i32
    %c0_i32_1 = arith.constant 0 : i32
    %c0_i32_2 = arith.constant 0 : i32
    return %c0_i32, %c0_i32_0, %c0_i32_1 : i32, i32, i32
  }
  func.func @transform_15(%arg0: i32) -> (i32, i32, i32) {
    %c0_i32 = arith.constant 0 : i32
    %c0_i32_0 = arith.constant 0 : i32
    %c0_i32_1 = arith.constant 0 : i32
    %c0_i32_2 = arith.constant 0 : i32
    return %c0_i32, %c0_i32_0, %c0_i32_1 : i32, i32, i32
  }
  func.func @transform_16(%arg0: i32) -> (i32, i32, i32) {
    %c0_i32 = arith.constant 0 : i32
    %c0_i32_0 = arith.constant 0 : i32
    %c0_i32_1 = arith.constant 0 : i32
    %c0_i32_2 = arith.constant 0 : i32
    return %c0_i32, %c0_i32_0, %c0_i32_1 : i32, i32, i32
  }
  func.func @transform_17(%arg0: i32) -> (i32, i32, i32) {
    %c0_i32 = arith.constant 0 : i32
    %c0_i32_0 = arith.constant 0 : i32
    %c0_i32_1 = arith.constant 0 : i32
    %c0_i32_2 = arith.constant 0 : i32
    return %c0_i32, %c0_i32_0, %c0_i32_1 : i32, i32, i32
  }
  func.func @transform_18(%arg0: i32) -> (i32, i32, i32) {
    %c0_i32 = arith.constant 0 : i32
    %c0_i32_0 = arith.constant 0 : i32
    %c0_i32_1 = arith.constant 0 : i32
    %c0_i32_2 = arith.constant 0 : i32
    return %c0_i32, %c0_i32_0, %c0_i32_1 : i32, i32, i32
  }
  func.func @transform_19(%arg0: i32) -> (i32, i32, i32) {
    %c0_i32 = arith.constant 0 : i32
    %c0_i32_0 = arith.constant 0 : i32
    %c0_i32_1 = arith.constant 0 : i32
    %c0_i32_2 = arith.constant 0 : i32
    return %c0_i32, %c0_i32_0, %c0_i32_1 : i32, i32, i32
  }
  func.func @transform_20(%arg0: i32) -> (i32, i32) {
    %c0_i32 = arith.constant 0 : i32
    %c0_i32_0 = arith.constant 0 : i32
    %c0_i32_1 = arith.constant 0 : i32
    return %c0_i32, %c0_i32_0 : i32, i32
  }
  func.func @transform_21(%arg0: i32) -> (i32, i32) {
    %c0_i32 = arith.constant 0 : i32
    %c0_i32_0 = arith.constant 0 : i32
    %c0_i32_1 = arith.constant 0 : i32
    return %c0_i32, %c0_i32_0 : i32, i32
  }
  func.func @transform_22(%arg0: i32) -> (i32, i32, i32) {
    %c0_i32 = arith.constant 0 : i32
    %c0_i32_0 = arith.constant 0 : i32
    %c0_i32_1 = arith.constant 0 : i32
    %c0_i32_2 = arith.constant 0 : i32
    return %c0_i32, %c0_i32_0, %c0_i32_1 : i32, i32, i32
  }
  func.func @transform_23(%arg0: i32) -> (i32, i32) {
    %c0_i32 = arith.constant 0 : i32
    %c0_i32_0 = arith.constant 0 : i32
    %c0_i32_1 = arith.constant 0 : i32
    return %c0_i32, %c0_i32_0 : i32, i32
  }
  func.func @transform_24(%arg0: i32) -> (i32, i32, i32) {
    %c0_i32 = arith.constant 0 : i32
    %c0_i32_0 = arith.constant 0 : i32
    %c0_i32_1 = arith.constant 0 : i32
    return %arg0, %c0_i32, %c0_i32_0 : i32, i32, i32
  }
  func.func @transform_25(%arg0: i32) -> (i32, i32, i32) {
    %c0_i32 = arith.constant 0 : i32
    %c0_i32_0 = arith.constant 0 : i32
    %c0_i32_1 = arith.constant 0 : i32
    return %arg0, %c0_i32, %c0_i32_0 : i32, i32, i32
  }
  func.func @transform_26(%arg0: i32) -> (i32, i32, i32) {
    %c0_i32 = arith.constant 0 : i32
    %c0_i32_0 = arith.constant 0 : i32
    %c0_i32_1 = arith.constant 0 : i32
    return %arg0, %c0_i32, %c0_i32_0 : i32, i32, i32
  }
}

</mosaic_0001>

<bundles_post_ra>
// kernel: custom_transformer_extractor_forward.1
= control target key start
LH: loop header
LB: loop body
LE: loop exit
PB: predicated region body
PF: predicated region fallthrough
CT: control target
= control target key end

     0   :  { %s9200_s0 = inlined_call_operand.vmem [shape: f32[2,8,4], index: 0, kind: input, shape index: {}]   ;;  %s9201_s1 = inlined_call_operand.vmem [shape: f32[2,1,8], index: 1, kind: input, shape index: {}]   ;;  %s9202_s2 = inlined_call_operand.vmem [shape: f32[4,32], index: 2, kind: input, shape index: {}]   ;;  %s9203_s3 = inlined_call_operand.hbm [shape: f32[1,32], index: 3, kind: input, shape index: {}]   ;;  %s9204_s4 = inlined_call_operand.hbm [shape: f32[2,4,32,8], index: 4, kind: input, shape index: {}]   ;;  %s9205_s5 = inlined_call_operand.vmem [shape: f32[2,4,1,8], index: 5, kind: input, shape index: {}]   ;;  %s9206_s6 = inlined_call_operand.hbm [shape: f32[2,4,32,8], index: 6, kind: input, shape index: {}]   ;;  %s9207_s7 = inlined_call_operand.vmem [shape: f32[2,4,1,8], index: 7, kind: input, shape index: {}]   ;;  %s9208_s8 = inlined_call_operand.hbm [shape: f32[2,4,32,8], index: 8, kind: input, shape index: {}]   ;;  %s9209_s9 = inlined_call_operand.vmem [shape: f32[2,4,1,8], index: 9, kind: input, shape index: {}]   ;;  %s9210_s10 = inlined_call_operand.hbm [shape: f32[2,4,8,32], index: 10, kind: input, shape index: {}]   ;;  %s9211_s11 = inlined_call_operand.hbm [shape: f32[2,1,32], index: 11, kind: input, shape index: {}]   ;;  %s9212_s12 = inlined_call_operand.vmem [shape: f32[2,1,32], index: 12, kind: input, shape index: {}, may-alias: {12,18}]   ;;  %s9213_s13 = inlined_call_operand.vmem [shape: f32[2,1,32], index: 13, kind: input, shape index: {}, may-alias: {13,19}]   ;;  %s9214_s14 = inlined_call_operand.vmem [shape: f32[2,32,128], index: 14, kind: input, shape index: {}]   ;;  %s9215_s15 = inlined_call_operand.vmem [shape: f32[2,1,128], index: 15, kind: input, shape index: {}]   ;;  %s9216_s16 = inlined_call_operand.hbm [shape: f32[2,128,32], index: 16, kind: input, shape index: {}]   ;;  %s9217_s17 = inlined_call_operand.vmem [shape: f32[2,1,32], index: 17, kind: input, shape index: {}]   ;;  %s9218_s18 = inlined_call_operand.vmem [shape: f32[2,1,32], index: 18, kind: input, shape index: {}, may-alias: {12,18}]   ;;  %s9219_s19 = inlined_call_operand.vmem [shape: f32[2,1,32], index: 19, kind: input, shape index: {}, may-alias: {13,19}]   ;;  %s9220_s20 = inlined_call_operand.vmem [shape: f32[1,32], index: 20, kind: input, shape index: {}]   ;;  %s9221_s21 = inlined_call_operand.<no memory space> [shape: f32[1,1], index: 21, kind: input, shape index: {}]   ;;  %s9222_s22 = inlined_call_operand.hbm [shape: f32[8,32,32], index: 22, kind: input, shape index: {}]   ;;  %s9223_s23 = inlined_call_operand.vmem [shape: f32[1,32], index: 23, kind: input, shape index: {}]   ;;  %s9224_s24 = inlined_call_operand.vmem [shape: f32[2,8,32], index: 24, kind: output, shape index: {0}]   ;;  %s9225_s25 = inlined_call_operand.hbm [shape: f32[2,1,8], index: 25, kind: output, shape index: {1}]   ;;  %s9226_s26 = inlined_call_operand.hbm [shape: f32[2,1,32], index: 26, kind: output, shape index: {2}]  }
   0x1   :  { %9255 = sst [smem:[#allocation35_spill]] %s9200_s0  ;;  %v32_v0 = vstv %s9221_s21 }
   0x2   :  { %9256 = sst [smem:[#allocation36_spill]] %s9201_s1  ;;  %33 = vst [vmem:[#allocation2] sm:$0x1] %v32_v0 }
   0x3   :  { %9257 = sst [smem:[#allocation37_spill]] %s9202_s2 }
   0x4   :  { %9258 = sst [smem:[#allocation38_spill]] %s9203_s3 }
   0x5   :  { %9259 = sst [smem:[#allocation39_spill]] %s9204_s4 }
   0x6   :  { %9260 = sst [smem:[#allocation40_spill]] %s9205_s5 }
   0x7   :  { %9261 = sst [smem:[#allocation41_spill]] %s9206_s6 }
   0x8   :  { %9262 = sst [smem:[#allocation42_spill]] %s9207_s7 }
   0x9   :  { %9263 = sst [smem:[#allocation43_spill]] %s9208_s8 }
   0xa   :  { %9264 = sst [smem:[#allocation44_spill]] %s9209_s9 }
   0xb   :  { %9265 = sst [smem:[#allocation45_spill]] %s9210_s10 }
   0xc   :  { %9266 = sst [smem:[#allocation46_spill]] %s9211_s11 }
   0xd   :  { %9267 = sst [smem:[#allocation47_spill]] %s9220_s20 }
   0xe   :  { %9268 = sst [smem:[#allocation48_spill]] %s9223_s23 }
   0xf   :  { %9269 = sst [smem:[#allocation49_spill]] %s9224_s24 }
  0x10   :  { %9270 = sst [smem:[#allocation50_spill]] %s9225_s25 }
  0x11   :  { %9271 = sst [smem:[#allocation51_spill]] %s9226_s26 }
  0x12   :  { %34 = vsyncpa [#allocation4], 0 }
  0x13   :  { %35 = vsyncpa [#allocation7], 0 }
  0x14   :  { %36 = vsyncpa [#allocation10], 0 }
  0x15   :  { %37 = vsyncpa [#allocation13], 0 }
  0x16   :  { %38 = vsyncpa [#allocation16], 0 }
  0x17   :  { %39 = vsyncpa [#allocation5], 0 }
  0x18   :  { %41 = vsyncpa [#allocation5 + $0x1], 0 }
  0x19   :  { %42 = vsyncpa [#allocation19], 0 }
  0x1a   :  { %44 = vsyncpa [#allocation19 + $0x1], 0  ;;  %s8296_s7 = smov 0   ;;  %s8298_s28 = smov 0  }
  0x1b   :  { %s8300_s8 = smov 0   ;;  %s8302_s4 = smov 0  }
  0x1c LB: > { %9272 = sst [smem:[#allocation27_spill]] %s8126_s7  ;;  %s8317_s21 = sadd.s32 4294967295, %s8138_s4   ;;  %s8138_s4 = sphi %s8302_s4, %s9326_s4   ;;  %s8134_s8 = sphi %s8300_s8, %s9329_s8   ;;  %s8130_s28 = sphi %s8298_s28, %s9328_s28   ;;  %s8126_s7 = sphi %s8296_s7, %s9327_s7  }
  0x1d   : > { %9273 = sst [smem:[#allocation28_spill]] %s8130_s28  ;;  %s6376_s29 = sadd.s32 4294967294, %s8138_s4  }
  0x1e   : > { %9274 = sst [smem:[#allocation29_spill]] %s8134_s8  ;;  %s8321_s0 = sadd.s32 1, %s8138_s4  }
  0x1f   : > { %9275 = sst [smem:[#allocation30_spill]] %s8138_s4  ;;  %s597_s9 = sadd.s32 1, %s8134_s8 }
  0x20   : > { %9276 = sst [smem:[#allocation31_spill]] %s8321_s0  ;;  %s594_s30 = ssub.s32 %s8138_s4, %s8321_s0 }
  0x21   : > { %p607_p0 = scmp.ne.s32.totalorder %s8134_s8, %s8130_s28  ;;  %p595_p1 = scmp.eq.s32.totalorder %s594_s30, 0 }
  0x22   : > { %p608_p2 = scmp.eq.s32.totalorder %s8317_s21, 1  ;;  %p613_p3 = scmp.ne.s32.totalorder %s8130_s28, %s8126_s7 }
  0x23   : > { %p614_p4 = scmp.eq.s32.totalorder %s6376_s29, 1  ;;  %p6377_p7 = scmp.ge.s32.totalorder %s8138_s4, 1 }
  0x24   : > { %s8332_s2 = scalar_select %p595_p1, %s8134_s8, %s597_s9  }
  0x25   : > { %p8334_p5 = por %p608_p2, %p607_p0  ;;  %p8338_p6 = por %p614_p4, %p613_p3 }
  0x26   : > { %9277 = sst [smem:[#allocation32_spill]] %s8332_s2  ;;  %p647_p8 = scmp.lt.s32.totalorder %s8138_s4, 3 }
  0x27   : > { %s9278_s5 = scalar_select %p8334_p5, 1, 0 }
  0x28   : > { %s9280_s10 = scalar_select %p8338_p6, 1, 0 }
  0x29   : > { %9279 = sst [smem:[#allocation33_spill]] %s9278_s5  ;;  %p9242_p9 = scmp.eq.s32.totalorder %s8317_s21, 0 }
  0x2a   : > { %9281 = sst [smem:[#allocation34_spill]] %s9280_s10  ;;  %p8345_p10 = pnand %p6377_p7, %p647_p8 }
  0x2b   : > { %s8140_s1 = smov [#allocation6]   ;;  %s8141_s29 = smov [#allocation9]  }
  0x2c   : > { %s9282_s6 = scalar_select %p8345_p10, 1, 0 }
  0x2d   : > { %s673_s27 = sshll.u32 %s8140_s1, 4  ;;  %p7661_p11 = pneg %p8345_p10  ;;  %s8351_s27 = int_to_ptr.vmem [resolvable:$true] %s673_s27 }
  0x2e   : > { %s705_s9 = sshll.u32 %s8141_s29, 4  ;;  %s8142_s30 = smov [#allocation12]   ;;  %s8359_s9 = int_to_ptr.vmem [resolvable:$true] %s705_s9 }
  0x2f   : > { %p8355_p12 = pnand %p9242_p9, %p7661_p11  ;;  %s8361_s2 = sshll.u32 %s8142_s30, 4  ;;  %s735_s2 = int_to_ptr.vmem [resolvable:$true] %s8361_s2 }
  0x30   : > { %s9284_s1 = sld [smem:[#allocation39_spill]] }
  0x31   : > { %p8371_p0 = pneg %p8355_p12 }
  0x36   : > { %s7800_s10 = scalar_lea.hbm %s9284_s1, 4096 }
  0x37   : > { %p7801_p13 = scmp.ne.s32.totalorder %s9284_s1, %s7800_s10  ;;  %p7807_p3 = scmp.lt.u32.totalorder %s7800_s10, %s9284_s1 }
  0x39   : > { %p7803_p1 = pnand %p8371_p0, %p7801_p13 }
  0x3b   : > { %p7804_p2 = pneg %p7803_p1 }
  0x3d   : > { %p7809_p4 = pnand %p7807_p3, %p7804_p2 }
  0x3f   : > { %7812 = shalt.err (!%p7809_p4)
}
  0x40   : > { %s7813_s7 = scalar_lea.vmem %s8351_s27, 4096  ;;  %p7821_p9 = scmp.lt.s32.totalorder %s8351_s27, %s8351_s27 }
  0x41   : > { %p7814_p7 = scmp.ne.s32.totalorder %s8351_s27, %s7813_s7  ;;  %p7822_p6 = scmp.lt.s32.totalorder %s7813_s7, %s7813_s7 }
  0x43   : > { %p7816_p8 = pnand %p7814_p7, %p8371_p0  ;;  %p7823_p13 = por %p7822_p6, %p7821_p9 }
  0x45   : > { %p7817_p11 = pneg %p7816_p8 }
  0x47   : > { %p7824_p1 = pnand %p7823_p13, %p7817_p11 }
  0x49   : > { %7827 = shalt.err (!%p7824_p1)
}
  0x4a   : > { %s9249_s8 = smov 128   ;;  %s9251_s4 = smov 8  }
  0x4b   : > { %7667 = dma.hbm_to_vmem [thread:$0]  (!%p8355_p12), %s9284_s1, 4096, %s8351_s27, [#allocation7], %s9249_s8, %s9249_s8, %s9251_s4  }
  0x4c   : > { %s9286_s23 = sld [smem:[#allocation43_spill]] }
  0x52   : > { %s7828_s7 = scalar_lea.hbm %s9286_s23, 4096 }
  0x53   : > { %p7829_p6 = scmp.ne.s32.totalorder %s9286_s23, %s7828_s7  ;;  %p7835_p3 = scmp.lt.u32.totalorder %s7828_s7, %s9286_s23 }
  0x55   : > { %p7831_p9 = pnand %p7829_p6, %p8371_p0 }
  0x57   : > { %p7832_p2 = pneg %p7831_p9 }
  0x59   : > { %p7837_p4 = pnand %p7835_p3, %p7832_p2 }
  0x5b   : > { %7840 = shalt.err (!%p7837_p4)
}
  0x5c   : > { %s7841_s27 = scalar_lea.vmem %s8359_s9, 4096  ;;  %p7849_p13 = scmp.lt.s32.totalorder %s8359_s9, %s8359_s9 }
  0x5d   : > { %p7842_p7 = scmp.ne.s32.totalorder %s8359_s9, %s7841_s27  ;;  %p7850_p1 = scmp.lt.s32.totalorder %s7841_s27, %s7841_s27 }
  0x5f   : > { %p7844_p8 = pnand %p7842_p7, %p8371_p0  ;;  %p7851_p6 = por %p7850_p1, %p7849_p13 }
  0x61   : > { %p7845_p11 = pneg %p7844_p8 }
  0x63   : > { %p7852_p9 = pnand %p7851_p6, %p7845_p11 }
  0x65   : > { %7855 = shalt.err (!%p7852_p9)
}
  0x66   : > { %7673 = dma.hbm_to_vmem [thread:$0]  (!%p8355_p12), %s9286_s23, 4096, %s8359_s9, [#allocation10], %s9249_s8, %s9249_s8, %s9251_s4  }
  0x67   : > { %s9287_s11 = sld [smem:[#allocation46_spill]] }
  0x6d   : > { %s7856_s0 = scalar_lea.hbm %s9287_s11, 32 }
  0x6e   : > { %p7857_p2 = scmp.ne.s32.totalorder %s9287_s11, %s7856_s0  ;;  %p7863_p7 = scmp.lt.u32.totalorder %s7856_s0, %s9287_s11 }
  0x70   : > { %p7859_p3 = pnand %p7857_p2, %p8371_p0 }
  0x72   : > { %p7860_p4 = pneg %p7859_p3 }
  0x74   : > { %p7865_p8 = pnand %p7863_p7, %p7860_p4 }
  0x76   : > { %7868 = shalt.err (!%p7865_p8)
}
  0x77   : > { %s7869_s27 = scalar_lea.vmem %s735_s2, 32  ;;  %p7877_p6 = scmp.lt.s32.totalorder %s735_s2, %s735_s2 }
  0x78   : > { %p7870_p11 = scmp.ne.s32.totalorder %s735_s2, %s7869_s27  ;;  %p7878_p9 = scmp.lt.s32.totalorder %s7869_s27, %s7869_s27 }
  0x7a   : > { %p7872_p13 = pnand %p7870_p11, %p8371_p0  ;;  %p7879_p5 = por %p7878_p9, %p7877_p6 }
  0x7c   : > { %p7873_p1 = pneg %p7872_p13 }
  0x7e   : > { %p7880_p10 = pnand %p7879_p5, %p7873_p1 }
  0x80   : > { %7883 = shalt.err (!%p7880_p10)
}
  0x81   : > { %s8145_s9 = smov 16   ;;  %s8146_s20 = smov 1  }
  0x82   : > { %7679 = dma.hbm_to_vmem [thread:$0]  (!%p8355_p12), %s9287_s11, 32, %s735_s2, [#allocation13], %s8145_s9, %s8145_s9, %s8146_s20  }
  0x83   : > { %s8147_s5 = smov [#allocation3]   ;;  %s8148_s10 = smov [#allocation8]  }
  0x84   : > { %s663_s0 = sshll.u32 %s8147_s5, 4  ;;  %s689_s29 = sshll.u32 %s8148_s10, 4  ;;  %s664_s0 = int_to_ptr.vmem [resolvable:$true] %s663_s0  ;;  %s690_s29 = int_to_ptr.vmem [resolvable:$true] %s689_s29 }
  0x85   : > { %s9288_s27 = sld [smem:[#allocation38_spill]] }
  0x8b   : > { %s7884_s8 = scalar_lea.hbm %s9288_s27, 16 }
  0x8c   : > { %p7885_p5 = scmp.ne.s32.totalorder %s9288_s27, %s7884_s8  ;;  %p7891_p3 = scmp.lt.u32.totalorder %s7884_s8, %s9288_s27 }
  0x8e   : > { %p7887_p10 = pnand %p7885_p5, %p8371_p0 }
  0x90   : > { %p7888_p2 = pneg %p7887_p10 }
  0x92   : > { %p7893_p4 = pnand %p7891_p3, %p7888_p2 }
  0x94   : > { %7896 = shalt.err (!%p7893_p4)
}
  0x95   : > { %s7897_s2 = scalar_lea.vmem %s664_s0, 16  ;;  %s7904_s9 = scalar_lea.vmem %s664_s0, 32 }
  0x96   : > { %p7898_p7 = scmp.ne.s32.totalorder %s664_s0, %s7897_s2  ;;  %p7905_p13 = scmp.lt.s32.totalorder %s664_s0, %s664_s0 }
  0x97   : > { %p7906_p1 = scmp.lt.s32.totalorder %s7904_s9, %s7897_s2 }
  0x98   : > { %p7900_p8 = pnand %p7898_p7, %p8371_p0 }
  0x99   : > { %p7907_p6 = por %p7906_p1, %p7905_p13 }
  0x9a   : > { %p7901_p11 = pneg %p7900_p8 }
  0x9c   : > { %p7908_p9 = pnand %p7907_p6, %p7901_p11 }
  0x9e   : > { %7911 = shalt.err (!%p7908_p9)
}
  0x9f   : > { %7664 = dma.hbm_to_vmem [thread:$0]  (!%p8355_p12), %s9288_s27, 16, %s664_s0, [#allocation4]  }
  0xa0   : > { %s9289_s8 = sld [smem:[#allocation41_spill]] }
  0xa6   : > { %s9290_s20 = smov %s9289_s8  ;;  %s7912_s25 = scalar_lea.hbm %s9289_s8, 4096 }
  0xa7   : > { %p7913_p5 = scmp.ne.s32.totalorder %s9290_s20, %s7912_s25  ;;  %p7919_p3 = scmp.lt.u32.totalorder %s7912_s25, %s9290_s20 }
  0xa9   : > { %p7915_p10 = pnand %p7913_p5, %p8371_p0 }
  0xab   : > { %p7916_p2 = pneg %p7915_p10 }
  0xad   : > { %p7921_p4 = pnand %p7919_p3, %p7916_p2 }
  0xaf   : > { %7924 = shalt.err (!%p7921_p4)
}
  0xb0   : > { %s7925_s7 = scalar_lea.vmem %s690_s29, 4096  ;;  %p7933_p13 = scmp.lt.s32.totalorder %s690_s29, %s690_s29 }
  0xb1   : > { %p7926_p7 = scmp.ne.s32.totalorder %s690_s29, %s7925_s7  ;;  %p7934_p1 = scmp.lt.s32.totalorder %s7925_s7, %s7925_s7 }
  0xb3   : > { %p7928_p8 = pnand %p7926_p7, %p8371_p0  ;;  %p7935_p6 = por %p7934_p1, %p7933_p13 }
  0xb5   : > { %p7929_p11 = pneg %p7928_p8 }
  0xb7   : > { %p7936_p9 = pnand %p7935_p6, %p7929_p11 }
  0xb9   : > { %7939 = shalt.err (!%p7936_p9)
}
  0xba   : > { %s9291_s0 = smov 8   ;;  %s9292_s2 = smov 128  }
  0xbb   : > { %7670 = dma.hbm_to_vmem [thread:$0]  (!%p8355_p12), %s9290_s20, 4096, %s690_s29, [#allocation7], %s9292_s2, %s9292_s2, %s9291_s0  }
  0xbc   : > { %s8149_s4 = smov [#allocation11]   ;;  %s8150_s24 = smov [#allocation14]  }
  0xbd   : > { %s721_s23 = sshll.u32 %s8149_s4, 4  ;;  %s759_s8 = sshll.u32 %s8150_s24, 4  ;;  %s722_s23 = int_to_ptr.vmem [resolvable:$true] %s721_s23  ;;  %s760_s8 = int_to_ptr.vmem [resolvable:$true] %s759_s8 }
  0xbe   : > { %s9293_s5 = sld [smem:[#allocation45_spill]] }
  0xc4   : > { %s7940_s10 = scalar_lea.hbm %s9293_s5, 1024 }
  0xc5   : > { %p7941_p5 = scmp.ne.s32.totalorder %s9293_s5, %s7940_s10  ;;  %p7947_p3 = scmp.lt.u32.totalorder %s7940_s10, %s9293_s5 }
  0xc7   : > { %p7943_p10 = pnand %p7941_p5, %p8371_p0 }
  0xc9   : > { %p7944_p2 = pneg %p7943_p10 }
  0xcb   : > { %p7949_p4 = pnand %p7947_p3, %p7944_p2 }
  0xcd   : > { %7952 = shalt.err (!%p7949_p4)
}
  0xce   : > { %s7953_s29 = scalar_lea.vmem %s722_s23, 1024  ;;  %p7961_p13 = scmp.lt.s32.totalorder %s722_s23, %s722_s23 }
  0xcf   : > { %p7954_p7 = scmp.ne.s32.totalorder %s722_s23, %s7953_s29  ;;  %p7962_p1 = scmp.lt.s32.totalorder %s7953_s29, %s7953_s29 }
  0xd1   : > { %p7956_p8 = pnand %p7954_p7, %p8371_p0  ;;  %p7963_p6 = por %p7962_p1, %p7961_p13 }
  0xd3   : > { %p7957_p11 = pneg %p7956_p8 }
  0xd5   : > { %p7964_p9 = pnand %p7963_p6, %p7957_p11 }
  0xd7   : > { %7967 = shalt.err (!%p7964_p9)
}
  0xd8   : > { %7676 = dma.hbm_to_vmem [thread:$0]  (!%p8355_p12), %s9293_s5, 1024, %s722_s23, [#allocation10], %s9292_s2, %s9292_s2, %s9291_s0  }
  0xd9   : > { %s7968_s25 = scalar_lea.hbm %s9216_s16, 4096 }
  0xda   : > { %p7969_p5 = scmp.ne.s32.totalorder %s9216_s16, %s7968_s25  ;;  %p7975_p3 = scmp.lt.u32.totalorder %s7968_s25, %s9216_s16 }
  0xdc   : > { %p7971_p10 = pnand %p7969_p5, %p8371_p0 }
  0xde   : > { %p7972_p2 = pneg %p7971_p10 }
  0xe0   : > { %p7977_p4 = pnand %p7975_p3, %p7972_p2 }
  0xe2   : > { %7980 = shalt.err (!%p7977_p4)
}
  0xe3   : > { %s7981_s9 = scalar_lea.vmem %s760_s8, 4096  ;;  %p7989_p13 = scmp.lt.s32.totalorder %s760_s8, %s760_s8 }
  0xe4   : > { %p7982_p7 = scmp.ne.s32.totalorder %s760_s8, %s7981_s9  ;;  %p7990_p1 = scmp.lt.s32.totalorder %s7981_s9, %s7981_s9 }
  0xe6   : > { %p7984_p8 = pnand %p7982_p7, %p8371_p0  ;;  %p7991_p6 = por %p7990_p1, %p7989_p13 }
  0xe8   : > { %p7985_p11 = pneg %p7984_p8 }
  0xea   : > { %p7992_p9 = pnand %p7991_p6, %p7985_p11 }
  0xec   : > { %7995 = shalt.err (!%p7992_p9)
}
  0xed   : > { %7682 = dma.hbm_to_vmem [thread:$0]  (!%p8355_p12), %s9216_s16, 4096, %s760_s8, [#allocation13], %s9292_s2, %s9292_s2, %s9291_s0  }
  0xee   : > { %s8151_s11 = smov [#allocation15]   ;;  %s7996_s25 = scalar_lea.hbm %s9222_s22, 4096 }
  0xef   : > { %s787_s1 = sshll.u32 %s8151_s11, 4  ;;  %p7997_p5 = scmp.ne.s32.totalorder %s9222_s22, %s7996_s25  ;;  %s788_s1 = int_to_ptr.vmem [resolvable:$true] %s787_s1 }
  0xf0   : > { %p8003_p3 = scmp.lt.u32.totalorder %s7996_s25, %s9222_s22 }
  0xf1   : > { %p7999_p10 = pnand %p7997_p5, %p8371_p0 }
  0xf3   : > { %p8000_p2 = pneg %p7999_p10 }
  0xf5   : > { %p8005_p4 = pnand %p8003_p3, %p8000_p2 }
  0xf7   : > { %8008 = shalt.err (!%p8005_p4)
}
  0xf8   : > { %s8009_s8 = scalar_lea.vmem %s788_s1, 4096  ;;  %p8017_p13 = scmp.lt.s32.totalorder %s788_s1, %s788_s1 }
  0xf9   : > { %p8010_p7 = scmp.ne.s32.totalorder %s788_s1, %s8009_s8  ;;  %p8018_p1 = scmp.lt.s32.totalorder %s8009_s8, %s8009_s8 }
  0xfb   : > { %p8012_p8 = pnand %p8010_p7, %p8371_p0  ;;  %p8019_p6 = por %p8018_p1, %p8017_p13 }
  0xfd   : > { %p8013_p11 = pneg %p8012_p8 }
  0xff   : > { %p8020_p9 = pnand %p8019_p6, %p8013_p11 }
 0x101   : > { %8023 = shalt.err (!%p8020_p9)
}
 0x102   : > { %7685 = dma.hbm_to_vmem [thread:$0]  (!%p8355_p12), %s9222_s22, 4096, %s788_s1, [#allocation16], %s9292_s2, %s9292_s2, %s9291_s0  }
 0x103   : > { %p9294_p5 = scmp.ne.s32.totalorder %s9282_s6, 0 }
 0x104   : > { %p9295_p0 = scmp.eq.s32.totalorder (!%p9294_p5), %s8317_s21, 0 }
 0x105   : > { %819 = sbr.rel (%p9294_p5) target bundleno = 10633 (0x2989), region = 116 }
 0x10c   : > { %8097 = dma.done.wait (%p9295_p0), [#allocation4], 16   ;;  %p9296_p10 = pmov %p9295_p0 }
 0x10d   : > { %p9297_p2 = pmov %p9295_p0 }
 0x10e   : > { %8099 = vsyncadd (%p9296_p10), [#allocation4], 4294967280 }
 0x10f   : > { %8101 = dma.done.wait (%p9297_p2), [#allocation7], 8192   ;;  %p9298_p3 = pmov %p9295_p0 }
 0x110   : > { %p9299_p4 = pmov %p9295_p0 }
 0x111   : > { %8103 = vsyncadd (%p9298_p3), [#allocation7], 4294959104 }
 0x112   : > { %8105 = dma.done.wait (%p9299_p4), [#allocation10], 5120   ;;  %p9300_p12 = pmov %p9295_p0 }
 0x113   : > { %p9301_p7 = pmov %p9295_p0 }
 0x114   : > { %8107 = vsyncadd (%p9300_p12), [#allocation10], 4294962176 }
 0x115   : > { %8109 = dma.done.wait (%p9301_p7), [#allocation13], 4128   ;;  %p9302_p8 = pmov %p9295_p0 }
 0x116   : > { %p9303_p11 = pmov %p9295_p0 }
 0x117   : > { %8111 = vsyncadd (%p9302_p8), [#allocation13], 4294963168 }
 0x118   : > { %8113 = dma.done.wait (%p9303_p11), [#allocation16], 4096   ;;  %p9304_p13 = pmov %p9295_p0 }
 0x119   : > { %p926_p1 = scmp.lt.s32.totalorder %s8317_s21, 1  ;;  %v8152_v1 = vmov 0.0   ;;  %vm8153_vm0 = vmmov 0   ;;  %v8154_v2 = vmov 0.0|0.0   ;;  %vm957_vm1 = vcmask 1043456   ;;  %s9305_s2 = sld [smem:[#allocation35_spill]] }
 0x11a   : > { %8115 = vsyncadd (%p9304_p13), [#allocation16], 4294963200  ;;  %6799 = vmatprep.subr.mxu1 %v8152_v1  ;;  %6801 = vmatprep.mubr.msk.f32.mxu1 %vm8153_vm0, %v8152_v1  ;;  %vm953_vm2 = vcmask 31744   ;;  %s9306_s4 = sld [smem:[#allocation37_spill]]  ;;  %v1031_v5 = vld [vmem:[#allocation6] sm:$0xff]  ;;  %v1032_v6 = vld [vmem:[#allocation6 + $0x8] sm:$0xff] }
 0x11b   : > { %s8569_s26 = scalar_select %p926_p1, %s8317_s21, 1  ;;  %7379 = vmatprep.subr.bf16.mxu0 %v8154_v2  ;;  %6823 = vmatprep.mubr.msk.f32.mxu0 %vm8153_vm0, %v8152_v1  ;;  %v1116_v7 = vld [vmem:[#allocation8] sm:$0xff]  ;;  %v7374_v8 = vpack.c.bf16 %v1032_v6, %v1031_v5  ;;  %v1117_v9 = vld [vmem:[#allocation8 + $0x8] sm:$0xff]  ;;  %v1033_v10 = vld [vmem:[#allocation6 + $0x10] sm:$0xff]  ;;  %vm1042_vm3 = vcmask 261120   ;;  %vm1278_vm4 = vcmask 64512  }
 0x11c   : > { %v1034_v11 = vld [vmem:[#allocation6 + $0x18] sm:$0xff]  ;;  %v7380_v12 = vpack.c.bf16 %v1117_v9, %v1116_v7  ;;  %v1118_v14 = vld [vmem:[#allocation8 + $0x10] sm:$0xff]  ;;  %v1197_v17 = vld [vmem:[#allocation9] sm:$0xff]  ;;  %s9307_s28 = sld [smem:[#allocation42_spill]]  ;;  %s9309_s8 = sld [smem:[#allocation40_spill]]  ;;  %vm5514_vm5 = vcmask 57344  }
 0x11d   : > { %s6396_s6 = sshll.u32 %s8569_s26, 3  ;;  %v7377_v13 = vpack.c.bf16 %v1034_v11, %v1033_v10  ;;  %v1119_v15 = vld [vmem:[#allocation8 + $0x18] sm:$0xff]  ;;  %v1198_v18 = vld [vmem:[#allocation9 + $0x8] sm:$0xff]  ;;  %v1199_v24 = vld [vmem:[#allocation9 + $0x10] sm:$0xff]  ;;  %s9311_s0 = sld [smem:[#allocation44_spill]] }
 0x11e   : > { %7381 = vmatpush3.bf16.msra.mxu0 %v7380_v12  ;;  %v7383_v16 = vpack.c.bf16 %v1119_v15, %v1118_v14  ;;  %v6399_v19 = vld [vmem:[#allocation3] ss:$0 sm:$0xff]  ;;  %v7386_v21 = vpack.c.bf16 %v1198_v18, %v1197_v17  ;;  %v1443_v27 = vld [vmem:[#allocation6 + $0x20] sm:$0xff]  ;;  %v1444_v28 = vld [vmem:[#allocation6 + $0x28] sm:$0xff]  ;;  %s9312_s11 = sld [smem:[#allocation36_spill]]  ;;  %s9316_s25 = sld [smem:[#allocation33_spill]] }
 0x11f   : > { %s929_s29 = scalar_lea.vmem %s9305_s2, %s6396_s6  ;;  %7382 = vmatprep.subr.bf16.mxu0 %v8154_v2  ;;  %v1200_v25 = vld [vmem:[#allocation9 + $0x18] sm:$0xff]  ;;  %v7392_v29 = vpack.c.bf16 %v1444_v28, %v1443_v27  ;;  %v1445_v30 = vld [vmem:[#allocation6 + $0x30] sm:$0xff]  ;;  %v1609_v33 = vld [vmem:[#allocation9 + $0x20] sm:$0xff]  ;;  %s9313_s2 = sld [smem:[#allocation49_spill]] }
 0x120   : > { %v945_v3 = vld [vmem:[%s9306_s4] sm:$0xf]  ;;  %v7389_v26 = vpack.c.bf16 %v1200_v25, %v1199_v24  ;;  %v1610_v34 = vld [vmem:[#allocation9 + $0x28] sm:$0xff]  ;;  %v1611_v36 = vld [vmem:[#allocation9 + $0x30] sm:$0xff] }
 0x121   : > { %v937_v4 = vld [vmem:[%s929_s29] sm:$0xff]  ;;  %6800 = vmatpush3.msk.msra.mxu1 %vm957_vm1, %v945_v3  ;;  %v7404_v35 = vpack.c.bf16 %v1610_v34, %v1609_v33  ;;  %v1527_v6 = vld [vmem:[#allocation8 + $0x28] sm:$0xff]  ;;  %v1528_v10 = vld [vmem:[#allocation8 + $0x30] sm:$0xff] }
 0x122   : > { %6802 = vmatmul.mubr.msk.f32.vlgmr.msra.gmra.mrb[0].mxu1 %vm953_vm2, %v937_v4  ;;  %7373 = vmatprep.subr.bf16.mxu1 %v8154_v2  ;;  %v1446_v31 = vld [vmem:[#allocation6 + $0x38] sm:$0xff]  ;;  %s9308_s10 = smov %s9307_s28  ;;  %s9310_s9 = smov %s9309_s8  ;;  %v1526_v5 = vld [vmem:[#allocation8 + $0x20] sm:$0xff]  ;;  %v1854_v34 = vld [vmem:[#allocation11 + $0x8] sm:$0xff] }
 0x123   : > { %6812 = vmatprep.mubr.msk.f32.mxu1 %vm8153_vm0, %v8152_v1  ;;  %7375 = vmatpush3.bf16.msra.mxu1 %v7374_v8  ;;  %v7395_v32 = vpack.c.bf16 %v1446_v31, %v1445_v30  ;;  %v1612_v37 = vld [vmem:[#allocation9 + $0x38] sm:$0xff]  ;;  %v7398_v8 = vpack.c.bf16 %v1527_v6, %v1526_v5 }
 0x124   : > { %7376 = vmatprep.subr.bf16.mxu1 %v8154_v2  ;;  %7384 = vmatpush3.bf16.msra.mxu0 %v7383_v16  ;;  %v7407_v38 = vpack.c.bf16 %v1612_v37, %v1611_v36  ;;  %v6404_v39 = vld [vmem:[%s9307_s28] ss:$0 sm:$0xff]  ;;  %s8637_s1 = scalar_lea.vmem %s9312_s11, %s8569_s26  ;;  %v6415_v15 = vld [vmem:[%s9308_s10 + $0x1] ss:$0 sm:$0xff]  ;;  %s9314_s26 = sld [smem:[#allocation47_spill]] }
 0x125   : > { %6837 = vmatprep.subr.mxu0 %v8152_v1  ;;  %v6402_v42 = vld [vmem:[%s9309_s8] ss:$0 sm:$0xff]  ;;  %v6412_v17 = vld [vmem:[%s9310_s9 + $0x1] ss:$0 sm:$0xff]  ;;  %s936_s29 = scalar_lea.vmem %s9313_s2, %s6396_s6  ;;  %s9315_s6 = sld [smem:[#allocation28_spill]] }
 0x126   : > { %v6406_v47 = vld [vmem:[%s9311_s0] ss:$0 sm:$0xff]  ;;  %s6539_s28 = sshll.u32 %s8317_s21, 4  ;;  %p9318_p9 = scmp.ne.s32.totalorder %s9316_s25, 0 }
 0x127   : > { %7378 = vmatpush3.bf16.msra.mxu1 %v7377_v13  ;;  %v8640_v55 = vld [vmem:[%s8637_s1] ss:$0 sm:$0xff]  ;;  %s8156_s11 = smov [#allocation17]  }
 0x128   : > { %7385 = vmatprep.subr.bf16.mxu1 %v8154_v2  ;;  %v1529_v11 = vld [vmem:[#allocation8 + $0x38] sm:$0xff]  ;;  %s8028_s4 = sshll.u32 %s8156_s11, 4  ;;  %s8029_s4 = int_to_ptr.vmem [resolvable:$false] %s8028_s4 }
 0x129   : > { %v7401_v12 = vpack.c.bf16 %v1529_v11, %v1528_v10  ;;  %v6432_v11 = vld [vmem:[%s9311_s0 + $0x2] ss:$0 sm:$0xff] }
 0x12b   : > { %s9113_s24 = sand.u32 1, %s9315_s6  }
 0x12c   : > { %s919_s30 = scalar_lea.vmem [#allocation17], %s9113_s24  ;;  %s6149_s2 = scalar_lea.sflag [#allocation5], %s9113_s24 }
 0x12d   : > { %s6168_s7 = sshll.u32 %s919_s30, 4  ;;  %s9124_s7 = int_to_ptr.vmem [resolvable:$true] %s6168_s7 }
 0x12e   : > { %p8031_p10 = scmp.lt.s32.totalorder %s9124_s7, %s8029_s4 }
 0x1f5   : > { %v1027_v20 = vpop.f32.mrb[0].mxu1 }
 0x1f6   : > { %v8590_v22 = vadd.f32 %v6399_v19, %v1027_v20  ;;  %v6803_v23 = vpop.f32.mrb[1].mxu1  ;;  %v6418_v20 = vld [vmem:[%s9311_s0 + $0x1] ss:$0 sm:$0xff] }
 0x1f8   : > { %6813 = vmatmul.mubr.msk.f32.vlgmr.msra.gmra.mrb[2].mxu1 %vm1042_vm3, %v8590_v22  ;;  %6824 = vmatmul.mubr.msk.f32.vlgmr.msra.gmra.mrb[0].mxu0 %vm1042_vm3, %v8590_v22 }
 0x1f9   : > { %7387 = vmatpush3.bf16.msra.mxu1 %v7386_v21  ;;  %6834 = vmatprep.mubr.msk.f32.mxu1 %vm8153_vm0, %v8152_v1 }
 0x1fa   : > { %7388 = vmatprep.subr.bf16.mxu1 %v8154_v2  ;;  %6839 = vmatprep.mubr.msk.f32.mxu0 %vm8153_vm0, %v8152_v1 }
 0x1fd   : > { %7390 = vmatpush3.bf16.msra.mxu1 %v7389_v26 }
 0x1fe   : > { %7391 = vmatprep.subr.bf16.mxu1 %v8154_v2 }
 0x200   : > { %6835 = vmatmul.mubr.msk.f32.vlgmr.msra.gmra.mrb[4].mxu1 %vm1042_vm3, %v8590_v22 }
 0x201   : > { %7393 = vmatpush3.bf16.msra.mxu1 %v7392_v29  ;;  %6855 = vmatprep.mubr.msk.f32.mxu1 %vm8153_vm0, %v8152_v1 }
 0x202   : > { %7394 = vmatprep.subr.bf16.mxu1 %v8154_v2 }
 0x205   : > { %7396 = vmatpush3.bf16.msra.mxu1 %v7395_v32 }
 0x206   : > { %7403 = vmatprep.subr.bf16.mxu1 %v8154_v2 }
 0x208   : > { %6856 = vmatmul.mubr.msk.f32.vlgmr.msra.gmra.mrb[6].mxu1 %vm1042_vm3, %v8590_v22 }
 0x209   : > { %7405 = vmatpush3.bf16.msra.mxu1 %v7404_v35  ;;  %6877 = vmatprep.mubr.msk.f32.mxu1 %vm8153_vm0, %v8152_v1 }
 0x20a   : > { %7406 = vmatprep.subr.bf16.mxu1 %v8154_v2 }
 0x20d   : > { %7408 = vmatpush3.bf16.msra.mxu1 %v7407_v38  ;;  %v1441_v38 = vld [vmem:[#allocation11] sm:$0xff] }
 0x20e   : > { %6890 = vmatprep.subr.mxu1 %v8152_v1 }
 0x210   : > { %6878 = vmatmul.mubr.msk.f32.vlgmr.msra.gmra.mrb[8].mxu1 %vm1042_vm3, %v8590_v22 }
 0x211   : > { %6892 = vmatprep.mubr.msk.f32.mxu1 %vm8153_vm0, %v8152_v1  ;;  %6891 = vmatpush3.msra.mxu1 %v1854_v34  ;;  %v2492_v34 = vld [vmem:[#allocation6 + $0x78] sm:$0xff] }
 0x212   : > { %7409 = vmatprep.subr.bf16.mxu1 %v8154_v2 }
 0x2cb   : > { %v1112_v40 = vpop.f32.mrb[2].mxu1  ;;  %v1193_v41 = vpop.f32.mrb[0].mxu0 }
 0x2cc   : > { %v1194_v43 = vadd.f32 %v6404_v39, %v1193_v41  ;;  %v6814_v44 = vpop.f32.mrb[3].mxu1  ;;  %v6825_v45 = vpop.f32.mrb[1].mxu0  ;;  %v1113_v46 = vadd.f32 %v6402_v42, %v1112_v40  ;;  %v2085_v39 = vld [vmem:[#allocation8 + $0x40] sm:$0xff]  ;;  %v2086_v40 = vld [vmem:[#allocation8 + $0x48] sm:$0xff]  ;;  %v2087_v42 = vld [vmem:[#allocation8 + $0x50] sm:$0xff] }
 0x2cd   : > { %v7416_v41 = vpack.c.bf16 %v2086_v40, %v2085_v39  ;;  %v2002_v45 = vld [vmem:[#allocation6 + $0x40] sm:$0xff]  ;;  %v2657_v39 = vld [vmem:[#allocation9 + $0x70] sm:$0xff]  ;;  %v2658_v40 = vld [vmem:[#allocation9 + $0x78] sm:$0xff] }
 0x2ce   : > { %6838 = vmatpush3.xpose.msk.msra.mxu0 %vm1278_vm4, %v1194_v43  ;;  %v2088_v43 = vld [vmem:[#allocation8 + $0x58] sm:$0xff] }
 0x2cf   : > { %6842 = vmatprep.subr.mxu0 %v8152_v1  ;;  %v7419_v44 = vpack.c.bf16 %v2088_v43, %v2087_v42  ;;  %v2572_v42 = vld [vmem:[#allocation8 + $0x60] sm:$0xff]  ;;  %v2573_v43 = vld [vmem:[#allocation8 + $0x68] sm:$0xff] }
 0x2d1   : > { %6840 = vmatmul.mubr.msk.f32.vlgmr.msra.gmra.mrb[2].mxu0 %vm1278_vm4, %v1113_v46  ;;  %v2003_v46 = vld [vmem:[#allocation6 + $0x48] sm:$0xff] }
 0x2d2   : > { %6844 = vmatprep.mubr.msk.f32.mxu0 %vm8153_vm0, %v8152_v1 }
 0x2d3   : > { %v1274_v48 = vpop.f32.mrb[4].mxu1 }
 0x2d4   : > { %v1275_v49 = vadd.f32 %v6406_v47, %v1274_v48  ;;  %v6836_v50 = vpop.f32.mrb[5].mxu1  ;;  %v7410_v47 = vpack.c.bf16 %v2003_v46, %v2002_v45  ;;  %v2004_v48 = vld [vmem:[#allocation6 + $0x50] sm:$0xff]  ;;  %v2575_v46 = vld [vmem:[#allocation8 + $0x78] sm:$0xff] }
 0x2d5   : > { %v2574_v45 = vld [vmem:[#allocation8 + $0x70] sm:$0xff] }
 0x2d6   : > { %6843 = vmatpush3.msra.mxu0 %v1275_v49  ;;  %v2005_v49 = vld [vmem:[#allocation6 + $0x58] sm:$0xff] }
 0x2d7   : > { %7397 = vmatprep.subr.bf16.mxu0 %v8154_v2 }
 0x2db   : > { %v1521_v51 = vpop.f32.mrb[6].mxu1 }
 0x2dc   : > { %v6857_v52 = vpop.f32.mrb[7].mxu1  ;;  %v1522_v21 = vadd.f32 %v6412_v17, %v1521_v51 }
 0x2dd   : > { %v7413_v52 = vpack.c.bf16 %v2005_v49, %v2004_v48  ;;  %v7437_v49 = vpack.c.bf16 %v2575_v46, %v2574_v45  ;;  %v3104_v45 = vld [vmem:[#allocation14 + $0x28] sm:$0xff] }
 0x2e3   : > { %v1687_v53 = vpop.f32.mrb[8].mxu1 }
 0x2e4   : > { %v6879_v54 = vpop.f32.mrb[9].mxu1  ;;  %v1688_v23 = vadd.f32 %v6418_v20, %v1687_v53  ;;  %v2168_v53 = vld [vmem:[#allocation9 + $0x40] sm:$0xff] }
 0x2e5   : > { %v2169_v54 = vld [vmem:[#allocation9 + $0x48] sm:$0xff] }
 0x3a4   : > { %v1351_v56 = vpop.f32.mrb[2].mxu0 }
 0x3a5   : > { %v1355_v57 = vmul.f32 0.35355338, %v1351_v56  ;;  %v6841_v58 = vpop.f32.mrb[3].mxu0 }
 0x3a6   : > { %v7422_v58 = vpack.c.bf16 %v2169_v54, %v2168_v53 }
 0x3a7   : > { %v1356_v59 = vadd.f32 %v8640_v55, %v1355_v57 }
 0x3a9   : > { %v1357_v60 = vsel %vm1278_vm4, %v1356_v59, -inf }
 0x3aa   : > { %1358 = vmax.xlane.f32.xlu0 %v1357_v60  ;;  %v2171_v60 = vld [vmem:[#allocation9 + $0x58] sm:$0xff] }
 0x437   : > { %v1359_v61 = vpop.xlane.xlu0 %1358 }
 0x438   : > { %v1360_v62 = vsub.f32 %v1356_v59, %v1359_v61  ;;  %v2170_v59 = vld [vmem:[#allocation9 + $0x50] sm:$0xff]  ;;  %v6429_v61 = vld [vmem:[%s9308_s10 + $0x2] ss:$0 sm:$0xff] }
 0x43a   : > { %v1361_v63 = vmul.f32 1.442695, %v1360_v62  ;;  %v7425_v62 = vpack.c.bf16 %v2171_v60, %v2170_v59  ;;  %v6439_v60 = vld [vmem:[%s9310_s9 + $0x3] ss:$0 sm:$0xff] }
 0x43c   : > { %7759 = vpow2.f32 %v1361_v63 }
 0x446   : > { %v7760_v0 = vpop.eup %7759 }
 0x447   : > { %v1363_v3 = vsel %vm1278_vm4, %v7760_v0, 0.0 }
 0x448   : > { %1364 = vadd.xlane.f32.xlu0 %v1363_v3 }
 0x4d5   : > { %v1365_v4 = vpop.xlane.xlu0 %1364 }
 0x4d6   : > { %7761 = vrcp.f32 %v1365_v4 }
 0x4e0   : > { %v7762_v7 = vpop.eup %7761 }
 0x4e1   : > { %v1367_v9 = vmul.f32 %v7762_v7, %v7760_v0  ;;  %v6426_v7 = vld [vmem:[%s9310_s9 + $0x2] ss:$0 sm:$0xff] }
 0x4e3   : > { %6845 = vmatmul.mubr.msk.f32.vlgmr.msra.gmra.mrb[4].mxu0 %vm1278_vm4, %v1367_v9 }
 0x4e4   : > { %7399 = vmatpush3.bf16.msra.mxu0 %v7398_v8  ;;  %6866 = vmatprep.mubr.msk.f32.mxu0 %vm8153_vm0, %v8152_v1 }
 0x4e5   : > { %7400 = vmatprep.subr.bf16.mxu0 %v8154_v2 }
 0x4e8   : > { %7402 = vmatpush3.bf16.msra.mxu0 %v7401_v12 }
 0x4e9   : > { %6880 = vmatprep.subr.mxu0 %v8152_v1 }
 0x4eb   : > { %6867 = vmatmul.mubr.msk.f32.vlgmr.msra.gmra.mrb[6].mxu0 %vm1042_vm3, %v8590_v22 }
 0x4ec   : > { %6882 = vmatprep.mubr.msk.f32.mxu0 %vm8153_vm0, %v8152_v1 }
 0x5b6   : > { %v1437_v13 = vpop.f32.mrb[4].mxu0 }
 0x5b7   : > { %v6846_v14 = vpop.f32.mrb[5].mxu0 }
 0x5be   : > { %v1604_v16 = vpop.f32.mrb[6].mxu0 }
 0x5bf   : > { %v1605_v18 = vadd.f32 %v6415_v15, %v1604_v16  ;;  %v6868_v19 = vpop.f32.mrb[7].mxu0 }
 0x5c1   : > { %6881 = vmatpush3.xpose.msk.msra.mxu0 %vm1278_vm4, %v1605_v18 }
 0x5c2   : > { %6885 = vmatprep.subr.mxu0 %v8152_v1 }
 0x5c4   : > { %6883 = vmatmul.mubr.msk.f32.vlgmr.msra.gmra.mrb[8].mxu0 %vm1278_vm4, %v1522_v21 }
 0x5c5   : > { %6886 = vmatpush3.msra.mxu0 %v1688_v23  ;;  %6887 = vmatprep.mubr.msk.f32.mxu0 %vm8153_vm0, %v8152_v1 }
 0x5c6   : > { %6895 = vmatprep.subr.mxu0 %v8152_v1 }
 0x697   : > { %v1763_v24 = vpop.f32.mrb[8].mxu0 }
 0x698   : > { %v1767_v25 = vmul.f32 0.35355338, %v1763_v24  ;;  %v6884_v26 = vpop.f32.mrb[9].mxu0 }
 0x699   : > { %v2413_v26 = vld [vmem:[#allocation11 + $0x10] sm:$0xff] }
 0x69a   : > { %v1768_v27 = vadd.f32 %v8640_v55, %v1767_v25 }
 0x69c   : > { %v1769_v28 = vsel %vm1278_vm4, %v1768_v27, -inf }
 0x69d   : > { %1770 = vmax.xlane.f32.xlu1 %v1769_v28  ;;  %v2489_v28 = vld [vmem:[#allocation6 + $0x60] sm:$0xff] }
 0x72a   : > { %v1771_v29 = vpop.xlane.xlu1 %1770 }
 0x72b   : > { %v1772_v30 = vsub.f32 %v1768_v27, %v1771_v29  ;;  %v2490_v29 = vld [vmem:[#allocation6 + $0x68] sm:$0xff] }
 0x72d   : > { %v1773_v31 = vmul.f32 1.442695, %v1772_v30 }
 0x72f   : > { %7763 = vpow2.f32 %v1773_v31  ;;  %v7428_v31 = vpack.c.bf16 %v2490_v29, %v2489_v28 }
 0x739   : > { %v7764_v32 = vpop.eup %7763 }
 0x73a   : > { %v1775_v33 = vsel %vm1278_vm4, %v7764_v32, 0.0 }
 0x73b   : > { %1776 = vadd.xlane.f32.xlu1 %v1775_v33  ;;  %v2491_v33 = vld [vmem:[#allocation6 + $0x70] sm:$0xff] }
 0x7c8   : > { %v1777_v35 = vpop.xlane.xlu1 %1776 }
 0x7c9   : > { %7765 = vrcp.f32 %v1777_v35  ;;  %v7431_v35 = vpack.c.bf16 %v2492_v34, %v2491_v33  ;;  %v3014_v33 = vld [vmem:[%s9214_s14] sm:$0xff]  ;;  %v3015_v34 = vld [vmem:[%s9214_s14 + $0x8] sm:$0xff] }
 0x7d3   : > { %v7766_v36 = vpop.eup %7765 }
 0x7d4   : > { %v1779_v37 = vmul.f32 %v7766_v36, %v7764_v32  ;;  %v2655_v36 = vld [vmem:[#allocation9 + $0x60] sm:$0xff] }
 0x7d6   : > { %6888 = vmatmul.mubr.msk.f32.vlgmr.msra.gmra.mrb[10].mxu0 %vm1278_vm4, %v1779_v37  ;;  %v2656_v37 = vld [vmem:[#allocation9 + $0x68] sm:$0xff] }
 0x7d7   : > { %6896 = vmatpush3.msra.mxu0 %v1441_v38  ;;  %6897 = vmatprep.mubr.msk.f32.mxu0 %vm8153_vm0, %v8152_v1  ;;  %v7440_v38 = vpack.c.bf16 %v2656_v37, %v2655_v36  ;;  %v3017_v36 = vld [vmem:[%s9214_s14 + $0x18] sm:$0xff] }
 0x7d8   : > { %7415 = vmatprep.subr.bf16.mxu0 %v8154_v2 }
 0x7da   : > { %6898 = vmatmul.mubr.msk.f32.vlgmr.msra.gmra.mrb[12].mxu0 %vm1278_vm4, %v1437_v13 }
 0x7db   : > { %7417 = vmatpush3.bf16.msra.mxu0 %v7416_v41  ;;  %6919 = vmatprep.mubr.msk.f32.mxu0 %vm8153_vm0, %v8152_v1  ;;  %v7443_v41 = vpack.c.bf16 %v2658_v40, %v2657_v39  ;;  %v3100_v39 = vld [vmem:[#allocation14 + $0x8] sm:$0xff]  ;;  %v3101_v40 = vld [vmem:[#allocation14 + $0x10] sm:$0xff] }
 0x7dc   : > { %7418 = vmatprep.subr.bf16.mxu0 %v8154_v2 }
 0x7df   : > { %7420 = vmatpush3.bf16.msra.mxu0 %v7419_v44  ;;  %v7434_v44 = vpack.c.bf16 %v2573_v43, %v2572_v42  ;;  %v3102_v42 = vld [vmem:[#allocation14 + $0x18] sm:$0xff] }
 0x7e0   : > { %6933 = vmatprep.subr.mxu0 %v8152_v1  ;;  %v7455_v43 = vpack.c.bf16 %v3102_v42, %v3101_v40  ;;  %v6458_v40 = vld [vmem:[%s9219_s19] ss:$0 sm:$0xff] }
 0x7e2   : > { %6920 = vmatmul.mubr.msk.f32.vlgmr.msra.gmra.mrb[14].mxu0 %vm1042_vm3, %v8590_v22 }
 0x7e3   : > { %6935 = vmatprep.mubr.msk.f32.mxu0 %vm8153_vm0, %v8152_v1 }
 0x8a9   : > { %v1849_v50 = vpop.f32.mrb[10].mxu0 }
 0x8aa   : > { %v6889_v51 = vpop.f32.mrb[11].mxu0  ;;  %6893 = vmatmul.mubr.msk.f32.vlgmr.msra.gmra.mrb[10].mxu1 %vm1278_vm4, %v1849_v50 }
 0x8ab   : > { %7411 = vmatpush3.bf16.msra.mxu1 %v7410_v47  ;;  %6908 = vmatprep.mubr.msk.f32.mxu1 %vm8153_vm0, %v8152_v1 }
 0x8ac   : > { %7412 = vmatprep.subr.bf16.mxu1 %v8154_v2 }
 0x8ad   : > { %v1997_v56 = vpop.f32.mrb[12].mxu0 }
 0x8ae   : > { %v6899_v57 = vpop.f32.mrb[13].mxu0 }
 0x8af   : > { %7414 = vmatpush3.bf16.msra.mxu1 %v7413_v52 }
 0x8b0   : > { %7421 = vmatprep.subr.bf16.mxu1 %v8154_v2 }
 0x8b2   : > { %6909 = vmatmul.mubr.msk.f32.vlgmr.msra.gmra.mrb[12].mxu1 %vm1042_vm3, %v8590_v22 }
 0x8b3   : > { %7423 = vmatpush3.bf16.msra.mxu1 %v7422_v58  ;;  %6930 = vmatprep.mubr.msk.f32.mxu1 %vm8153_vm0, %v8152_v1  ;;  %v6442_v58 = vld [vmem:[%s9308_s10 + $0x3] ss:$0 sm:$0xff] }
 0x8b4   : > { %7424 = vmatprep.subr.bf16.mxu1 %v8154_v2 }
 0x8b5   : > { %v2163_v63 = vpop.f32.mrb[14].mxu0 }
 0x8b6   : > { %v2164_v0 = vadd.f32 %v6429_v61, %v2163_v63  ;;  %v6921_v3 = vpop.f32.mrb[15].mxu0  ;;  %v6445_v63 = vld [vmem:[%s9311_s0 + $0x3] ss:$0 sm:$0xff] }
 0x8b7   : > { %7426 = vmatpush3.bf16.msra.mxu1 %v7425_v62 }
 0x8b8   : > { %6934 = vmatpush3.xpose.msk.msra.mxu0 %vm1278_vm4, %v2164_v0  ;;  %6943 = vmatprep.subr.mxu1 %v8152_v1 }
 0x8b9   : > { %6938 = vmatprep.subr.mxu0 %v8152_v1 }
 0x8ba   : > { %6931 = vmatmul.mubr.msk.f32.vlgmr.msra.gmra.mrb[14].mxu1 %vm1042_vm3, %v8590_v22 }
 0x8bb   : > { %6945 = vmatprep.mubr.msk.f32.mxu1 %vm8153_vm0, %v8152_v1  ;;  %6944 = vmatpush3.msra.mxu1 %v2413_v26 }
 0x8bc   : > { %7433 = vmatprep.subr.bf16.mxu1 %v8154_v2 }
 0x97d   : > { %v1924_v4 = vpop.f32.mrb[10].mxu1 }
 0x97e   : > { %v8706_v5 = vadd.f32 %v1997_v56, %v1924_v4  ;;  %v6894_v6 = vpop.f32.mrb[11].mxu1 }
 0x985   : > { %v2080_v8 = vpop.f32.mrb[12].mxu1 }
 0x986   : > { %v2081_v9 = vadd.f32 %v6426_v7, %v2080_v8  ;;  %v6910_v10 = vpop.f32.mrb[13].mxu1 }
 0x988   : > { %6936 = vmatmul.mubr.msk.f32.vlgmr.msra.gmra.mrb[16].mxu0 %vm1278_vm4, %v2081_v9 }
 0x989   : > { %6940 = vmatprep.mubr.msk.f32.mxu0 %vm8153_vm0, %v8152_v1 }
 0x98d   : > { %v2246_v12 = vpop.f32.mrb[14].mxu1 }
 0x98e   : > { %v2247_v13 = vadd.f32 %v6432_v11, %v2246_v12  ;;  %v6932_v14 = vpop.f32.mrb[15].mxu1 }
 0x98f   : > { %v2900_v14 = vld [vmem:[#allocation11 + $0x18] sm:$0xff] }
 0x990   : > { %6939 = vmatpush3.msra.mxu0 %v2247_v13 }
 0x991   : > { %7427 = vmatprep.subr.bf16.mxu0 %v8154_v2 }
 0xa5b   : > { %v2322_v15 = vpop.f32.mrb[16].mxu0 }
 0xa5c   : > { %v2326_v16 = vmul.f32 0.35355338, %v2322_v15  ;;  %v6937_v17 = vpop.f32.mrb[17].mxu0 }
 0xa5e   : > { %v2327_v18 = vadd.f32 %v8640_v55, %v2326_v16 }
 0xa60   : > { %v2328_v19 = vsel %vm1278_vm4, %v2327_v18, -inf }
 0xa61   : > { %2329 = vmax.xlane.f32.xlu0 %v2328_v19 }
 0xaee   : > { %v2330_v20 = vpop.xlane.xlu0 %2329 }
 0xaef   : > { %v2331_v21 = vsub.f32 %v2327_v18, %v2330_v20 }
 0xaf1   : > { %v2332_v23 = vmul.f32 1.442695, %v2331_v21  ;;  %v6451_v21 = vld [vmem:[#allocation12] ss:$0 sm:$0xff] }
 0xaf3   : > { %7767 = vpow2.f32 %v2332_v23 }
 0xafd   : > { %v7768_v24 = vpop.eup %7767 }
 0xafe   : > { %v2334_v25 = vsel %vm1278_vm4, %v7768_v24, 0.0 }
 0xaff   : > { %2335 = vadd.xlane.f32.xlu1 %v2334_v25 }
 0xb8c   : > { %v2336_v27 = vpop.xlane.xlu1 %2335 }
 0xb8d   : > { %7769 = vrcp.f32 %v2336_v27 }
 0xb97   : > { %v7770_v30 = vpop.eup %7769 }
 0xb98   : > { %v2338_v32 = vmul.f32 %v7770_v30, %v7768_v24 }
 0xb9a   : > { %6941 = vmatmul.mubr.msk.f32.vlgmr.msra.gmra.mrb[18].mxu0 %vm1278_vm4, %v2338_v32 }
 0xb9b   : > { %7429 = vmatpush3.bf16.msra.mxu0 %v7428_v31  ;;  %6956 = vmatprep.mubr.msk.f32.mxu0 %vm8153_vm0, %v8152_v1 }
 0xb9c   : > { %7430 = vmatprep.subr.bf16.mxu0 %v8154_v2 }
 0xb9f   : > { %7432 = vmatpush3.bf16.msra.mxu0 %v7431_v35  ;;  %v7446_v35 = vpack.c.bf16 %v3015_v34, %v3014_v33 }
 0xba0   : > { %7439 = vmatprep.subr.bf16.mxu0 %v8154_v2 }
 0xba2   : > { %6957 = vmatmul.mubr.msk.f32.vlgmr.msra.gmra.mrb[20].mxu0 %vm1042_vm3, %v8590_v22 }
 0xba3   : > { %7441 = vmatpush3.bf16.msra.mxu0 %v7440_v38  ;;  %6978 = vmatprep.mubr.msk.f32.mxu0 %vm8153_vm0, %v8152_v1  ;;  %v3099_v38 = vld [vmem:[#allocation14] sm:$0xff] }
 0xba4   : > { %7442 = vmatprep.subr.bf16.mxu0 %v8154_v2 }
 0xba7   : > { %7444 = vmatpush3.bf16.msra.mxu0 %v7443_v41  ;;  %v7452_v41 = vpack.c.bf16 %v3100_v39, %v3099_v38  ;;  %v3309_v38 = vld [vmem:[#allocation8 + $0x80] sm:$0xff]  ;;  %v3310_v39 = vld [vmem:[#allocation8 + $0x88] sm:$0xff] }
 0xba8   : > { %6991 = vmatprep.subr.mxu0 %v8152_v1  ;;  %v7482_v42 = vpack.c.bf16 %v3310_v39, %v3309_v38 }
 0xbaa   : > { %6979 = vmatmul.mubr.msk.f32.vlgmr.msra.gmra.mrb[22].mxu0 %vm1042_vm3, %v8590_v22 }
 0xbab   : > { %6993 = vmatprep.mubr.msk.f32.mxu0 %vm8153_vm0, %v8152_v1  ;;  %6992 = vmatpush3.msra.mxu0 %v2900_v14 }
 0xbac   : > { %7451 = vmatprep.subr.bf16.mxu0 %v8154_v2 }
 0xc6d   : > { %v2408_v47 = vpop.f32.mrb[18].mxu0 }
 0xc6e   : > { %v6942_v48 = vpop.f32.mrb[19].mxu0  ;;  %6946 = vmatmul.mubr.msk.f32.vlgmr.msra.gmra.mrb[16].mxu1 %vm1278_vm4, %v2408_v47  ;;  %v3105_v47 = vld [vmem:[#allocation14 + $0x30] sm:$0xff] }
 0xc6f   : > { %7435 = vmatpush3.bf16.msra.mxu1 %v7434_v44  ;;  %6967 = vmatprep.mubr.msk.f32.mxu1 %vm8153_vm0, %v8152_v1  ;;  %v3103_v44 = vld [vmem:[#allocation14 + $0x20] sm:$0xff]  ;;  %v3106_v48 = vld [vmem:[#allocation14 + $0x38] sm:$0xff] }
 0xc70   : > { %7436 = vmatprep.subr.bf16.mxu1 %v8154_v2  ;;  %v7458_v46 = vpack.c.bf16 %v3104_v45, %v3103_v44  ;;  %v3311_v44 = vld [vmem:[#allocation8 + $0x90] sm:$0xff]  ;;  %v3312_v45 = vld [vmem:[#allocation8 + $0x98] sm:$0xff] }
 0xc73   : > { %7438 = vmatpush3.bf16.msra.mxu1 %v7437_v49  ;;  %v7461_v49 = vpack.c.bf16 %v3106_v48, %v3105_v47  ;;  %v3392_v47 = vld [vmem:[#allocation9 + $0x80] sm:$0xff]  ;;  %v3393_v48 = vld [vmem:[#allocation9 + $0x88] sm:$0xff] }
 0xc74   : > { %6981 = vmatprep.subr.mxu1 %v8152_v1 }
 0xc75   : > { %v2567_v50 = vpop.f32.mrb[20].mxu0 }
 0xc76   : > { %v6958_v51 = vpop.f32.mrb[21].mxu0  ;;  %6968 = vmatmul.mubr.msk.f32.vlgmr.msra.gmra.mrb[18].mxu1 %vm1042_vm3, %v8590_v22  ;;  %v2568_v0 = vadd.f32 %v6439_v60, %v2567_v50  ;;  %v3107_v50 = vld [vmem:[#allocation14 + $0x40] sm:$0xff] }
 0xc77   : > { %6983 = vmatprep.mubr.msk.f32.mxu1 %vm8153_vm0, %v8152_v1  ;;  %v3108_v51 = vld [vmem:[#allocation14 + $0x48] sm:$0xff] }
 0xc7d   : > { %v2733_v52 = vpop.f32.mrb[22].mxu0 }
 0xc7e   : > { %v6980_v53 = vpop.f32.mrb[23].mxu0  ;;  %v2734_v3 = vadd.f32 %v6445_v63, %v2733_v52  ;;  %v7464_v52 = vpack.c.bf16 %v3108_v51, %v3107_v50  ;;  %v3394_v50 = vld [vmem:[#allocation9 + $0x90] sm:$0xff]  ;;  %v3395_v51 = vld [vmem:[#allocation9 + $0x98] sm:$0xff] }
 0xc7f   : > { %v3109_v53 = vld [vmem:[#allocation14 + $0x50] sm:$0xff] }
 0xd41   : > { %v2483_v54 = vpop.f32.mrb[16].mxu1 }
 0xd42   : > { %v2487_v56 = vadd.f32 %v2483_v54, %v8706_v5  ;;  %v6947_v57 = vpop.f32.mrb[17].mxu1  ;;  %v3110_v54 = vld [vmem:[#allocation14 + $0x58] sm:$0xff] }
 0xd43   : > { %v3111_v57 = vld [vmem:[#allocation14 + $0x60] sm:$0xff] }
 0xd49   : > { %v2650_v59 = vpop.f32.mrb[18].mxu1 }
 0xd4a   : > { %v2651_v61 = vadd.f32 %v6442_v58, %v2650_v59  ;;  %v6969_v62 = vpop.f32.mrb[19].mxu1  ;;  %v3112_v58 = vld [vmem:[#allocation14 + $0x68] sm:$0xff] }
 0xd4b   : > { %v7470_v59 = vpack.c.bf16 %v3112_v58, %v3111_v57  ;;  %v3639_v58 = vld [vmem:[#allocation6 + $0xa0] sm:$0xff] }
 0xd4c   : > { %6982 = vmatpush3.xpose.msk.msra.mxu1 %vm1278_vm4, %v2651_v61 }
 0xd4d   : > { %6986 = vmatprep.subr.mxu1 %v8152_v1 }
 0xd4f   : > { %6984 = vmatmul.mubr.msk.f32.vlgmr.msra.gmra.mrb[20].mxu1 %vm1278_vm4, %v2568_v0  ;;  %v6452_v0 = vld [vmem:[%s9212_s12] ss:$0 sm:$0xff] }
 0xd50   : > { %6987 = vmatpush3.msra.mxu1 %v2734_v3  ;;  %6988 = vmatprep.mubr.msk.f32.mxu1 %vm8153_vm0, %v8152_v1 }
 0xd51   : > { %7445 = vmatprep.subr.bf16.mxu1 %v8154_v2 }
 0xe22   : > { %v2809_v4 = vpop.f32.mrb[20].mxu1 }
 0xe23   : > { %v2813_v5 = vmul.f32 0.35355338, %v2809_v4  ;;  %v6985_v6 = vpop.f32.mrb[21].mxu1  ;;  %v6453_v4 = vld [vmem:[%s9213_s13] ss:$0 sm:$0xff] }
 0xe25   : > { %v2814_v7 = vadd.f32 %v8640_v55, %v2813_v5 }
 0xe27   : > { %v2815_v8 = vsel %vm1278_vm4, %v2814_v7, -inf }
 0xe28   : > { %2816 = vmax.xlane.f32.xlu0 %v2815_v8  ;;  %v3114_v8 = vld [vmem:[#allocation14 + $0x78] sm:$0xff] }
 0xeb5   : > { %v2817_v9 = vpop.xlane.xlu0 %2816 }
 0xeb6   : > { %v2818_v10 = vsub.f32 %v2814_v7, %v2817_v9  ;;  %v3113_v7 = vld [vmem:[#allocation14 + $0x70] sm:$0xff] }
 0xeb7   : > { %v7473_v9 = vpack.c.bf16 %v3114_v8, %v3113_v7  ;;  %v3805_v8 = vld [vmem:[#allocation9 + $0xa0] sm:$0xff] }
 0xeb8   : > { %v2819_v11 = vmul.f32 1.442695, %v2818_v10  ;;  %v6454_v10 = vld [vmem:[%s9215_s15] ss:$0 sm:$0xff] }
 0xeba   : > { %7771 = vpow2.f32 %v2819_v11 }
 0xec4   : > { %v7772_v12 = vpop.eup %7771 }
 0xec5   : > { %v2821_v13 = vsel %vm1278_vm4, %v7772_v12, 0.0 }
 0xec6   : > { %2822 = vadd.xlane.f32.xlu1 %v2821_v13 }
 0xf53   : > { %v2823_v15 = vpop.xlane.xlu1 %2822 }
 0xf54   : > { %7773 = vrcp.f32 %v2823_v15  ;;  %v6456_v15 = vld [vmem:[%s9217_s17] ss:$0 sm:$0xff] }
 0xf5e   : > { %v7774_v16 = vpop.eup %7773 }
 0xf5f   : > { %v2825_v17 = vmul.f32 %v7774_v16, %v7772_v12 }
 0xf61   : > { %6989 = vmatmul.mubr.msk.f32.vlgmr.msra.gmra.mrb[22].mxu1 %vm1278_vm4, %v2825_v17 }
 0xf62   : > { %7004 = vmatprep.mubr.msk.f32.mxu1 %vm8153_vm0, %v8152_v1  ;;  %7447 = vmatpush3.bf16.msra.mxu1 %v7446_v35 }
 0xf63   : > { %7448 = vmatprep.subr.bf16.mxu1 %v8154_v2 }
0x1034   : > { %v2895_v18 = vpop.f32.mrb[22].mxu1 }
0x1035   : > { %v6990_v19 = vpop.f32.mrb[23].mxu1  ;;  %6994 = vmatmul.mubr.msk.f32.vlgmr.msra.gmra.mrb[24].mxu0 %vm1278_vm4, %v2895_v18 }
0x1036   : > { %7039 = vmatprep.mubr.msk.f32.mxu0 %vm8153_vm0, %v8152_v1  ;;  %7453 = vmatpush3.bf16.msra.mxu0 %v7452_v41 }
0x1037   : > { %7454 = vmatprep.subr.bf16.mxu0 %v8154_v2 }
0x103a   : > { %7456 = vmatpush3.bf16.msra.mxu0 %v7455_v43 }
0x103b   : > { %7457 = vmatprep.subr.bf16.mxu0 %v8154_v2 }
0x103e   : > { %7459 = vmatpush3.bf16.msra.mxu0 %v7458_v46  ;;  %v7485_v46 = vpack.c.bf16 %v3312_v45, %v3311_v44  ;;  %v6472_v44 = vld [vmem:[%s9310_s9 + $0x5] ss:$0 sm:$0xff] }
0x103f   : > { %7460 = vmatprep.subr.bf16.mxu0 %v8154_v2 }
0x1042   : > { %7462 = vmatpush3.bf16.msra.mxu0 %v7461_v49  ;;  %v7488_v49 = vpack.c.bf16 %v3393_v48, %v3392_v47  ;;  %v6478_v47 = vld [vmem:[%s9311_s0 + $0x5] ss:$0 sm:$0xff] }
0x1043   : > { %7463 = vmatprep.subr.bf16.mxu0 %v8154_v2 }
0x1046   : > { %7465 = vmatpush3.bf16.msra.mxu0 %v7464_v52  ;;  %v7491_v52 = vpack.c.bf16 %v3395_v51, %v3394_v50 }
0x1047   : > { %7466 = vmatprep.subr.bf16.mxu0 %v8154_v2 }
0x1108   : > { %v2970_v20 = vpop.f32.mrb[24].mxu0 }
0x1109   : > { %v2974_v23 = vadd.f32 %v2970_v20, %v2487_v56  ;;  %v6995_v24 = vpop.f32.mrb[25].mxu0  ;;  %v7467_v56 = vpack.c.bf16 %v3110_v54, %v3109_v53 }
0x110b   : > { %v2982_v25 = vadd.f32 %v6451_v21, %v2974_v23  ;;  %7468 = vmatpush3.bf16.msra.mxu0 %v7467_v56  ;;  %v6463_v56 = vld [vmem:[%s9308_s10 + $0x4] ss:$0 sm:$0xff] }
0x110c   : > { %7469 = vmatprep.subr.bf16.mxu0 %v8154_v2 }
0x110d   : > { %v2983_v26 = vadd.f32 %v2982_v25, %v8590_v22  ;;  %v3016_v22 = vld [vmem:[%s9214_s14 + $0x10] sm:$0xff] }
0x110e   : > { %v7449_v37 = vpack.c.bf16 %v3017_v36, %v3016_v22  ;;  %v6457_v36 = vld [vmem:[%s9218_s18] ss:$0 sm:$0xff] }
0x110f   : > { %v2984_v27 = vsel %vm1042_vm3, %v2983_v26, 0.0  ;;  %7471 = vmatpush3.bf16.msra.mxu0 %v7470_v59  ;;  %v3640_v59 = vld [vmem:[#allocation6 + $0xa8] sm:$0xff] }
0x1110   : > { %2985 = vadd.xlane.f32.xlu0 %v2984_v27  ;;  %7450 = vmatpush3.bf16.msra.mxu1 %v7449_v37  ;;  %v3223_v27 = vld [vmem:[#allocation6 + $0x80] sm:$0xff] }
0x1111   : > { %7475 = vmatprep.subr.bf16.mxu1 %v8154_v2  ;;  %7472 = vmatprep.subr.bf16.mxu0 %v8154_v2 }
0x1113   : > { %7474 = vmatpush3.bf16.msra.mxu0 %v7473_v9  ;;  %v3806_v9 = vld [vmem:[#allocation9 + $0xa8] sm:$0xff] }
0x1114   : > { %7080 = vmatprep.subr.mxu0 %v8152_v1 }
0x119d   : > { %v2986_v28 = vpop.xlane.xlu0 %2985 }
0x119e   : > { %v2988_v29 = vmul.f32 0.03125, %v2986_v28  ;;  %v3224_v28 = vld [vmem:[#allocation6 + $0x88] sm:$0xff] }
0x11a0   : > { %v2989_v30 = vsub.f32 %v2983_v26, %v2988_v29  ;;  %v7476_v29 = vpack.c.bf16 %v3224_v28, %v3223_v27 }
0x11a2   : > { %v2990_v31 = vmul.f32 %v2989_v30, %v2989_v30 }
0x11a4   : > { %v2991_v32 = vsel %vm1042_vm3, %v2990_v31, 0.0  ;;  %v3226_v31 = vld [vmem:[#allocation6 + $0x98] sm:$0xff] }
0x11a5   : > { %2992 = vadd.xlane.f32.xlu1 %v2991_v32 }
0x1232   : > { %v2993_v60 = vpop.xlane.xlu1 %2992 }
0x1233   : > { %v2994_v61 = vmul.f32 0.03125, %v2993_v60  ;;  %v6460_v60 = vld [vmem:[%s9310_s9 + $0x4] ss:$0 sm:$0xff] }
0x1235   : > { %v2995_v62 = vadd.f32 1e-05, %v2994_v61 }
0x1237   : > { %7775 = vrsqrt.f32 %v2995_v62 }
0x1241   : > { %v7776_v63 = vpop.eup %7775 }
0x1242   : > { %v2997_v3 = vmul.f32 %v7776_v63, %v2989_v30  ;;  %v3225_v30 = vld [vmem:[#allocation6 + $0x90] sm:$0xff]  ;;  %v7494_v63 = vpack.c.bf16 %v3640_v59, %v3639_v58 }
0x1243   : > { %v7479_v32 = vpack.c.bf16 %v3226_v31, %v3225_v30 }
0x1244   : > { %v3005_v5 = vmul.f32 %v6452_v0, %v2997_v3  ;;  %v3641_v3 = vld [vmem:[#allocation6 + $0xb0] sm:$0xff] }
0x1246   : > { %v3013_v6 = vadd.f32 %v6453_v4, %v3005_v5  ;;  %v3642_v4 = vld [vmem:[#allocation6 + $0xb8] sm:$0xff]  ;;  %v6466_v5 = vld [vmem:[%s9311_s0 + $0x4] ss:$0 sm:$0xff] }
0x1248   : > { %7005 = vmatmul.mubr.msk.f32.vlgmr.msra.gmra.mrb[24].mxu1 %vm1042_vm3, %v3013_v6 }
0x1249   : > { %7050 = vmatprep.mubr.msk.f32.mxu1 %vm8153_vm0, %v8152_v1  ;;  %7477 = vmatpush3.bf16.msra.mxu1 %v7476_v29 }
0x124a   : > { %7478 = vmatprep.subr.bf16.mxu1 %v8154_v2 }
0x124d   : > { %7480 = vmatpush3.bf16.msra.mxu1 %v7479_v32  ;;  %v3722_v32 = vld [vmem:[#allocation8 + $0xa0] sm:$0xff] }
0x124e   : > { %7481 = vmatprep.subr.bf16.mxu1 %v8154_v2 }
0x131b   : > { %v3094_v11 = vpop.f32.mrb[24].mxu1 }
0x131c   : > { %v3095_v12 = vadd.f32 %v6454_v10, %v3094_v11  ;;  %v7006_v13 = vpop.f32.mrb[25].mxu1 }
0x131d   : > { %v3807_v13 = vld [vmem:[#allocation9 + $0xb0] sm:$0xff] }
0x131e   : > { %v3098_v14 = vmax.f32 %v3095_v12, 0.0  ;;  %v7506_v12 = vpack.c.bf16 %v3806_v9, %v3805_v8  ;;  %v4198_v9 = vld [vmem:[#allocation6 + $0xc0] sm:$0xff] }
0x1320   : > { %7040 = vmatmul.mubr.f32.vlgmr.msra.gmra.mrb[26].mxu0 %v3098_v14  ;;  %v3808_v14 = vld [vmem:[#allocation9 + $0xb8] sm:$0xff] }
0x1321   : > { %7082 = vmatprep.mubr.msk.f32.mxu0 %vm8153_vm0, %v8152_v1 }
0x13f3   : > { %v3188_v16 = vpop.f32.mrb[26].mxu0 }
0x13f4   : > { %v3189_v17 = vadd.f32 %v6456_v15, %v3188_v16  ;;  %v7041_v18 = vpop.f32.mrb[27].mxu0  ;;  %v7509_v15 = vpack.c.bf16 %v3808_v14, %v3807_v13  ;;  %v4201_v13 = vld [vmem:[#allocation6 + $0xd8] sm:$0xff] }
0x13f6   : > { %v3192_v19 = vadd.f32 %v3189_v17, %v3013_v6  ;;  %v7497_v6 = vpack.c.bf16 %v3642_v4, %v3641_v3  ;;  %v4281_v3 = vld [vmem:[#allocation8 + $0xc0] sm:$0xff]  ;;  %v4282_v4 = vld [vmem:[#allocation8 + $0xc8] sm:$0xff] }
0x13f8   : > { %v3193_v20 = vsel %vm1042_vm3, %v3192_v19, 0.0 }
0x13f9   : > { %3194 = vadd.xlane.f32.xlu0 %v3193_v20 }
0x1486   : > { %v3195_v21 = vpop.xlane.xlu0 %3194 }
0x1487   : > { %v3196_v23 = vmul.f32 0.03125, %v3195_v21 }
0x1489   : > { %v3197_v24 = vsub.f32 %v3192_v19, %v3196_v23 }
0x148b   : > { %v3198_v25 = vmul.f32 %v3197_v24, %v3197_v24 }
0x148d   : > { %v3199_v26 = vsel %vm1042_vm3, %v3198_v25, 0.0 }
0x148e   : > { %3200 = vadd.xlane.f32.xlu1 %v3199_v26 }
0x151b   : > { %v3201_v33 = vpop.xlane.xlu1 %3200 }
0x151c   : > { %v3202_v34 = vmul.f32 0.03125, %v3201_v33  ;;  %v3723_v33 = vld [vmem:[#allocation8 + $0xa8] sm:$0xff] }
0x151e   : > { %v3203_v35 = vadd.f32 1e-05, %v3202_v34 }
0x1520   : > { %7777 = vrsqrt.f32 %v3203_v35  ;;  %v7500_v35 = vpack.c.bf16 %v3723_v33, %v3722_v32  ;;  %v6486_v33 = vld [vmem:[%s9310_s9 + $0x6] ss:$0 sm:$0xff] }
0x152a   : > { %v7778_v22 = vpop.eup %7777 }
0x152b   : > { %v3205_v37 = vmul.f32 %v7778_v22, %v3197_v24 }
0x152d   : > { %v3213_v41 = vmul.f32 %v6457_v36, %v3205_v37  ;;  %v3724_v36 = vld [vmem:[#allocation8 + $0xb0] sm:$0xff]  ;;  %v3725_v37 = vld [vmem:[#allocation8 + $0xb8] sm:$0xff] }
0x152e   : > { %v7503_v38 = vpack.c.bf16 %v3725_v37, %v3724_v36  ;;  %v6492_v36 = vld [vmem:[%s9311_s0 + $0x6] ss:$0 sm:$0xff] }
0x152f   : > { %v8824_v43 = vadd.f32 %v6458_v40, %v3213_v41  ;;  %v6475_v41 = vld [vmem:[%s9308_s10 + $0x5] ss:$0 sm:$0xff] }
0x1531   : > { %7051 = vmatmul.mubr.msk.f32.vlgmr.msra.gmra.mrb[26].mxu1 %vm1042_vm3, %v8824_v43 }
0x1532   : > { %7483 = vmatpush3.bf16.msra.mxu1 %v7482_v42  ;;  %7061 = vmatprep.mubr.msk.f32.mxu1 %vm8153_vm0, %v8152_v1 }
0x1533   : > { %7484 = vmatprep.subr.bf16.mxu1 %v8154_v2 }
0x1536   : > { %7486 = vmatpush3.bf16.msra.mxu1 %v7485_v46 }
0x1537   : > { %7487 = vmatprep.subr.bf16.mxu1 %v8154_v2 }
0x1539   : > { %7062 = vmatmul.mubr.msk.f32.vlgmr.msra.gmra.mrb[28].mxu1 %vm1042_vm3, %v8824_v43 }
0x153a   : > { %7489 = vmatpush3.bf16.msra.mxu1 %v7488_v49  ;;  %7072 = vmatprep.mubr.msk.f32.mxu1 %vm8153_vm0, %v8152_v1 }
0x153b   : > { %7490 = vmatprep.subr.bf16.mxu1 %v8154_v2 }
0x153e   : > { %7492 = vmatpush3.bf16.msra.mxu1 %v7491_v52 }
0x153f   : > { %7075 = vmatprep.subr.mxu1 %v8152_v1 }
0x1541   : > { %7073 = vmatmul.mubr.msk.f32.vlgmr.msra.gmra.mrb[30].mxu1 %vm1042_vm3, %v8824_v43 }
0x1542   : > { %7077 = vmatprep.mubr.msk.f32.mxu1 %vm8153_vm0, %v8152_v1 }
0x1604   : > { %v3304_v53 = vpop.f32.mrb[26].mxu1 }
0x1605   : > { %v7052_v54 = vpop.f32.mrb[27].mxu1  ;;  %v3305_v0 = vadd.f32 %v6460_v60, %v3304_v53 }
0x160c   : > { %v3387_v57 = vpop.f32.mrb[28].mxu1 }
0x160d   : > { %v3388_v61 = vadd.f32 %v6463_v56, %v3387_v57  ;;  %v7063_v62 = vpop.f32.mrb[29].mxu1 }
0x160f   : > { %7076 = vmatpush3.xpose.msk.msra.mxu1 %vm1278_vm4, %v3388_v61  ;;  %v4050_v61 = vld [vmem:[#allocation11 + $0x28] sm:$0xff] }
0x1610   : > { %7493 = vmatprep.subr.bf16.mxu1 %v8154_v2 }
0x1612   : > { %7078 = vmatmul.mubr.msk.f32.vlgmr.msra.gmra.mrb[32].mxu1 %vm1278_vm4, %v3305_v0 }
0x1613   : > { %7495 = vmatpush3.bf16.msra.mxu1 %v7494_v63  ;;  %7093 = vmatprep.mubr.msk.f32.mxu1 %vm8153_vm0, %v8152_v1 }
0x1614   : > { %v3470_v7 = vpop.f32.mrb[30].mxu1  ;;  %7496 = vmatprep.subr.bf16.mxu1 %v8154_v2 }
0x1615   : > { %v3471_v10 = vadd.f32 %v6466_v5, %v3470_v7  ;;  %v7074_v11 = vpop.f32.mrb[31].mxu1  ;;  %v7518_v5 = vpack.c.bf16 %v4282_v4, %v4281_v3  ;;  %v4284_v7 = vld [vmem:[#allocation8 + $0xd8] sm:$0xff]  ;;  %v4853_v3 = vld [vmem:[#allocation9 + $0xf0] sm:$0xff] }
0x1616   : > { %v4854_v4 = vld [vmem:[#allocation9 + $0xf8] sm:$0xff] }
0x1617   : > { %7081 = vmatpush3.msra.mxu0 %v3471_v10  ;;  %7498 = vmatpush3.bf16.msra.mxu1 %v7497_v6  ;;  %v4283_v6 = vld [vmem:[#allocation8 + $0xd0] sm:$0xff]  ;;  %v4199_v10 = vld [vmem:[#allocation6 + $0xc8] sm:$0xff] }
0x1618   : > { %7505 = vmatprep.subr.bf16.mxu1 %v8154_v2  ;;  %7499 = vmatprep.subr.bf16.mxu0 %v8154_v2  ;;  %v7521_v8 = vpack.c.bf16 %v4284_v7, %v4283_v6  ;;  %v7512_v11 = vpack.c.bf16 %v4199_v10, %v4198_v9  ;;  %v4768_v6 = vld [vmem:[#allocation8 + $0xe0] sm:$0xff]  ;;  %v4769_v7 = vld [vmem:[#allocation8 + $0xe8] sm:$0xff]  ;;  %v4770_v9 = vld [vmem:[#allocation8 + $0xf0] sm:$0xff] }
0x1619   : > { %v4771_v10 = vld [vmem:[#allocation8 + $0xf8] sm:$0xff] }
0x161a   : > { %7094 = vmatmul.mubr.msk.f32.vlgmr.msra.gmra.mrb[34].mxu1 %vm1042_vm3, %v8824_v43 }
0x161b   : > { %7507 = vmatpush3.bf16.msra.mxu1 %v7506_v12  ;;  %7115 = vmatprep.mubr.msk.f32.mxu1 %vm8153_vm0, %v8152_v1  ;;  %v4200_v12 = vld [vmem:[#allocation6 + $0xd0] sm:$0xff] }
0x161c   : > { %7508 = vmatprep.subr.bf16.mxu1 %v8154_v2 }
0x161f   : > { %7510 = vmatpush3.bf16.msra.mxu1 %v7509_v15 }
0x1620   : > { %7128 = vmatprep.subr.mxu1 %v8152_v1 }
0x1622   : > { %7116 = vmatmul.mubr.msk.f32.vlgmr.msra.gmra.mrb[36].mxu1 %vm1042_vm3, %v8824_v43 }
0x1623   : > { %7130 = vmatprep.mubr.msk.f32.mxu1 %vm8153_vm0, %v8152_v1  ;;  %7129 = vmatpush3.msra.mxu1 %v4050_v61  ;;  %v4688_v61 = vld [vmem:[#allocation6 + $0xf8] sm:$0xff] }
0x1624   : > { %7511 = vmatprep.subr.bf16.mxu1 %v8154_v2 }
0x16e5   : > { %v3546_v16 = vpop.f32.mrb[32].mxu1 }
0x16e6   : > { %v3550_v17 = vmul.f32 0.35355338, %v3546_v16  ;;  %v7079_v18 = vpop.f32.mrb[33].mxu1  ;;  %v7515_v16 = vpack.c.bf16 %v4201_v13, %v4200_v12  ;;  %v7539_v13 = vpack.c.bf16 %v4771_v10, %v4770_v9  ;;  %v5306_v10 = vld [vmem:[#allocation14 + $0xb0] sm:$0xff] }
0x16e7   : > { %v4365_v18 = vld [vmem:[#allocation9 + $0xc8] sm:$0xff] }
0x16e8   : > { %v3551_v19 = vadd.f32 %v8640_v55, %v3550_v17  ;;  %v4364_v17 = vld [vmem:[#allocation9 + $0xc0] sm:$0xff] }
0x16ea   : > { %v3552_v20 = vsel %vm1278_vm4, %v3551_v19, -inf }
0x16eb   : > { %3553 = vmax.xlane.f32.xlu0 %v3552_v20 }
0x16ed   : > { %v3717_v21 = vpop.f32.mrb[34].mxu1 }
0x16ee   : > { %v7095_v23 = vpop.f32.mrb[35].mxu1  ;;  %v3718_v48 = vadd.f32 %v6472_v44, %v3717_v21  ;;  %v7524_v21 = vpack.c.bf16 %v4365_v18, %v4364_v17  ;;  %v8946_v44 = vld [vmem:[%s8637_s1] ss:$0 sm:$0xff]  ;;  %s9317_s1 = sld [smem:[#allocation50_spill]] }
0x16ef   : > { %v4366_v23 = vld [vmem:[#allocation9 + $0xd0] sm:$0xff] }
0x16f4   : > { %s9122_s3 = scalar_lea.hbm %s9317_s1, %s6539_s28 }
0x16f5   : > { %v3883_v24 = vpop.f32.mrb[36].mxu1 }
0x16f6   : > { %v7117_v25 = vpop.f32.mrb[37].mxu1  ;;  %v3884_v49 = vadd.f32 %v6478_v47, %v3883_v24  ;;  %v4367_v24 = vld [vmem:[#allocation9 + $0xd8] sm:$0xff] }
0x16f7   : > { %v6489_v25 = vld [vmem:[%s9308_s10 + $0x6] ss:$0 sm:$0xff] }
0x1778   : > { %v3554_v26 = vpop.xlane.xlu0 %3553 }
0x1779   : > { %v3555_v27 = vsub.f32 %v3551_v19, %v3554_v26  ;;  %v7527_v26 = vpack.c.bf16 %v4367_v24, %v4366_v23  ;;  %v6499_v24 = vld [vmem:[%s9310_s9 + $0x7] ss:$0 sm:$0xff] }
0x177b   : > { %v3556_v28 = vmul.f32 1.442695, %v3555_v27 }
0x177d   : > { %7779 = vpow2.f32 %v3556_v28 }
0x1787   : > { %v7780_v29 = vpop.eup %7779 }
0x1788   : > { %v3558_v30 = vsel %vm1278_vm4, %v7780_v29, 0.0 }
0x1789   : > { %3559 = vadd.xlane.f32.xlu1 %v3558_v30 }
0x1816   : > { %v3560_v31 = vpop.xlane.xlu1 %3559 }
0x1817   : > { %7781 = vrcp.f32 %v3560_v31 }
0x1821   : > { %v7782_v34 = vpop.eup %7781 }
0x1822   : > { %v3562_v22 = vmul.f32 %v7782_v34, %v7780_v29 }
0x1824   : > { %7083 = vmatmul.mubr.msk.f32.vlgmr.msra.gmra.mrb[28].mxu0 %vm1278_vm4, %v3562_v22 }
0x1825   : > { %7501 = vmatpush3.bf16.msra.mxu0 %v7500_v35  ;;  %7104 = vmatprep.mubr.msk.f32.mxu0 %vm8153_vm0, %v8152_v1 }
0x1826   : > { %7502 = vmatprep.subr.bf16.mxu0 %v8154_v2 }
0x1829   : > { %7504 = vmatpush3.bf16.msra.mxu0 %v7503_v38 }
0x182a   : > { %7118 = vmatprep.subr.mxu0 %v8152_v1 }
0x182c   : > { %7105 = vmatmul.mubr.msk.f32.vlgmr.msra.gmra.mrb[30].mxu0 %vm1042_vm3, %v8824_v43 }
0x182d   : > { %7120 = vmatprep.mubr.msk.f32.mxu0 %vm8153_vm0, %v8152_v1 }
0x18f7   : > { %v3632_v39 = vpop.f32.mrb[28].mxu0 }
0x18f8   : > { %v7084_v40 = vpop.f32.mrb[29].mxu0 }
0x18ff   : > { %v3800_v42 = vpop.f32.mrb[30].mxu0 }
0x1900   : > { %v3801_v45 = vadd.f32 %v6475_v41, %v3800_v42  ;;  %v7106_v46 = vpop.f32.mrb[31].mxu0 }
0x1902   : > { %7119 = vmatpush3.xpose.msk.msra.mxu0 %vm1278_vm4, %v3801_v45 }
0x1903   : > { %7123 = vmatprep.subr.mxu0 %v8152_v1 }
0x1905   : > { %7121 = vmatmul.mubr.msk.f32.vlgmr.msra.gmra.mrb[32].mxu0 %vm1278_vm4, %v3718_v48 }
0x1906   : > { %7124 = vmatpush3.msra.mxu0 %v3884_v49  ;;  %7125 = vmatprep.mubr.msk.f32.mxu0 %vm8153_vm0, %v8152_v1 }
0x1907   : > { %7133 = vmatprep.subr.mxu0 %v8152_v1 }
0x19d8   : > { %v3959_v50 = vpop.f32.mrb[32].mxu0 }
0x19d9   : > { %v3963_v51 = vmul.f32 0.35355338, %v3959_v50  ;;  %v7122_v52 = vpop.f32.mrb[33].mxu0 }
0x19da   : > { %v4609_v52 = vld [vmem:[#allocation11 + $0x30] sm:$0xff] }
0x19db   : > { %v3964_v53 = vadd.f32 %v8640_v55, %v3963_v51  ;;  %v3637_v55 = vld [vmem:[#allocation11 + $0x20] sm:$0xff] }
0x19dd   : > { %v3965_v54 = vsel %vm1278_vm4, %v3964_v53, -inf }
0x19de   : > { %3966 = vmax.xlane.f32.xlu0 %v3965_v54  ;;  %v4685_v54 = vld [vmem:[#allocation6 + $0xe0] sm:$0xff] }
0x1a6b   : > { %v3967_v56 = vpop.xlane.xlu0 %3966 }
0x1a6c   : > { %v3968_v57 = vsub.f32 %v3964_v53, %v3967_v56  ;;  %v4686_v56 = vld [vmem:[#allocation6 + $0xe8] sm:$0xff] }
0x1a6e   : > { %v3969_v58 = vmul.f32 1.442695, %v3968_v57 }
0x1a70   : > { %7783 = vpow2.f32 %v3969_v58  ;;  %v7530_v58 = vpack.c.bf16 %v4686_v56, %v4685_v54 }
0x1a7a   : > { %v7784_v59 = vpop.eup %7783 }
0x1a7b   : > { %v3971_v60 = vsel %vm1278_vm4, %v7784_v59, 0.0 }
0x1a7c   : > { %3972 = vadd.xlane.f32.xlu1 %v3971_v60  ;;  %v4687_v60 = vld [vmem:[#allocation6 + $0xf0] sm:$0xff] }
0x1b09   : > { %v3973_v62 = vpop.xlane.xlu1 %3972 }
0x1b0a   : > { %7785 = vrcp.f32 %v3973_v62  ;;  %v7533_v62 = vpack.c.bf16 %v4688_v61, %v4687_v60  ;;  %v6517_v60 = vld [vmem:[%s9214_s14 + $0x28] sm:$0xff] }
0x1b14   : > { %v7786_v63 = vpop.eup %7785 }
0x1b15   : > { %v3975_v0 = vmul.f32 %v7786_v63, %v7784_v59  ;;  %v4851_v63 = vld [vmem:[#allocation9 + $0xe0] sm:$0xff] }
0x1b17   : > { %7126 = vmatmul.mubr.msk.f32.vlgmr.msra.gmra.mrb[34].mxu0 %vm1278_vm4, %v3975_v0  ;;  %v4852_v0 = vld [vmem:[#allocation9 + $0xe8] sm:$0xff] }
0x1b18   : > { %7134 = vmatpush3.msra.mxu0 %v3637_v55  ;;  %7135 = vmatprep.mubr.msk.f32.mxu0 %vm8153_vm0, %v8152_v1  ;;  %v7542_v55 = vpack.c.bf16 %v4852_v0, %v4851_v63  ;;  %v5300_v0 = vld [vmem:[#allocation14 + $0x80] sm:$0xff] }
0x1b19   : > { %7517 = vmatprep.subr.bf16.mxu0 %v8154_v2 }
0x1b1b   : > { %7136 = vmatmul.mubr.msk.f32.vlgmr.msra.gmra.mrb[36].mxu0 %vm1278_vm4, %v3632_v39 }
0x1b1c   : > { %7519 = vmatpush3.bf16.msra.mxu0 %v7518_v5  ;;  %7157 = vmatprep.mubr.msk.f32.mxu0 %vm8153_vm0, %v8152_v1  ;;  %v7545_v5 = vpack.c.bf16 %v4854_v4, %v4853_v3  ;;  %v5302_v3 = vld [vmem:[#allocation14 + $0x90] sm:$0xff] }
0x1b1d   : > { %7520 = vmatprep.subr.bf16.mxu0 %v8154_v2 }
0x1b20   : > { %7522 = vmatpush3.bf16.msra.mxu0 %v7521_v8  ;;  %v7536_v8 = vpack.c.bf16 %v4769_v7, %v4768_v6  ;;  %v5304_v7 = vld [vmem:[#allocation14 + $0xa0] sm:$0xff] }
0x1b21   : > { %7171 = vmatprep.subr.mxu0 %v8152_v1 }
0x1b23   : > { %7158 = vmatmul.mubr.msk.f32.vlgmr.msra.gmra.mrb[38].mxu0 %vm1042_vm3, %v8824_v43 }
0x1b24   : > { %7173 = vmatprep.mubr.msk.f32.mxu0 %vm8153_vm0, %v8152_v1 }
0x1bea   : > { %v4045_v14 = vpop.f32.mrb[34].mxu0 }
0x1beb   : > { %v7127_v15 = vpop.f32.mrb[35].mxu0  ;;  %7131 = vmatmul.mubr.msk.f32.vlgmr.msra.gmra.mrb[38].mxu1 %vm1278_vm4, %v4045_v14 }
0x1bec   : > { %7513 = vmatpush3.bf16.msra.mxu1 %v7512_v11  ;;  %7146 = vmatprep.mubr.msk.f32.mxu1 %vm8153_vm0, %v8152_v1 }
0x1bed   : > { %7514 = vmatprep.subr.bf16.mxu1 %v8154_v2 }
0x1bee   : > { %v4193_v19 = vpop.f32.mrb[36].mxu0 }
0x1bef   : > { %v7137_v20 = vpop.f32.mrb[37].mxu0 }
0x1bf0   : > { %7516 = vmatpush3.bf16.msra.mxu1 %v7515_v16 }
0x1bf1   : > { %7523 = vmatprep.subr.bf16.mxu1 %v8154_v2 }
0x1bf3   : > { %7147 = vmatmul.mubr.msk.f32.vlgmr.msra.gmra.mrb[40].mxu1 %vm1042_vm3, %v8824_v43 }
0x1bf4   : > { %7525 = vmatpush3.bf16.msra.mxu1 %v7524_v21  ;;  %7168 = vmatprep.mubr.msk.f32.mxu1 %vm8153_vm0, %v8152_v1  ;;  %v6502_v21 = vld [vmem:[%s9308_s10 + $0x7] ss:$0 sm:$0xff] }
0x1bf5   : > { %7526 = vmatprep.subr.bf16.mxu1 %v8154_v2 }
0x1bf6   : > { %v4359_v27 = vpop.f32.mrb[38].mxu0 }
0x1bf7   : > { %v4360_v28 = vadd.f32 %v6489_v25, %v4359_v27  ;;  %v7159_v29 = vpop.f32.mrb[39].mxu0  ;;  %v6505_v27 = vld [vmem:[%s9311_s0 + $0x7] ss:$0 sm:$0xff] }
0x1bf8   : > { %7528 = vmatpush3.bf16.msra.mxu1 %v7527_v26 }
0x1bf9   : > { %7172 = vmatpush3.xpose.msk.msra.mxu0 %vm1278_vm4, %v4360_v28  ;;  %7181 = vmatprep.subr.mxu1 %v8152_v1 }
0x1bfa   : > { %7176 = vmatprep.subr.mxu0 %v8152_v1 }
0x1bfb   : > { %7169 = vmatmul.mubr.msk.f32.vlgmr.msra.gmra.mrb[42].mxu1 %vm1042_vm3, %v8824_v43 }
0x1bfc   : > { %7183 = vmatprep.mubr.msk.f32.mxu1 %vm8153_vm0, %v8152_v1  ;;  %7182 = vmatpush3.msra.mxu1 %v4609_v52 }
0x1bfd   : > { %7535 = vmatprep.subr.bf16.mxu1 %v8154_v2 }
0x1cbe   : > { %v4120_v30 = vpop.f32.mrb[38].mxu1 }
0x1cbf   : > { %v8933_v31 = vadd.f32 %v4193_v19, %v4120_v30  ;;  %v7132_v32 = vpop.f32.mrb[39].mxu1 }
0x1cc6   : > { %v4276_v34 = vpop.f32.mrb[40].mxu1 }
0x1cc7   : > { %v4277_v35 = vadd.f32 %v6486_v33, %v4276_v34  ;;  %v7148_v22 = vpop.f32.mrb[41].mxu1 }
0x1cc9   : > { %7174 = vmatmul.mubr.msk.f32.vlgmr.msra.gmra.mrb[40].mxu0 %vm1278_vm4, %v4277_v35 }
0x1cca   : > { %7178 = vmatprep.mubr.msk.f32.mxu0 %vm8153_vm0, %v8152_v1 }
0x1cce   : > { %v4442_v37 = vpop.f32.mrb[42].mxu1 }
0x1ccf   : > { %v4443_v38 = vadd.f32 %v6492_v36, %v4442_v37  ;;  %v7170_v39 = vpop.f32.mrb[43].mxu1 }
0x1cd0   : > { %v5096_v39 = vld [vmem:[#allocation11 + $0x38] sm:$0xff] }
0x1cd1   : > { %7177 = vmatpush3.msra.mxu0 %v4443_v38 }
0x1cd2   : > { %7529 = vmatprep.subr.bf16.mxu0 %v8154_v2 }
0x1d9c   : > { %v4518_v40 = vpop.f32.mrb[40].mxu0 }
0x1d9d   : > { %v4522_v41 = vmul.f32 0.35355338, %v4518_v40  ;;  %v7175_v42 = vpop.f32.mrb[41].mxu0 }
0x1d9f   : > { %v4523_v45 = vadd.f32 %v8946_v44, %v4522_v41 }
0x1da1   : > { %v4524_v46 = vsel %vm1278_vm4, %v4523_v45, -inf }
0x1da2   : > { %4525 = vmax.xlane.f32.xlu0 %v4524_v46 }
0x1e2f   : > { %v4526_v47 = vpop.xlane.xlu0 %4525 }
0x1e30   : > { %v4527_v48 = vsub.f32 %v4523_v45, %v4526_v47  ;;  %v6511_v47 = vld [vmem:[#allocation12 + $0x1] ss:$0 sm:$0xff] }
0x1e32   : > { %v4528_v49 = vmul.f32 1.442695, %v4527_v48 }
0x1e34   : > { %7787 = vpow2.f32 %v4528_v49 }
0x1e3e   : > { %v7788_v50 = vpop.eup %7787 }
0x1e3f   : > { %v4530_v51 = vsel %vm1278_vm4, %v7788_v50, 0.0 }
0x1e40   : > { %4531 = vadd.xlane.f32.xlu1 %v4530_v51 }
0x1ecd   : > { %v4532_v53 = vpop.xlane.xlu1 %4531 }
0x1ece   : > { %7789 = vrcp.f32 %v4532_v53 }
0x1ed8   : > { %v7790_v57 = vpop.eup %7789 }
0x1ed9   : > { %v4534_v59 = vmul.f32 %v7790_v57, %v7788_v50 }
0x1edb   : > { %7179 = vmatmul.mubr.msk.f32.vlgmr.msra.gmra.mrb[42].mxu0 %vm1278_vm4, %v4534_v59  ;;  %v6516_v59 = vld [vmem:[%s9214_s14 + $0x20] sm:$0xff] }
0x1edc   : > { %7531 = vmatpush3.bf16.msra.mxu0 %v7530_v58  ;;  %7194 = vmatprep.mubr.msk.f32.mxu0 %vm8153_vm0, %v8152_v1  ;;  %v7548_v61 = vpack.c.bf16 %v6517_v60, %v6516_v59  ;;  %v8155_v59 = vmov 0  }
0x1edd   : > { %7532 = vmatprep.subr.bf16.mxu0 %v8154_v2  ;;  %7758 = vset.pattern.permute.xlu0 %v8155_v59 }
0x1ee0   : > { %7534 = vmatpush3.bf16.msra.mxu0 %v7533_v62  ;;  %v6519_v62 = vld [vmem:[%s9214_s14 + $0x38] sm:$0xff] }
0x1ee1   : > { %7541 = vmatprep.subr.bf16.mxu0 %v8154_v2 }
0x1ee3   : > { %7195 = vmatmul.mubr.msk.f32.vlgmr.msra.gmra.mrb[44].mxu0 %vm1042_vm3, %v8824_v43 }
0x1ee4   : > { %7543 = vmatpush3.bf16.msra.mxu0 %v7542_v55  ;;  %7216 = vmatprep.mubr.msk.f32.mxu0 %vm8153_vm0, %v8152_v1  ;;  %v5301_v55 = vld [vmem:[#allocation14 + $0x88] sm:$0xff] }
0x1ee5   : > { %7544 = vmatprep.subr.bf16.mxu0 %v8154_v2  ;;  %v7554_v4 = vpack.c.bf16 %v5301_v55, %v5300_v0  ;;  %v6528_v55 = vld [vmem:[%s9219_s19 + $0x1] ss:$0 sm:$0xff] }
0x1ee8   : > { %7546 = vmatpush3.bf16.msra.mxu0 %v7545_v5  ;;  %v5303_v5 = vld [vmem:[#allocation14 + $0x98] sm:$0xff] }
0x1ee9   : > { %7229 = vmatprep.subr.mxu0 %v8152_v1  ;;  %v7557_v6 = vpack.c.bf16 %v5303_v5, %v5302_v3  ;;  %v5600_v5 = vld [vmem:[#allocation15 + $0x48] sm:$0xff] }
0x1eeb   : > { %7217 = vmatmul.mubr.msk.f32.vlgmr.msra.gmra.mrb[46].mxu0 %vm1042_vm3, %v8824_v43 }
0x1eec   : > { %7231 = vmatprep.mubr.msk.f32.mxu0 %vm8153_vm0, %v8152_v1  ;;  %7230 = vmatpush3.msra.mxu0 %v5096_v39  ;;  %v6524_v39 = vld [vmem:[%s9217_s17 + $0x1] ss:$0 sm:$0xff] }
0x1eed   : > { %7553 = vmatprep.subr.bf16.mxu0 %v8154_v2 }
0x1fae   : > { %v4604_v11 = vpop.f32.mrb[42].mxu0 }
0x1faf   : > { %v7180_v12 = vpop.f32.mrb[43].mxu0  ;;  %7184 = vmatmul.mubr.msk.f32.vlgmr.msra.gmra.mrb[44].mxu1 %vm1278_vm4, %v4604_v11  ;;  %v5307_v11 = vld [vmem:[#allocation14 + $0xb8] sm:$0xff] }
0x1fb0   : > { %7537 = vmatpush3.bf16.msra.mxu1 %v7536_v8  ;;  %7205 = vmatprep.mubr.msk.f32.mxu1 %vm8153_vm0, %v8152_v1  ;;  %v5305_v8 = vld [vmem:[#allocation14 + $0xa8] sm:$0xff]  ;;  %v7563_v12 = vpack.c.bf16 %v5307_v11, %v5306_v10  ;;  %v5427_v11 = vld [vmem:[%s9314_s26] sm:$0x1]  ;;  %s8030_s26 = scalar_lea.vmem %s8029_s4, 32 }
0x1fb1   : > { %7538 = vmatprep.subr.bf16.mxu1 %v8154_v2  ;;  %v7560_v9 = vpack.c.bf16 %v5305_v8, %v5304_v7  ;;  %v5522_v7 = vld [vmem:[#allocation15 + $0x28] sm:$0xff] }
0x1fb4   : > { %7540 = vmatpush3.bf16.msra.mxu1 %v7539_v13  ;;  %v5308_v13 = vld [vmem:[#allocation14 + $0xc0] sm:$0xff] }
0x1fb5   : > { %7219 = vmatprep.subr.mxu1 %v8152_v1 }
0x1fb6   : > { %v4763_v14 = vpop.f32.mrb[44].mxu0 }
0x1fb7   : > { %v7196_v15 = vpop.f32.mrb[45].mxu0  ;;  %7206 = vmatmul.mubr.msk.f32.vlgmr.msra.gmra.mrb[46].mxu1 %vm1042_vm3, %v8824_v43  ;;  %v4764_v28 = vadd.f32 %v6499_v24, %v4763_v14  ;;  %v5309_v14 = vld [vmem:[#allocation14 + $0xc8] sm:$0xff] }
0x1fb8   : > { %7221 = vmatprep.mubr.msk.f32.mxu1 %vm8153_vm0, %v8152_v1  ;;  %v7566_v15 = vpack.c.bf16 %v5309_v14, %v5308_v13  ;;  %v5601_v13 = vld [vmem:[#allocation15 + $0x50] sm:$0xff]  ;;  %v5602_v14 = vld [vmem:[#allocation15 + $0x58] sm:$0xff] }
0x1fbe   : > { %v4929_v16 = vpop.f32.mrb[46].mxu0 }
0x1fbf   : > { %v7218_v17 = vpop.f32.mrb[47].mxu0  ;;  %v4930_v29 = vadd.f32 %v6505_v27, %v4929_v16  ;;  %v5310_v16 = vld [vmem:[#allocation14 + $0xd0] sm:$0xff]  ;;  %v6513_v27 = vld [vmem:[%s9212_s12 + $0x1] ss:$0 sm:$0xff] }
0x1fc0   : > { %v5311_v17 = vld [vmem:[#allocation14 + $0xd8] sm:$0xff] }
0x2082   : > { %v4679_v18 = vpop.f32.mrb[44].mxu1 }
0x2083   : > { %v4683_v19 = vadd.f32 %v4679_v18, %v8933_v31  ;;  %v7185_v20 = vpop.f32.mrb[45].mxu1  ;;  %v7569_v18 = vpack.c.bf16 %v5311_v17, %v5310_v16  ;;  %v5524_v16 = vld [vmem:[#allocation15 + $0x38] sm:$0xff]  ;;  %v7611_v17 = vpack.c.bf16 %v5602_v14, %v5601_v13 }
0x2084   : > { %v5313_v20 = vld [vmem:[#allocation14 + $0xe8] sm:$0xff] }
0x208a   : > { %v4846_v23 = vpop.f32.mrb[46].mxu1 }
0x208b   : > { %v4847_v25 = vadd.f32 %v6502_v21, %v4846_v23  ;;  %v7207_v26 = vpop.f32.mrb[47].mxu1 }
0x208d   : > { %7220 = vmatpush3.xpose.msk.msra.mxu1 %vm1278_vm4, %v4847_v25 }
0x208e   : > { %7224 = vmatprep.subr.mxu1 %v8152_v1 }
0x2090   : > { %7222 = vmatmul.mubr.msk.f32.vlgmr.msra.gmra.mrb[48].mxu1 %vm1278_vm4, %v4764_v28 }
0x2091   : > { %7225 = vmatpush3.msra.mxu1 %v4930_v29  ;;  %7226 = vmatprep.mubr.msk.f32.mxu1 %vm8153_vm0, %v8152_v1  ;;  %v6515_v29 = vld [vmem:[%s9213_s13 + $0x1] ss:$0 sm:$0xff] }
0x2092   : > { %7547 = vmatprep.subr.bf16.mxu1 %v8154_v2 }
0x2163   : > { %v5005_v30 = vpop.f32.mrb[48].mxu1 }
0x2164   : > { %v5009_v31 = vmul.f32 0.35355338, %v5005_v30  ;;  %v7223_v32 = vpop.f32.mrb[49].mxu1 }
0x2165   : > { %v5314_v32 = vld [vmem:[#allocation14 + $0xf0] sm:$0xff] }
0x2166   : > { %v5010_v33 = vadd.f32 %v8946_v44, %v5009_v31 }
0x2168   : > { %v5011_v34 = vsel %vm1278_vm4, %v5010_v33, -inf }
0x2169   : > { %5012 = vmax.xlane.f32.xlu0 %v5011_v34 }
0x21f6   : > { %v5013_v35 = vpop.xlane.xlu0 %5012 }
0x21f7   : > { %v5014_v22 = vsub.f32 %v5010_v33, %v5013_v35  ;;  %v5315_v33 = vld [vmem:[#allocation14 + $0xf8] sm:$0xff] }
0x21f8   : > { %v7575_v34 = vpack.c.bf16 %v5315_v33, %v5314_v32  ;;  %v6521_v35 = vld [vmem:[%s9215_s15 + $0x1] ss:$0 sm:$0xff] }
0x21f9   : > { %v5015_v36 = vmul.f32 1.442695, %v5014_v22 }
0x21fb   : > { %7791 = vpow2.f32 %v5015_v36 }
0x2205   : > { %v7792_v37 = vpop.eup %7791 }
0x2206   : > { %v5017_v38 = vsel %vm1278_vm4, %v7792_v37, 0.0 }
0x2207   : > { %5018 = vadd.xlane.f32.xlu1 %v5017_v38 }
0x2294   : > { %v5019_v40 = vpop.xlane.xlu1 %5018 }
0x2295   : > { %7793 = vrcp.f32 %v5019_v40 }
0x229f   : > { %v7794_v41 = vpop.eup %7793 }
0x22a0   : > { %v5021_v42 = vmul.f32 %v7794_v41, %v7792_v37 }
0x22a2   : > { %7227 = vmatmul.mubr.msk.f32.vlgmr.msra.gmra.mrb[50].mxu1 %vm1278_vm4, %v5021_v42 }
0x22a3   : > { %7242 = vmatprep.mubr.msk.f32.mxu1 %vm8153_vm0, %v8152_v1  ;;  %7549 = vmatpush3.bf16.msra.mxu1 %v7548_v61 }
0x22a4   : > { %7550 = vmatprep.subr.bf16.mxu1 %v8154_v2 }
0x2375   : > { %v5091_v44 = vpop.f32.mrb[50].mxu1 }
0x2376   : > { %v7228_v45 = vpop.f32.mrb[51].mxu1  ;;  %7232 = vmatmul.mubr.msk.f32.vlgmr.msra.gmra.mrb[48].mxu0 %vm1278_vm4, %v5091_v44 }
0x2377   : > { %7277 = vmatprep.mubr.msk.f32.mxu0 %vm8153_vm0, %v8152_v1  ;;  %7555 = vmatpush3.bf16.msra.mxu0 %v7554_v4  ;;  %v5599_v4 = vld [vmem:[#allocation15 + $0x40] sm:$0xff] }
0x2378   : > { %7556 = vmatprep.subr.bf16.mxu0 %v8154_v2 }
0x237b   : > { %7558 = vmatpush3.bf16.msra.mxu0 %v7557_v6  ;;  %v5521_v6 = vld [vmem:[#allocation15 + $0x20] sm:$0xff] }
0x237c   : > { %7559 = vmatprep.subr.bf16.mxu0 %v8154_v2 }
0x237f   : > { %7561 = vmatpush3.bf16.msra.mxu0 %v7560_v9  ;;  %v7608_v9 = vpack.c.bf16 %v5600_v5, %v5599_v4 }
0x2380   : > { %7562 = vmatprep.subr.bf16.mxu0 %v8154_v2 }
0x2383   : > { %7564 = vmatpush3.bf16.msra.mxu0 %v7563_v12  ;;  %v7578_v12 = vpack.c.bf16 %v5522_v7, %v5521_v6 }
0x2384   : > { %7565 = vmatprep.subr.bf16.mxu0 %v8154_v2 }
0x2387   : > { %7567 = vmatpush3.bf16.msra.mxu0 %v7566_v15  ;;  %v5523_v15 = vld [vmem:[#allocation15 + $0x30] sm:$0xff] }
0x2388   : > { %7568 = vmatprep.subr.bf16.mxu0 %v8154_v2 }
0x238b   : > { %7570 = vmatpush3.bf16.msra.mxu0 %v7569_v18  ;;  %v7581_v18 = vpack.c.bf16 %v5524_v16, %v5523_v15 }
0x238c   : > { %7571 = vmatprep.subr.bf16.mxu0 %v8154_v2 }
0x2449   : > { %v5166_v46 = vpop.f32.mrb[48].mxu0 }
0x244a   : > { %v5170_v48 = vadd.f32 %v5166_v46, %v4683_v19  ;;  %v7233_v49 = vpop.f32.mrb[49].mxu0  ;;  %v5312_v19 = vld [vmem:[#allocation14 + $0xe0] sm:$0xff] }
0x244b   : > { %v7572_v21 = vpack.c.bf16 %v5313_v20, %v5312_v19  ;;  %v5765_v19 = vld [vmem:[#allocation15 + $0xc0] sm:$0xff]  ;;  %v5766_v20 = vld [vmem:[#allocation15 + $0xc8] sm:$0xff] }
0x244c   : > { %v5179_v50 = vadd.f32 %v6511_v47, %v5170_v48 }
0x244d   : > { %7573 = vmatpush3.bf16.msra.mxu0 %v7572_v21  ;;  %v5604_v21 = vld [vmem:[#allocation15 + $0x60] sm:$0xff] }
0x244e   : > { %v5180_v51 = vadd.f32 %v5179_v50, %v8824_v43  ;;  %v6518_v43 = vld [vmem:[%s9214_s14 + $0x30] sm:$0xff]  ;;  %7574 = vmatprep.subr.bf16.mxu0 %v8154_v2 }
0x244f   : > { %v7551_v63 = vpack.c.bf16 %v6519_v62, %v6518_v43 }
0x2450   : > { %v5181_v52 = vsel %vm1042_vm3, %v5180_v51, 0.0 }
0x2451   : > { %5182 = vadd.xlane.f32.xlu0 %v5181_v52  ;;  %7552 = vmatpush3.bf16.msra.mxu1 %v7551_v63  ;;  %v5771_v52 = vld [vmem:[#allocation15 + $0xe8] sm:$0xff]  ;;  %v6526_v63 = vld [vmem:[%s9218_s18 + $0x1] ss:$0 sm:$0xff] }
0x2452   : > { %7280 = vmatprep.subr.mxu1 %v8152_v1  ;;  %7576 = vmatpush3.bf16.msra.mxu0 %v7575_v34  ;;  %v5687_v34 = vld [vmem:[#allocation15 + $0xa0] sm:$0xff] }
0x2453   : > { %7595 = vmatprep.subr.bf16.mxu0 %v8154_v2 }
0x24de   : > { %v5183_v53 = vpop.xlane.xlu0 %5182 }
0x24df   : > { %v5184_v54 = vmul.f32 0.03125, %v5183_v53 }
0x24e1   : > { %v5185_v56 = vsub.f32 %v5180_v51, %v5184_v54  ;;  %v5770_v51 = vld [vmem:[#allocation15 + $0xe0] sm:$0xff]  ;;  %v5772_v54 = vld [vmem:[#allocation15 + $0xf0] sm:$0xff] }
0x24e2   : > { %v7596_v53 = vpack.c.bf16 %v5771_v52, %v5770_v51  ;;  %v5684_v52 = vld [vmem:[#allocation15 + $0x90] sm:$0xff] }
0x24e3   : > { %v5186_v57 = vmul.f32 %v5185_v56, %v5185_v56 }
0x24e5   : > { %v5187_v58 = vsel %vm1042_vm3, %v5186_v57, 0.0 }
0x24e6   : > { %5188 = vadd.xlane.f32.xlu1 %v5187_v58  ;;  %v5428_v58 = vld [vmem:[#allocation2] sm:$0x1] }
0x2573   : > { %v5189_v23 = vpop.xlane.xlu1 %5188 }
0x2574   : > { %v5190_v24 = vmul.f32 0.03125, %v5189_v23  ;;  %v5605_v23 = vld [vmem:[#allocation15 + $0x68] sm:$0xff] }
0x2576   : > { %v5191_v25 = vadd.f32 1e-05, %v5190_v24  ;;  %v7620_v24 = vpack.c.bf16 %v5766_v20, %v5765_v19 }
0x2578   : > { %7795 = vrsqrt.f32 %v5191_v25 }
0x2582   : > { %v7796_v26 = vpop.eup %7795 }
0x2583   : > { %v5193_v28 = vmul.f32 %v7796_v26, %v5185_v56  ;;  %v5773_v56 = vld [vmem:[#allocation15 + $0xf8] sm:$0xff]  ;;  %v7584_v26 = vpack.c.bf16 %v5605_v23, %v5604_v21 }
0x2584   : > { %v7599_v57 = vpack.c.bf16 %v5773_v56, %v5772_v54 }
0x2585   : > { %v5202_v30 = vmul.f32 %v6513_v27, %v5193_v28  ;;  %v5767_v27 = vld [vmem:[#allocation15 + $0xd0] sm:$0xff]  ;;  %v5768_v28 = vld [vmem:[#allocation15 + $0xd8] sm:$0xff] }
0x2586   : > { %v7623_v32 = vpack.c.bf16 %v5768_v28, %v5767_v27 }
0x2587   : > { %v5211_v31 = vadd.f32 %v6515_v29, %v5202_v30  ;;  %v5606_v30 = vld [vmem:[#allocation15 + $0x70] sm:$0xff] }
0x2589   : > { %7243 = vmatmul.mubr.msk.f32.vlgmr.msra.gmra.mrb[52].mxu1 %vm1042_vm3, %v5211_v31 }
0x258a   : > { %7282 = vmatprep.mubr.msk.f32.mxu1 %vm8153_vm0, %v8152_v1 }
0x265c   : > { %v5294_v22 = vpop.f32.mrb[52].mxu1 }
0x265d   : > { %v5295_v36 = vadd.f32 %v6521_v35, %v5294_v22  ;;  %v7244_v37 = vpop.f32.mrb[53].mxu1  ;;  %v5688_v35 = vld [vmem:[#allocation15 + $0xa8] sm:$0xff] }
0x265f   : > { %v5298_v38 = vmax.f32 %v5295_v36, 0.0  ;;  %v7590_v36 = vpack.c.bf16 %v5688_v35, %v5687_v34 }
0x2661   : > { %7278 = vmatmul.mubr.f32.vlgmr.msra.gmra.mrb[50].mxu0 %v5298_v38  ;;  %v5689_v38 = vld [vmem:[#allocation15 + $0xb0] sm:$0xff] }
0x2662   : > { %7326 = vmatprep.mubr.msk.f32.mxu0 %vm8153_vm0, %v8152_v1  ;;  %7597 = vmatpush3.bf16.msra.mxu0 %v7596_v53  ;;  %v5685_v53 = vld [vmem:[#allocation15 + $0x98] sm:$0xff] }
0x2663   : > { %7598 = vmatprep.subr.bf16.mxu0 %v8154_v2  ;;  %v7617_v54 = vpack.c.bf16 %v5685_v53, %v5684_v52 }
0x2666   : > { %7600 = vmatpush3.bf16.msra.mxu0 %v7599_v57  ;;  %v5434_v57 = vlaneseq }
0x2667   : > { %7607 = vmatprep.subr.bf16.mxu0 %v8154_v2 }
0x2734   : > { %v5390_v40 = vpop.f32.mrb[50].mxu0 }
0x2735   : > { %v5391_v41 = vadd.f32 %v6524_v39, %v5390_v40  ;;  %v7279_v42 = vpop.f32.mrb[51].mxu0  ;;  %v5690_v39 = vld [vmem:[#allocation15 + $0xb8] sm:$0xff] }
0x2736   : > { %v7593_v40 = vpack.c.bf16 %v5690_v39, %v5689_v38  ;;  %v5517_v42 = vld [vmem:[#allocation15 + $0x8] sm:$0xff] }
0x2737   : > { %v5394_v44 = vadd.f32 %v5391_v41, %v5211_v31  ;;  %v5607_v31 = vld [vmem:[#allocation15 + $0x78] sm:$0xff]  ;;  %v5516_v41 = vld [vmem:[#allocation15] sm:$0xff] }
0x2738   : > { %v7587_v33 = vpack.c.bf16 %v5607_v31, %v5606_v30 }
0x2739   : > { %v5395_v45 = vsel %vm1042_vm3, %v5394_v44, 0.0 }
0x273a   : > { %5396 = vadd.xlane.f32.xlu0 %v5395_v45 }
0x2750   : > { %5431 = vperm.xlu0 %7758, %v5428_v58   ;;  %v5435_v58 = vshrl.u32 %v5434_v57, 7 }
0x2752   : > { %v5436_v59 = vsub.s32 0, %v5435_v58 }
0x27c7   : > { %v5397_v46 = vpop.xlane.xlu0 %5396 }
0x27c8   : > { %v5398_v47 = vmul.f32 0.03125, %v5397_v46  ;;  %v5518_v46 = vld [vmem:[#allocation15 + $0x10] sm:$0xff] }
0x27ca   : > { %v5399_v48 = vsub.f32 %v5394_v44, %v5398_v47  ;;  %v7602_v44 = vpack.c.bf16 %v5517_v42, %v5516_v41  ;;  %v5519_v47 = vld [vmem:[#allocation15 + $0x18] sm:$0xff] }
0x27cc   : > { %v5400_v49 = vmul.f32 %v5399_v48, %v5399_v48 }
0x27ce   : > { %v5401_v50 = vsel %vm1042_vm3, %v5400_v49, 0.0  ;;  %v5682_v49 = vld [vmem:[#allocation15 + $0x80] sm:$0xff] }
0x27cf   : > { %5402 = vadd.xlane.f32.xlu1 %v5401_v50  ;;  %v5683_v50 = vld [vmem:[#allocation15 + $0x88] sm:$0xff] }
0x27d0   : > { %v7614_v51 = vpack.c.bf16 %v5683_v50, %v5682_v49 }
0x285c   : > { %v5403_v60 = vpop.xlane.xlu1 %5402 }
0x285d   : > { %v5404_v61 = vmul.f32 0.03125, %v5403_v60  ;;  %v5432_v60 = vpop.permute.xlu0 %5431 }
0x285f   : > { %v5405_v43 = vadd.f32 1e-05, %v5404_v61  ;;  %v5437_v61 = vrot.slane %v5432_v60, %v5436_v59 }
0x2861   : > { %7797 = vrsqrt.f32 %v5405_v43 }
0x286b   : > { %v7798_v62 = vpop.eup %7797 }
0x286c   : > { %v5407_v0 = vmul.f32 %v7798_v62, %v5399_v48  ;;  %v7605_v48 = vpack.c.bf16 %v5519_v47, %v5518_v46 }
0x286e   : > { %v5416_v3 = vmul.f32 %v6526_v63, %v5407_v0 }
0x2870   : > { %v9059_v8 = vadd.f32 %v6528_v55, %v5416_v3 }
0x2872   : > { %5426 = vst.msk [vmem:[%s936_s29] sm:$0xff] %vm1042_vm3, %v9059_v8  ;;  %7281 = vmatpush3.xpose.msk.msra.mxu1 %vm1042_vm3, %v9059_v8  ;;  %v5774_v10 = vrot.slane %v9059_v8, 7  ;;  %v5917_v25 = vrot.slane %v9059_v8, 2  ;;  %v5525_v29 = vrot.slane %v9059_v8, 1  ;;  %v6063_v22 = vrot.slane %v9059_v8, 6  ;;  %s8024_s29 = scalar_lea.vmem %s9124_s7, 16 }
0x2873   : > { %7577 = vmatprep.subr.bf16.mxu1 %v8154_v2  ;;  %v5608_v37 = vrot.slane %v9059_v8, 3  ;;  %v5691_v45 = vrot.slane %v9059_v8, 5  ;;  %v5990_v56 = vrot.slane %v9059_v8, 4  ;;  %p8025_p6 = scmp.ne.s32.totalorder %s9124_s7, %s8024_s29  ;;  %p8032_p2 = scmp.lt.s32.totalorder %s8030_s26, %s8024_s29 }
0x2874   : > { %7327 = vmatmul.mubr.msk.f32.vlgmr.msra.gmra.mrb[52].mxu0 %vm1042_vm3, %v5774_v10 }
0x2875   : > { %7609 = vmatpush3.bf16.msra.mxu0 %v7608_v9  ;;  %7283 = vmatmul.mubr.msk.f32.vlgmr.msra.gmra.mrb[54].mxu1 %vm1042_vm3, %v5427_v11  ;;  %p8026_p5 = pnand %p8025_p6, %p9318_p9  ;;  %p8033_p3 = por %p8032_p2, %p8031_p10 }
0x2876   : > { %7579 = vmatpush3.bf16.msra.mxu1 %v7578_v12  ;;  %7610 = vmatprep.subr.bf16.mxu0 %v8154_v2 }
0x2877   : > { %7580 = vmatprep.subr.bf16.mxu1 %v8154_v2  ;;  %7348 = vmatprep.mubr.msk.f32.mxu0 %vm8153_vm0, %v8152_v1  ;;  %p8027_p0 = pneg %p8026_p5 }
0x2878   : > { %7293 = vmatprep.mubr.msk.f32.mxu1 %vm8153_vm0, %v8152_v1 }
0x2879   : > { %7612 = vmatpush3.bf16.msra.mxu0 %v7611_v17  ;;  %p8034_p4 = pnand %p8033_p3, %p8027_p0 }
0x287a   : > { %7582 = vmatpush3.bf16.msra.mxu1 %v7581_v18  ;;  %7619 = vmatprep.subr.bf16.mxu0 %v8154_v2 }
0x287b   : > { %7583 = vmatprep.subr.bf16.mxu1 %v8154_v2 }
0x287c   : > { %7349 = vmatmul.mubr.msk.f32.vlgmr.msra.gmra.mrb[54].mxu0 %vm1042_vm3, %v5917_v25 }
0x287d   : > { %7621 = vmatpush3.bf16.msra.mxu0 %v7620_v24  ;;  %7294 = vmatmul.mubr.msk.f32.vlgmr.msra.gmra.mrb[56].mxu1 %vm1042_vm3, %v5525_v29 }
0x287e   : > { %7585 = vmatpush3.bf16.msra.mxu1 %v7584_v26  ;;  %7622 = vmatprep.subr.bf16.mxu0 %v8154_v2 }
0x287f   : > { %7586 = vmatprep.subr.bf16.mxu1 %v8154_v2  ;;  %7370 = vmatprep.mubr.msk.f32.mxu0 %vm8153_vm0, %v8152_v1 }
0x2880   : > { %7304 = vmatprep.mubr.msk.f32.mxu1 %vm8153_vm0, %v8152_v1 }
0x2881   : > { %7624 = vmatpush3.bf16.msra.mxu0 %v7623_v32 }
0x2882   : > { %7588 = vmatpush3.bf16.msra.mxu1 %v7587_v33 }
0x2883   : > { %7589 = vmatprep.subr.bf16.mxu1 %v8154_v2 }
0x2884   : > { %7371 = vmatmul.mubr.msk.f32.vlgmr.msra.gmra.mrb[56].mxu0 %vm1042_vm3, %v6063_v22 }
0x2885   : > { %7305 = vmatmul.mubr.msk.f32.vlgmr.msra.gmra.mrb[58].mxu1 %vm1042_vm3, %v5608_v37 }
0x2886   : > { %7591 = vmatpush3.bf16.msra.mxu1 %v7590_v36  ;;  %7315 = vmatprep.mubr.msk.f32.mxu1 %vm8153_vm0, %v8152_v1 }
0x2887   : > { %7592 = vmatprep.subr.bf16.mxu1 %v8154_v2 }
0x288a   : > { %7594 = vmatpush3.bf16.msra.mxu1 %v7593_v40 }
0x288b   : > { %7601 = vmatprep.subr.bf16.mxu1 %v8154_v2 }
0x288d   : > { %7316 = vmatmul.mubr.msk.f32.vlgmr.msra.gmra.mrb[60].mxu1 %vm1042_vm3, %v5691_v45 }
0x288e   : > { %7603 = vmatpush3.bf16.msra.mxu1 %v7602_v44  ;;  %7337 = vmatprep.mubr.msk.f32.mxu1 %vm8153_vm0, %v8152_v1 }
0x288f   : > { %7604 = vmatprep.subr.bf16.mxu1 %v8154_v2 }
0x2892   : > { %7606 = vmatpush3.bf16.msra.mxu1 %v7605_v48 }
0x2893   : > { %7613 = vmatprep.subr.bf16.mxu1 %v8154_v2 }
0x2895   : > { %7338 = vmatmul.mubr.msk.f32.vlgmr.msra.gmra.mrb[62].mxu1 %vm1042_vm3, %v9059_v8 }
0x2896   : > { %7615 = vmatpush3.bf16.msra.mxu1 %v7614_v51  ;;  %7359 = vmatprep.mubr.msk.f32.mxu1 %vm8153_vm0, %v8152_v1 }
0x2897   : > { %7616 = vmatprep.subr.bf16.mxu1 %v8154_v2 }
0x289a   : > { %7618 = vmatpush3.bf16.msra.mxu1 %v7617_v54 }
0x289d   : > { %7360 = vmatmul.mubr.msk.f32.vlgmr.msra.gmra.mrb[64].mxu1 %vm1042_vm3, %v5990_v56 }
0x2947   : > { %v5843_v1 = vpop.f32.mrb[52].mxu0 }
0x2948   : > { %v7328_v2 = vpop.f32.mrb[53].mxu0  ;;  %v5510_v43 = vpop.f32.mrb[54].mxu1 }
0x2949   : > { %v5511_v62 = vadd.f32 %v5510_v43, %v5437_v61  ;;  %v7284_v63 = vpop.f32.mrb[55].mxu1 }
0x294b   : > { %5515 = vst.msk [vmem:[%s919_s30] sm:$0x1] %vm5514_vm5, %v5511_v62 }
0x294c   : > { %8037 = shalt.err (!%p8034_p4)
}
0x294d   : > { %s8038_s6 = scalar_lea.hbm %s9122_s3, 16  ;;  %s8042_s23 = scalar_lea.hbm %s9317_s1, 32 }
0x294e   : > { %p8039_p12 = scmp.ne.s32.totalorder %s9122_s3, %s8038_s6  ;;  %p8043_p11 = scmp.lt.u32.totalorder %s9122_s3, %s9317_s1 }
0x294f   : > { %p8044_p13 = scmp.lt.u32.totalorder %s8042_s23, %s8038_s6  ;;  %p8046_p6 = scmp.lt.u32.totalorder %s8038_s6, %s9122_s3 }
0x2950   : > { %p8040_p7 = pnand %p8039_p12, %p9318_p9 }
0x2951   : > { %p8045_p1 = por %p8044_p13, %p8043_p11 }
0x2952   : > { %p8041_p8 = pneg %p8040_p7 }
0x2953   : > { %p8047_p5 = por %p8046_p6, %p8045_p1 }
0x2955   : > { %p8048_p0 = pnand %p8047_p5, %p8041_p8 }
0x2957   : > { %8051 = shalt.err (!%p8048_p0)
}
0x2958   : > { %7657 = dma.vmem_to_hbm [thread:$0]  (%p9318_p9), %s9124_s7, 16, %s9122_s3, %s6149_s2   ;;  %v5986_v0 = vpop.f32.mrb[54].mxu0  ;;  %v5594_v3 = vpop.f32.mrb[56].mxu1  ;;  %vm6142_vm6 = vcmask 253952  }
0x2959   : > { %v7350_v55 = vpop.f32.mrb[55].mxu0  ;;  %v7295_v4 = vpop.f32.mrb[57].mxu1  ;;  %s9319_s2 = sld [smem:[#allocation48_spill]]  ;;  %s925_s29 = scalar_lea.vmem [#allocation18], %s9113_s24 }
0x295a   : > { %v6132_v5 = vpop.f32.mrb[56].mxu0  ;;  %v5677_v8 = vpop.f32.mrb[58].mxu1  ;;  %s6181_s26 = sshll.u32 %s925_s29, 4  ;;  %s9320_s8 = sld [smem:[#allocation51_spill]]  ;;  %s9159_s26 = int_to_ptr.vmem [resolvable:$true] %s6181_s26 }
0x295b   : > { %v6133_v6 = vadd.f32 %v6132_v5, %v5843_v1  ;;  %v7372_v7 = vpop.f32.mrb[57].mxu0  ;;  %v5987_v9 = vadd.f32 %v5986_v0, %v5677_v8  ;;  %v7306_v10 = vpop.f32.mrb[59].mxu1  ;;  %s6153_s4 = scalar_lea.sflag [#allocation19], %s9113_s24  ;;  %s8052_s7 = scalar_lea.vmem %s9159_s26, 16 }
0x295c   : > { %p8053_p10 = scmp.ne.s32.totalorder %s9159_s26, %s8052_s7  ;;  %s8157_s3 = smov [#allocation18]  }
0x295e   : > { %p8054_p2 = pnand %p8053_p10, %p9318_p9 }
0x295f   : > { %v6139_v21 = vld [vmem:[%s9319_s2] sm:$0x1]  ;;  %s8056_s2 = sshll.u32 %s8157_s3, 4  ;;  %s8057_s2 = int_to_ptr.vmem [resolvable:$false] %s8056_s2 }
0x2960   : > { %v5760_v11 = vpop.f32.mrb[60].mxu1  ;;  %s9321_s23 = smov %s9320_s8  ;;  %s9157_s11 = scalar_lea.hbm %s9320_s8, %s6539_s28 }
0x2961   : > { %v7317_v12 = vpop.f32.mrb[61].mxu1  ;;  %p8055_p3 = pneg %p8054_p2  ;;  %s8058_s21 = scalar_lea.vmem %s8057_s2, 32 }
0x2962   : > { %p8059_p4 = scmp.lt.s32.totalorder %s9159_s26, %s8057_s2  ;;  %p8060_p12 = scmp.lt.s32.totalorder %s8058_s21, %s8052_s7 }
0x2964   : > { %p8061_p7 = por %p8060_p12, %p8059_p4 }
0x2966   : > { %p8062_p8 = pnand %p8061_p7, %p8055_p3 }
0x2968   : > { %v5913_v13 = vpop.f32.mrb[62].mxu1 }
0x2969   : > { %v5914_v14 = vadd.f32 %v5913_v13, %v5594_v3  ;;  %v7339_v15 = vpop.f32.mrb[63].mxu1 }
0x296b   : > { %v6136_v16 = vadd.f32 %v5987_v9, %v5914_v14 }
0x2970   : > { %v6059_v17 = vpop.f32.mrb[64].mxu1 }
0x2971   : > { %v6060_v18 = vadd.f32 %v6059_v17, %v5760_v11  ;;  %v7361_v19 = vpop.f32.mrb[65].mxu1 }
0x2973   : > { %v6137_v20 = vadd.f32 %v6133_v6, %v6060_v18 }
0x2975   : > { %v6138_v23 = vadd.f32 %v6137_v20, %v6136_v16 }
0x2977   : > { %v6140_v24 = vadd.f32 %v6139_v21, %v6138_v23 }
0x2979   : > { %v6141_v25 = vmax.f32 %v6140_v24, 0.0 }
0x297b   : > { %6143 = vst.msk [vmem:[%s925_s29] sm:$0x1] %vm6142_vm6, %v6141_v25 }
0x297c   : > { %8065 = shalt.err (!%p8062_p8)
}
0x297d   : > { %s8066_s24 = scalar_lea.hbm %s9157_s11, 16  ;;  %s8070_s6 = scalar_lea.hbm %s9321_s23, 32 }
0x297e   : > { %p8067_p11 = scmp.ne.s32.totalorder %s9157_s11, %s8066_s24  ;;  %p8071_p6 = scmp.lt.u32.totalorder %s9157_s11, %s9321_s23 }
0x297f   : > { %p8072_p5 = scmp.lt.u32.totalorder %s8070_s6, %s8066_s24  ;;  %p8074_p10 = scmp.lt.u32.totalorder %s8066_s24, %s9157_s11 }
0x2980   : > { %p8068_p13 = pnand %p8067_p11, %p9318_p9 }
0x2981   : > { %p8073_p0 = por %p8072_p5, %p8071_p6 }
0x2982   : > { %p8069_p1 = pneg %p8068_p13 }
0x2983   : > { %p8075_p2 = por %p8074_p10, %p8073_p0 }
0x2985   : > { %p8076_p3 = pnand %p8075_p2, %p8069_p1 }
0x2987   : > { %8079 = shalt.err (!%p8076_p3)
}
0x2988   : > { %7658 = dma.vmem_to_hbm [thread:$0]  (%p9318_p9), %s9159_s26, 16, %s9157_s11, %s6153_s4  }
0x2989 PF: > { %s9322_s7 = sld [smem:[#allocation30_spill]]  ;;  %s9323_s3 = sld [smem:[#allocation27_spill]] }
0x298a   : > { %s9324_s2 = sld [smem:[#allocation34_spill]] }
0x298f   : > { %p7709_p4 = scmp.ge.s32.totalorder %s9322_s7, 2  ;;  %s6200_s21 = sand.u32 1, %s9323_s3  }
0x2990   : > { %p9325_p12 = scmp.ne.s32.totalorder %s9324_s2, 0  ;;  %s6201_s28 = scalar_lea.sflag [#allocation5], %s6200_s21 }
0x2992   : > { %p7687_p7 = pnand %p7709_p4, %p9325_p12 }
0x2994   : > { %8117 = dma.done.wait (!%p7687_p7), %s6201_s28, 16  }
0x2995   : > { %8119 = vsyncadd (!%p7687_p7), %s6201_s28, 4294967280  ;;  %s6209_s24 = scalar_lea.sflag [#allocation19], %s6200_s21 }
0x2996   : > { %8121 = dma.done.wait (!%p7687_p7), %s6209_s24, 16  }
0x2997   : > { %8123 = vsyncadd (!%p7687_p7), %s6209_s24, 4294967280  ;;  %s9326_s4 = sld [smem:[#allocation31_spill]]  ;;  %s9327_s7 = sld [smem:[#allocation28_spill]] }
0x2998   : > { %s9328_s28 = sld [smem:[#allocation29_spill]]  ;;  %s9329_s8 = sld [smem:[#allocation32_spill]] }
0x299d   : > { %p47_p9 = scmp.ge.s32.totalorder %s9326_s4, 4  }
0x299f   :  { %49 = sbr.rel (!%p47_p9) target bundleno = 28 (0x1c), region = 281 }
0x29a6   :  { %6213 = vsyncpa [#allocation4], 1 }
0x29a7   :  { %6215 = vsyncpa [#allocation4 + $0x1], 1 }
0x29a8   :  { %6216 = vsyncpa [#allocation7], 1 }
0x29a9   :  { %6217 = vsyncpa [#allocation10], 1 }
0x29aa   :  { %6218 = vsyncpa [#allocation13], 1 }
0x29ab   :  { %6219 = vsyncpa [#allocation16], 1 }
0x29ac   :  { %6220 = vsyncpa [#allocation5], 1 }
0x29ad   :  { %6222 = vsyncpa [#allocation5 + $0x1], 1 }
0x29ae   :  { %6223 = vsyncpa [#allocation19], 1 }
0x29af   :  { %6225 = vsyncpa [#allocation19 + $0x1], 1 }

</bundles_post_ra>
